<compile_context>
chip_gen: v7x
topology: tpu7x:2x2x1
jax: 0.10.0
libtpu: 0.0.40
codegen_flags: <defaults>
</compile_context>

<pallas_src>
import functools
import math

import numpy as np

import jax
import jax.numpy as jnp
from jax.experimental import pallas as pl
from jax.experimental.pallas import tpu as pltpu

# ----------------------------- small config ---------------------------------
DIM = 32
N_HEADS = 4
HEAD_DIM = DIM // N_HEADS            # 8
N_LAYERS = 4
VOCAB = 64
MULTIPLE_OF = 16
NORM_EPS = 1e-5
ARTH_INFLUENCE_LAYERS = (2, 3)
ARTH_INSERT_AFTER = 2
ADAPTER_LEN = 4
ADAPTER_LAYER = len(ARTH_INFLUENCE_LAYERS)

ARTH_DIM = 16                        # arth_params.dim
ARTH_MAX_SEQ_LEN = 4                 # arth_params.max_seq_len (output_steps == False)

_hd = int(2 * (4 * DIM) / 3)
FFN_HIDDEN = MULTIPLE_OF * ((_hd + MULTIPLE_OF - 1) // MULTIPLE_OF)   # 96

NEG_INF = -1e30                      # additive mask; softmax prob underflows to exactly 0
LANE_PAD = 128                       # lane-dense output width


# ----------------------- trace-time constant builders ------------------------
def _freqs(T, theta=10000.0):
    """cos/sin tables matching torch precompute_freqs_cis(HEAD_DIM, ...)[:T]."""
    exps = np.arange(0, HEAD_DIM, 2)[: HEAD_DIM // 2].astype(np.float32) / HEAD_DIM
    inv = (1.0 / (theta ** exps)).astype(np.float32)
    t = np.arange(T, dtype=np.float32)
    ang = np.outer(t, inv).astype(np.float32)                  # (T, HEAD_DIM//2)
    return np.cos(ang).astype(np.float32), np.sin(ang).astype(np.float32)


def _rope_tables_expanded(T, B):
    """Expand per-pair cos/sin to the flattened (B*T, DIM) lane layout.

    out = x * cos + swap(x) * sin_signed   reproduces the complex rotation:
      even lane: x0*cos - x1*sin ; odd lane: x1*cos + x0*sin
    """
    cos, sin = _freqs(T)
    cos_d = np.repeat(cos, 2, axis=1)                          # (T, HEAD_DIM)
    sin_d = np.repeat(sin, 2, axis=1)
    cos_full = np.tile(cos_d, (1, N_HEADS))                    # (T, DIM)
    sin_full = np.tile(sin_d, (1, N_HEADS))
    sign = np.tile(np.array([-1.0, 1.0], np.float32), DIM // 2)
    sin_signed = (sin_full * sign[None, :]).astype(np.float32)
    return (np.tile(cos_full, (B, 1)).astype(np.float32),
            np.tile(sin_signed, (B, 1)).astype(np.float32))


def _block_causal_mask(B, T):
    """Additive mask for the combined (B*T, B*T) score matrix:
    causal within a batch, NEG_INF across batches (emulates per-batch softmax)."""
    r = np.arange(B * T)
    b_r, t_r = r // T, r % T
    allowed = (b_r[:, None] == b_r[None, :]) & (t_r[None, :] <= t_r[:, None])
    return np.where(allowed, 0.0, NEG_INF).astype(np.float32)


def _head_lane_mask():
    """(N_HEADS, DIM) 0/1: row h keeps head h's lanes."""
    lm = np.zeros((N_HEADS, DIM), np.float32)
    for h in range(N_HEADS):
        lm[h, h * HEAD_DIM:(h + 1) * HEAD_DIM] = 1.0
    return lm


def _arth_row_selector(B, S):
    """(B, B*S) 0/1: row b sums the first ARTH_MAX_SEQ_LEN rows of batch b."""
    sel = np.zeros((B, B * S), np.float32)
    for b in range(B):
        sel[b, b * S:b * S + ARTH_MAX_SEQ_LEN] = 1.0
    return sel


def _tab_layout(B, S):
    """Row offsets inside the packed table input (shared by wrapper and kernel)."""
    N1, N2 = B * S, B * (S + ARTH_MAX_SEQ_LEN)
    off, r = {}, 0

    def add(name, rows):
        nonlocal r
        off[name] = (r, r + rows)
        r += rows

    add('cos8', N1); add('sin8', N1); add('cos12', N2); add('sin12', N2)
    add('em', N1); add('mask8', N1); add('mask12', N2)
    add('lm', N_HEADS); add('sel', B)
    return off, r


# bf16-operand matmul (single MXU pass, f32 accumulation); used by the wrapper's
# adapter-KV precompute and by the pure-JAX reference so both match the kernel.
def _bdot(a, b):
    return jnp.matmul(a.astype(jnp.bfloat16), b.astype(jnp.bfloat16),
                      preferred_element_type=jnp.float32)


def _beinsum(eq, a, b):
    return jnp.einsum(eq, a.astype(jnp.bfloat16), b.astype(jnp.bfloat16),
                      preferred_element_type=jnp.float32)


# ----------------------------- fused Pallas kernel ----------------------------
def _fused_forward_kernel(
    # inputs
    h0_ref, tab_ref, tok_emb_ref, wbig_ref, w2_ref, norms_ref, akv_ref,
    mlp32_ref, mlp16_ref, wout_ref, wout_arth_ref,
    # outputs
    out_ref, gate_out_ref, arth_out_ref,
    # scratch
    h2_ref,
    *, B, S,
):
    f32 = jnp.float32
    bf16 = jnp.bfloat16
    AML = ARTH_MAX_SEQ_LEN
    T2 = S + AML
    N1, N2 = B * S, B * T2
    off, _ = _tab_layout(B, S)

    def sl(name, lanes=None):
        lo, hi = off[name]
        if lanes is None:
            return tab_ref[lo:hi, :]
        return tab_ref[lo:hi, 0:lanes]

    def mdot(a, b):                      # single-pass MXU matmul, f32 accumulate
        return jnp.dot(a.astype(bf16), b.astype(bf16), preferred_element_type=f32)

    def mdot_nt(a, b):                   # a @ b.T
        return jax.lax.dot_general(a.astype(bf16), b.astype(bf16),
                                   (((1,), (1,)), ((), ())),
                                   preferred_element_type=f32)

    def dot_exact(a, b):                 # exact f32 (one-hot / 0-1 selector matmuls)
        return jnp.dot(a, b, preferred_element_type=f32,
                       precision=jax.lax.Precision.HIGHEST)

    def rmsnorm(x, w):
        ms = jnp.mean(x * x, axis=-1, keepdims=True)
        return x * jax.lax.rsqrt(ms + NORM_EPS) * w

    def softmax(s):
        m = jnp.max(s, axis=-1, keepdims=True)
        e = jnp.exp(s - m)
        # reciprocal rides the EUP slot; approx=True possible if tolerance allows
        return e * pl.reciprocal(jnp.sum(e, axis=-1, keepdims=True), approx=False)

    def leaky(x):
        return jnp.where(x >= 0, x, 0.01 * x)

    lm = sl('lm')                                        # (H, DIM) head -> lane mask

    def stack_rows(m, n):                                # tile a mask per head block
        return jnp.broadcast_to(m[None, :, :],
                                (N_HEADS, n, m.shape[1])).reshape(N_HEADS * n,
                                                                  m.shape[1])

    def block(x, layer, n, cos, sin_s, mask_stk, a_idx):
        """One TransformerBlock on flattened (n, DIM) rows, all heads stacked."""
        wall = wbig_ref[layer]                           # (DIM, 5D + 2F + D)
        wqkv = wall[:, 0:5 * DIM]
        w13 = wall[:, 5 * DIM:5 * DIM + 2 * FFN_HIDDEN]
        wo = wall[:, 5 * DIM + 2 * FFN_HIDDEN:]

        xn = rmsnorm(x, norms_ref[2 * layer:2 * layer + 1, :])
        qkv = mdot(xn, wqkv)                             # (n, 160): [q k v swap(q) swap(k)]
        # RoPE via precomputed cos / signed-sin; 1/sqrt(hd) already folded into wq cols
        q = qkv[:, 0:DIM] * cos + qkv[:, 3 * DIM:4 * DIM] * sin_s
        k = qkv[:, DIM:2 * DIM] * cos + qkv[:, 4 * DIM:5 * DIM] * sin_s
        v = qkv[:, 2 * DIM:3 * DIM]

        # stack heads along rows: block h = q with only head-h lanes kept
        q_exp = (q[None, :, :] * lm[:, None, :]).reshape(N_HEADS * n, DIM)
        s = mdot_nt(q_exp, k) + mask_stk                 # (H*n, n), all heads at once
        o_st = mdot(softmax(s), v)                       # (H*n, DIM)

        if a_idx is not None:                            # adapter branch, also stacked
            akv = akv_ref[a_idx]                         # (2*AL, DIM)
            a_k = akv[0:ADAPTER_LEN, :]
            a_v = akv[ADAPTER_LEN:2 * ADAPTER_LEN, :]    # tanh(gate) pre-folded per lane
            s_a = mdot_nt(q_exp, a_k)                    # (H*n, AL), no mask
            o_st = o_st + mdot(softmax(s_a), a_v)

        # keep head-h lanes of block h, sum blocks, single output projection
        o = jnp.sum(o_st.reshape(N_HEADS, n, DIM) * lm[:, None, :], axis=0)
        h_res = x + mdot(o, wo)

        hn = rmsnorm(h_res, norms_ref[2 * layer + 1:2 * layer + 2, :])
        h13 = mdot(hn, w13)                              # (n, 2*FFN)
        h1 = h13[:, :FFN_HIDDEN]
        h3 = h13[:, FFN_HIDDEN:]
        return h_res + mdot(h1 * jax.nn.sigmoid(h1) * h3, w2_ref[layer])

    cos8, sin8 = sl('cos8'), sl('sin8')
    cos12, sin12 = sl('cos12'), sl('sin12')
    mask8_stk = stack_rows(sl('mask8', N1), N1)
    mask12_stk = stack_rows(sl('mask12', N2), N2)

    h = h0_ref[...]                                      # (N1, DIM) token embeddings
    adapter_index = -1
    for layer in range(N_LAYERS):
        if layer in ARTH_INFLUENCE_LAYERS:
            adapter_index += 1
            a_idx = adapter_index
        else:
            a_idx = None

        if layer <= ARTH_INSERT_AFTER:
            h = block(h, layer, N1, cos8, sin8, mask8_stk, a_idx)
        else:
            h = block(h, layer, N2, cos12, sin12, mask12_stk, a_idx)

        if layer == ARTH_INSERT_AFTER:
            # ---------------- arithmetic-transfer step ------------------------
            et0 = mlp32_ref[:, 0:DIM]
            ag0 = mlp32_ref[:, DIM:2 * DIM]
            et1 = mlp32_ref[:, 2 * DIM:2 * DIM + DIM // 2]
            ag1 = mlp32_ref[:, 2 * DIM + DIM // 2:2 * DIM + DIM]
            et2 = mlp16_ref[:, 0:ARTH_DIM]
            ag2 = mlp16_ref[:, ARTH_DIM:ARTH_DIM + 2]
            norm_gate_w = norms_ref[2 * N_LAYERS + 1:2 * N_LAYERS + 2, 0:2]

            # emb_transfer MLP on all rows (only rows b*S .. b*S+AML-1 are used)
            t = leaky(mdot(h * sl('em'), et0))
            t = leaky(mdot(t, et1))
            arth_all = mdot(mdot(t, et2), wout_arth_ref[...])      # (N1, 128)

            # arth_gate MLP on per-batch sums of the first AML rows (selector matmul)
            gate_in = dot_exact(sl('sel', N1), h)                  # (B, DIM)
            g = leaky(mdot(gate_in, ag0))
            g = leaky(mdot(g, ag1))
            gate_logits = rmsnorm(mdot(g, ag2), norm_gate_w)       # (B, 2)
            gate_out_ref[...] = gate_logits
            upd = (gate_logits[:, 1:2] > gate_logits[:, 0:1]).astype(f32)

            # TODO(synk): Arth_Model / ArthTransferBlock is undefined in the reference
            # code; use argmax over the arth logits as a deterministic proxy for its
            # result tokens.
            logits = arth_all[:, 0:VOCAB]
            viota = jax.lax.broadcasted_iota(jnp.int32, (N1, VOCAB), 1).astype(f32)
            mx = jnp.max(logits, axis=-1, keepdims=True)
            first = jnp.min(jnp.where(logits == mx, viota, float(VOCAB)),
                            axis=-1, keepdims=True)
            q_new = dot_exact((viota == first).astype(f32), tok_emb_ref[...])  # (N1,DIM)

            # prepend the (gated) new tokens in front of each batch's sequence
            for b in range(B):
                arth_out_ref[b * AML:(b + 1) * AML, :] = arth_all[b * S:b * S + AML, :]
                h2_ref[b * T2:b * T2 + AML, :] = (q_new[b * S:b * S + AML, :]
                                                  * upd[b:b + 1, :])
                h2_ref[b * T2 + AML:(b + 1) * T2, :] = h[b * S:(b + 1) * S, :]
            h = h2_ref[...]                                        # (N2, DIM)

    # final RMSNorm + output projection on the whole slab (lane-dense 128-wide store)
    out_ref[...] = mdot(rmsnorm(h, norms_ref[2 * N_LAYERS:2 * N_LAYERS + 1, :]),
                        wout_ref[...])


# ----------------------------- wrapper ---------------------------------------
@jax.jit
def transformer_forward(params, tokens, example_mask):
    """tokens: (B, S) int32, example_mask: (B, S) float32."""
    B, S = tokens.shape
    T2 = S + ARTH_MAX_SEQ_LEN
    N1, N2 = B * S, B * T2
    assert S >= ARTH_MAX_SEQ_LEN and N1 <= DIM and N2 <= DIM
    layers = params['layers']
    scale = 1.0 / math.sqrt(HEAD_DIM)
    swap = np.arange(DIM) ^ 1                            # RoPE pair-swap column perm

    # -------- per-layer weight slab: [wq*s | wk | wv | swap(wq*s) | swap(wk) | w1 | w3 | wo]
    def pack_layer(lp):
        wq_s = lp['wq'] * scale                          # fold score scale into wq
        wqkv_ext = jnp.concatenate(
            [wq_s, lp['wk'], lp['wv'], wq_s[:, swap], lp['wk'][:, swap]], axis=1)
        w13 = jnp.concatenate([lp['w1'], lp['w3']], axis=1)
        return jnp.concatenate([wqkv_ext, w13, lp['wo']], axis=1)   # (DIM, 384)

    wbig = jnp.stack([pack_layer(lp) for lp in layers])             # (L, DIM, 384)
    w2_all = jnp.stack([lp['w2'] for lp in layers])                 # (L, FFN, DIM)

    # -------- all norm weights in one slab
    norms = jnp.concatenate(
        [jnp.stack([lp['attn_norm'], lp['ffn_norm']]) for lp in layers]
        + [params['norm'].reshape(1, DIM),
           jnp.pad(params['norm_gate'].reshape(1, 2), ((0, 0), (0, DIM - 2)))],
        axis=0)                                                     # (2L+2, DIM)

    # -------- adapter K/V hoisted out of the kernel; tanh(gate) folded into V lanes
    adapter_all = params['adapter_query'].reshape(ADAPTER_LAYER, ADAPTER_LEN, DIM)
    akv_list = []
    for a_i, l_i in enumerate(ARTH_INFLUENCE_LAYERS):
        lp = layers[l_i]
        a_k = _bdot(adapter_all[a_i], lp['wk'])
        a_v = _bdot(adapter_all[a_i], lp['wv'])
        g_lane = jnp.repeat(jnp.tanh(lp['gate'].reshape(N_HEADS)), HEAD_DIM)
        akv_list.append(jnp.concatenate([a_k, a_v * g_lane[None, :]], axis=0))
    akv = jnp.stack(akv_list)                                       # (AD_L, 2*AL, DIM)

    # -------- emb_transfer / arth_gate MLP weights packed, outputs lane-padded
    et, ag = params['emb_transfer'], params['arth_gate']
    mlp32 = jnp.concatenate([et[0], ag[0], et[1], ag[1]], axis=1)   # (DIM, 3*DIM)
    mlp16 = jnp.pad(jnp.concatenate([et[2], ag[2]], axis=1),
                    ((0, 0), (0, DIM - (ARTH_DIM + 2))))            # (ARTH_DIM, DIM)
    wout = jnp.pad(params['output'], ((0, 0), (0, LANE_PAD - VOCAB)))
    wout_arth = jnp.pad(params['output_arth'], ((0, 0), (0, LANE_PAD - VOCAB)))

    # -------- packed table: rope tables, example mask, causal masks, head/lane masks
    cos8, sin8 = _rope_tables_expanded(S, B)
    cos12, sin12 = _rope_tables_expanded(T2, B)
    em32 = jnp.broadcast_to(example_mask.reshape(N1, 1).astype(jnp.float32), (N1, DIM))

    def padl(a):
        a = np.asarray(a, np.float32)
        return np.pad(a, ((0, 0), (0, DIM - a.shape[1])))

    tab = jnp.concatenate([
        jnp.asarray(cos8), jnp.asarray(sin8), jnp.asarray(cos12), jnp.asarray(sin12),
        em32,
        jnp.asarray(padl(_block_causal_mask(B, S))),
        jnp.asarray(padl(_block_causal_mask(B, T2))),
        jnp.asarray(_head_lane_mask()),
        jnp.asarray(padl(_arth_row_selector(B, S))),
    ], axis=0)

    h0 = params['tok_emb'][tokens.reshape(-1)]                      # exact gather

    inputs = [h0, tab, params['tok_emb'], wbig, w2_all, norms, akv,
              mlp32, mlp16, wout, wout_arth]

    out_pad, gate_logits, arth_pad = pl.pallas_call(
        functools.partial(_fused_forward_kernel, B=B, S=S),
        out_shape=(
            jax.ShapeDtypeStruct((N2, LANE_PAD), jnp.float32),
            jax.ShapeDtypeStruct((B, 2), jnp.float32),
            jax.ShapeDtypeStruct((B * ARTH_MAX_SEQ_LEN, LANE_PAD), jnp.float32),
        ),
        in_specs=[pl.BlockSpec(memory_space=pltpu.MemorySpace.VMEM)] * len(inputs),
        out_specs=(pl.BlockSpec(memory_space=pltpu.MemorySpace.VMEM),) * 3,
        scratch_shapes=[pltpu.VMEM((N2, DIM), jnp.float32)],
    )(*inputs)

    out = out_pad.reshape(B, T2, LANE_PAD)[:, :S - 1, :VOCAB]
    arth = arth_pad[:, :VOCAB].reshape(B, ARTH_MAX_SEQ_LEN, VOCAB)
    return out, gate_logits, arth


# ----------------------------- pure-JAX reference ------------------------------
def _ref_rmsnorm(x, w, eps=NORM_EPS):
    ms = jnp.mean(x * x, axis=-1, keepdims=True)
    return x * jax.lax.rsqrt(ms + eps) * w


def _ref_apply_rope(x, cos, sin):
    B, T, H, Dh = x.shape
    xr = x.reshape(B, T, H, Dh // 2, 2)
    x0, x1 = xr[..., 0], xr[..., 1]
    c = jnp.asarray(cos)[None, :, None, :]
    s = jnp.asarray(sin)[None, :, None, :]
    return jnp.stack([x0 * c - x1 * s, x0 * s + x1 * c], axis=-1).reshape(B, T, H, Dh)


def _ref_attention(lp, x, cos, sin, mask, adapter=None):
    B, T, D = x.shape
    scale = 1.0 / math.sqrt(HEAD_DIM)
    xq = _bdot(x, lp['wq'] * scale).reshape(B, T, N_HEADS, HEAD_DIM)
    xk = _bdot(x, lp['wk']).reshape(B, T, N_HEADS, HEAD_DIM)
    xv = _bdot(x, lp['wv']).reshape(B, T, N_HEADS, HEAD_DIM)
    xq, xk = _ref_apply_rope(xq, cos, sin), _ref_apply_rope(xk, cos, sin)
    adapter_len = 0
    if adapter is not None:
        AL = adapter.shape[0]
        adapter_len = AL
        ak = jnp.broadcast_to(_bdot(adapter, lp['wk']).reshape(1, AL, N_HEADS, HEAD_DIM),
                              (B, AL, N_HEADS, HEAD_DIM))
        av = jnp.broadcast_to(_bdot(adapter, lp['wv']).reshape(1, AL, N_HEADS, HEAD_DIM),
                              (B, AL, N_HEADS, HEAD_DIM))
        xk = jnp.concatenate([ak, xk], axis=1)
        xv = jnp.concatenate([av, xv], axis=1)
        mask = jnp.concatenate([jnp.zeros((1, 1, T, AL), mask.dtype), mask], axis=-1)
    q = jnp.transpose(xq, (0, 2, 1, 3))
    k = jnp.transpose(xk, (0, 2, 1, 3))
    v = jnp.transpose(xv, (0, 2, 1, 3))
    scores = _beinsum('bhqd,bhkd->bhqk', q, k) + mask
    if adapter is not None:
        g = jnp.tanh(lp['gate'])                                   # (1, H, 1, 1)
        pa = jax.nn.softmax(scores[..., :adapter_len], axis=-1) * g
        pm = jax.nn.softmax(scores[..., adapter_len:], axis=-1)
        out = (_beinsum('bhqk,bhkd->bhqd', pa, v[:, :, :adapter_len])
               + _beinsum('bhqk,bhkd->bhqd', pm, v[:, :, adapter_len:]))
    else:
        out = _beinsum('bhqk,bhkd->bhqd', jax.nn.softmax(scores, axis=-1), v)
    out = jnp.transpose(out, (0, 2, 1, 3)).reshape(B, T, D)
    return _bdot(out, lp['wo'])


def _ref_block(lp, x, cos, sin, mask, adapter=None):
    h = x + _ref_attention(lp, _ref_rmsnorm(x, lp['attn_norm']), cos, sin, mask, adapter)
    hn = _ref_rmsnorm(h, lp['ffn_norm'])
    h1 = _bdot(hn, lp['w1'])
    h3 = _bdot(hn, lp['w3'])
    return h + _bdot(h1 * jax.nn.sigmoid(h1) * h3, lp['w2'])


def _ref_mlp(ws, x):
    h = _bdot(x, ws[0])
    h = jnp.where(h >= 0, h, 0.01 * h)
    h = _bdot(h, ws[1])
    h = jnp.where(h >= 0, h, 0.01 * h)
    return _bdot(h, ws[2])


@jax.jit
def transformer_forward_ref(params, tokens, example_mask):
    B, S = tokens.shape
    T2 = S + ARTH_MAX_SEQ_LEN
    h = params['tok_emb'][tokens]
    adapter_all = params['adapter_query'].reshape(ADAPTER_LAYER, ADAPTER_LEN, DIM)
    em_tile = example_mask[:, :, None]

    cos_s, sin_s = _freqs(S)
    cos_m, sin_m = _freqs(T2)
    mask = jnp.asarray(np.triu(np.full((S, S), NEG_INF, np.float32), k=1)[None, None])
    mask_m = jnp.asarray(np.triu(np.full((T2, T2), NEG_INF, np.float32), k=1)[None, None])

    adapter_index = -1
    gate_logits = None
    arth_logits = None
    for li in range(N_LAYERS):
        lp = params['layers'][li]
        if li not in ARTH_INFLUENCE_LAYERS:
            h = _ref_block(lp, h, cos_s, sin_s, mask)
        else:
            adapter_index += 1
            ad = adapter_all[adapter_index]
            if li <= ARTH_INSERT_AFTER:
                h = _ref_block(lp, h, cos_s, sin_s, mask, ad)
            else:
                h = _ref_block(lp, h, cos_m, sin_m, mask_m, ad)
        if li == ARTH_INSERT_AFTER:
            h_tmp = h * em_tile
            h_for_arth = _ref_mlp(params['emb_transfer'], h_tmp[:, :ARTH_MAX_SEQ_LEN, :])
            gate_in = jnp.sum(h[:, :ARTH_MAX_SEQ_LEN, :], axis=1)
            gate_logits = _ref_rmsnorm(_ref_mlp(params['arth_gate'], gate_in),
                                       params['norm_gate'])
            arth_logits = _bdot(h_for_arth, params['output_arth'])
            # TODO(synk): same argmax proxy for the undefined Arth_Model as the kernel.
            arth_tokens = jnp.argmax(arth_logits, axis=-1)
            q_new = params['tok_emb'][arth_tokens]
            q_upd = (jnp.argmax(gate_logits, axis=-1) == 1).astype(h.dtype)
            h = jnp.concatenate([q_upd[:, None, None] * q_new, h], axis=1)
    h = _ref_rmsnorm(h[:, :S, :], params['norm'])
    out = _bdot(h[:, :-1, :], params['output'])
    return out, gate_logits, arth_logits


# ----------------------------- parameter init --------------------------------
def init_params(key):
    keys = iter(jax.random.split(key, 128))

    def lin(in_d, out_d):
        # stored as (in, out) so that x @ W matches torch's x @ W.T for nn.Linear
        return 0.02 * jax.random.normal(next(keys), (in_d, out_d), jnp.float32)

    params = {
        'tok_emb': 0.02 * jax.random.normal(next(keys), (VOCAB, DIM), jnp.float32),
        'layers': [],
        'norm': jnp.ones((DIM,), jnp.float32),
        'norm_gate': jnp.ones((2,), jnp.float32),
        'output': lin(DIM, VOCAB),
        'output_arth': lin(ARTH_DIM, VOCAB),
        'emb_transfer': [lin(DIM, DIM), lin(DIM, DIM // 2), lin(DIM // 2, ARTH_DIM)],
        'arth_gate': [lin(DIM, DIM), lin(DIM, DIM // 2), lin(DIM // 2, 2)],
        'adapter_query': 0.02 * jax.random.normal(
            next(keys), (ADAPTER_LEN * ADAPTER_LAYER, DIM), jnp.float32),
    }
    for _ in range(N_LAYERS):
        params['layers'].append(dict(
            wq=lin(DIM, DIM), wk=lin(DIM, DIM), wv=lin(DIM, DIM), wo=lin(DIM, DIM),
            gate=jnp.zeros((1, N_HEADS, 1, 1), jnp.float32),     # torch init: zeros
            w1=lin(DIM, FFN_HIDDEN), w2=lin(FFN_HIDDEN, DIM), w3=lin(DIM, FFN_HIDDEN),
            attn_norm=jnp.ones((DIM,), jnp.float32),
            ffn_norm=jnp.ones((DIM,), jnp.float32),
        ))
    return params


# ----------------------------- driver -----------------------------------------
if __name__ == "__main__":
    key = jax.random.PRNGKey(0)
    pkey, tkey, mkey = jax.random.split(key, 3)
    params = init_params(pkey)

    B, S = 2, 8
    tokens = jax.random.randint(tkey, (B, S), 0, VOCAB, dtype=jnp.int32)
    example_mask = jax.random.bernoulli(mkey, 0.7, (B, S)).astype(jnp.float32)

    out, gate_logits, arth_logits = transformer_forward(params, tokens, example_mask)
    jax.block_until_ready((out, gate_logits, arth_logits))

    assert out.shape == (B, S - 1, VOCAB)
    assert gate_logits.shape == (B, 2)
    assert arth_logits.shape == (B, ARTH_MAX_SEQ_LEN, VOCAB)

    # correctness check against a pure-JAX reference with matching matmul precision
    out_r, gl_r, al_r = transformer_forward_ref(params, tokens, example_mask)
    jax.block_until_ready((out_r, gl_r, al_r))
    for got, ref, name in ((out, out_r, "output"),
                           (gate_logits, gl_r, "gate_logits"),
                           (arth_logits, al_r, "arth_logits")):
        if not jnp.allclose(got, ref, atol=1e-3, rtol=1e-2):
            raise AssertionError(
                f"mismatch in {name}: max abs diff "
                f"{float(jnp.max(jnp.abs(got - ref)))}")

    print("KERNEL_OK")
</pallas_src>

<mosaic_0001>
module attributes {stable_mosaic.version = 11 : i64} {
  func.func @_fused_forward_kernel(%arg0: memref<16x32xf32, #tpu.memory_space<vmem>>, %arg1: memref<142x32xf32, #tpu.memory_space<vmem>>, %arg2: memref<64x32xf32, #tpu.memory_space<vmem>>, %arg3: memref<4x32x384xf32, #tpu.memory_space<vmem>>, %arg4: memref<4x96x32xf32, #tpu.memory_space<vmem>>, %arg5: memref<10x32xf32, #tpu.memory_space<vmem>>, %arg6: memref<2x8x32xf32, #tpu.memory_space<vmem>>, %arg7: memref<32x96xf32, #tpu.memory_space<vmem>>, %arg8: memref<16x32xf32, #tpu.memory_space<vmem>>, %arg9: memref<32x128xf32, #tpu.memory_space<vmem>>, %arg10: memref<16x128xf32, #tpu.memory_space<vmem>>, %arg11: memref<24x128xf32, #tpu.memory_space<vmem>>, %arg12: memref<2x2xf32, #tpu.memory_space<vmem>>, %arg13: memref<8x128xf32, #tpu.memory_space<vmem>>, %arg14: memref<24x32xf32, #tpu.memory_space<vmem>>) attributes {dimension_semantics = [], scalar_prefetch = 0 : i64, scratch_operands = 1 : i64, tpu.core_type = #tpu.core_type<tc>} {
    %c136 = arith.constant 136 : index
    %c0 = arith.constant 0 : index
    %0 = vector.load %arg1[%c136, %c0] : memref<142x32xf32, #tpu.memory_space<vmem>>, vector<4x32xf32>
    %c0_0 = arith.constant 0 : index
    %c0_1 = arith.constant 0 : index
    %1 = vector.load %arg1[%c0_0, %c0_1] : memref<142x32xf32, #tpu.memory_space<vmem>>, vector<16x32xf32>
    %c16 = arith.constant 16 : index
    %c0_2 = arith.constant 0 : index
    %2 = vector.load %arg1[%c16, %c0_2] : memref<142x32xf32, #tpu.memory_space<vmem>>, vector<16x32xf32>
    %c32 = arith.constant 32 : index
    %c0_3 = arith.constant 0 : index
    %3 = vector.load %arg1[%c32, %c0_3] : memref<142x32xf32, #tpu.memory_space<vmem>>, vector<24x32xf32>
    %c56 = arith.constant 56 : index
    %c0_4 = arith.constant 0 : index
    %4 = vector.load %arg1[%c56, %c0_4] : memref<142x32xf32, #tpu.memory_space<vmem>>, vector<24x32xf32>
    %c96 = arith.constant 96 : index
    %c0_5 = arith.constant 0 : index
    %5 = vector.load %arg1[%c96, %c0_5] : memref<142x32xf32, #tpu.memory_space<vmem>>, vector<16x16xf32>
    %6 = vector.shape_cast %5 : vector<16x16xf32> to vector<1x16x16xf32>
    %7 = vector.shape_cast %6 : vector<1x16x16xf32> to vector<1x16x16xf32>
    %8 = vector.broadcast %7 : vector<1x16x16xf32> to vector<4x16x16xf32>
    %9 = vector.shape_cast %8 : vector<4x16x16xf32> to vector<64x16xf32>
    %c112 = arith.constant 112 : index
    %c0_6 = arith.constant 0 : index
    %10 = vector.load %arg1[%c112, %c0_6] : memref<142x32xf32, #tpu.memory_space<vmem>>, vector<24x24xf32>
    %11 = vector.shape_cast %10 : vector<24x24xf32> to vector<1x24x24xf32>
    %12 = vector.shape_cast %11 : vector<1x24x24xf32> to vector<1x24x24xf32>
    %13 = vector.broadcast %12 : vector<1x24x24xf32> to vector<4x24x24xf32>
    %14 = vector.shape_cast %13 : vector<4x24x24xf32> to vector<96x24xf32>
    %c0_7 = arith.constant 0 : index
    %c0_8 = arith.constant 0 : index
    %15 = vector.load %arg0[%c0_7, %c0_8] : memref<16x32xf32, #tpu.memory_space<vmem>>, vector<16x32xf32>
    %c0_9 = arith.constant 0 : index
    %c0_10 = arith.constant 0 : index
    %c0_11 = arith.constant 0 : index
    %16 = vector.load %arg3[%c0_9, %c0_10, %c0_11] : memref<4x32x384xf32, #tpu.memory_space<vmem>>, vector<1x32x384xf32>
    %17 = vector.shape_cast %16 : vector<1x32x384xf32> to vector<32x384xf32>
    %18 = vector.extract_strided_slice %17 {offsets = [0, 0], sizes = [32, 160], strides = [1, 1]} : vector<32x384xf32> to vector<32x160xf32>
    %19 = vector.extract_strided_slice %17 {offsets = [0, 160], sizes = [32, 192], strides = [1, 1]} : vector<32x384xf32> to vector<32x192xf32>
    %20 = vector.extract_strided_slice %17 {offsets = [0, 352], sizes = [32, 32], strides = [1, 1]} : vector<32x384xf32> to vector<32x32xf32>
    %c0_12 = arith.constant 0 : index
    %c0_13 = arith.constant 0 : index
    %21 = vector.load %arg5[%c0_12, %c0_13] : memref<10x32xf32, #tpu.memory_space<vmem>>, vector<1x32xf32>
    %22 = arith.mulf %15, %15 : vector<16x32xf32>
    %cst = arith.constant dense<0.000000e+00> : vector<16xf32>
    %23 = vector.multi_reduction <add>, %22, %cst [1] : vector<16x32xf32> to vector<16xf32>
    %24 = vector.shape_cast %23 : vector<16xf32> to vector<16x1xf32>
    %cst_14 = arith.constant 3.200000e+01 : f32
    %25 = vector.broadcast %cst_14 : f32 to vector<16x1xf32>
    %26 = arith.divf %24, %25 : vector<16x1xf32>
    %cst_15 = arith.constant 9.99999974E-6 : f32
    %27 = vector.broadcast %cst_15 : f32 to vector<16x1xf32>
    %28 = arith.addf %26, %27 : vector<16x1xf32>
    %29 = math.rsqrt %28 : vector<16x1xf32>
    %30 = vector.broadcast %29 : vector<16x1xf32> to vector<16x32xf32>
    %31 = arith.mulf %15, %30 : vector<16x32xf32>
    %32 = vector.broadcast %21 : vector<1x32xf32> to vector<16x32xf32>
    %33 = arith.mulf %31, %32 : vector<16x32xf32>
    %34 = arith.truncf %33 : vector<16x32xf32> to vector<16x32xbf16>
    %35 = arith.truncf %18 : vector<32x160xf32> to vector<32x160xbf16>
    %cst_16 = arith.constant dense<0.000000e+00> : vector<16x160xf32>
    %36 = tpu.matmul %34, %35, %cst_16 {dimension_numbers = #tpu.dot_dimension_numbers<[1], [0], [0], [1], [0, 0, 1, 1], [], []>} : vector<16x32xbf16>, vector<32x160xbf16>, vector<16x160xf32> -> vector<16x160xf32>
    %37 = vector.extract_strided_slice %36 {offsets = [0, 0], sizes = [16, 32], strides = [1, 1]} : vector<16x160xf32> to vector<16x32xf32>
    %38 = arith.mulf %37, %1 : vector<16x32xf32>
    %39 = vector.extract_strided_slice %36 {offsets = [0, 96], sizes = [16, 32], strides = [1, 1]} : vector<16x160xf32> to vector<16x32xf32>
    %40 = arith.mulf %39, %2 : vector<16x32xf32>
    %41 = arith.addf %38, %40 : vector<16x32xf32>
    %42 = vector.extract_strided_slice %36 {offsets = [0, 32], sizes = [16, 32], strides = [1, 1]} : vector<16x160xf32> to vector<16x32xf32>
    %43 = arith.mulf %42, %1 : vector<16x32xf32>
    %44 = vector.extract_strided_slice %36 {offsets = [0, 128], sizes = [16, 32], strides = [1, 1]} : vector<16x160xf32> to vector<16x32xf32>
    %45 = arith.mulf %44, %2 : vector<16x32xf32>
    %46 = arith.addf %43, %45 : vector<16x32xf32>
    %47 = vector.extract_strided_slice %36 {offsets = [0, 64], sizes = [16, 32], strides = [1, 1]} : vector<16x160xf32> to vector<16x32xf32>
    %48 = vector.shape_cast %41 : vector<16x32xf32> to vector<1x16x32xf32>
    %49 = vector.shape_cast %0 : vector<4x32xf32> to vector<4x1x32xf32>
    %50 = vector.broadcast %48 : vector<1x16x32xf32> to vector<4x16x32xf32>
    %51 = vector.broadcast %49 : vector<4x1x32xf32> to vector<4x16x32xf32>
    %52 = arith.mulf %50, %51 : vector<4x16x32xf32>
    %53 = vector.shape_cast %52 : vector<4x16x32xf32> to vector<64x32xf32>
    %54 = arith.truncf %53 : vector<64x32xf32> to vector<64x32xbf16>
    %55 = arith.truncf %46 : vector<16x32xf32> to vector<16x32xbf16>
    %cst_17 = arith.constant dense<0.000000e+00> : vector<64x16xf32>
    %56 = tpu.matmul %54, %55, %cst_17 {dimension_numbers = #tpu.dot_dimension_numbers<[1], [1], [0], [0], [0, 0, 1, 0], [], []>} : vector<64x32xbf16>, vector<16x32xbf16>, vector<64x16xf32> -> vector<64x16xf32>
    %57 = arith.addf %56, %9 : vector<64x16xf32>
    %cst_18 = arith.constant dense<0xFF800000> : vector<64xf32>
    %58 = vector.multi_reduction <maximumf>, %57, %cst_18 [1] : vector<64x16xf32> to vector<64xf32>
    %59 = vector.shape_cast %58 : vector<64xf32> to vector<64x1xf32>
    %60 = vector.broadcast %59 : vector<64x1xf32> to vector<64x16xf32>
    %61 = arith.subf %57, %60 : vector<64x16xf32>
    %62 = math.exp %61 : vector<64x16xf32>
    %cst_19 = arith.constant dense<0.000000e+00> : vector<64xf32>
    %63 = vector.multi_reduction <add>, %62, %cst_19 [1] : vector<64x16xf32> to vector<64xf32>
    %64 = vector.shape_cast %63 : vector<64xf32> to vector<64x1xf32>
    %65 = tpu.reciprocal %64 : vector<64x1xf32> -> vector<64x1xf32>
    %66 = vector.broadcast %65 : vector<64x1xf32> to vector<64x16xf32>
    %67 = arith.mulf %62, %66 : vector<64x16xf32>
    %68 = arith.truncf %67 : vector<64x16xf32> to vector<64x16xbf16>
    %69 = arith.truncf %47 : vector<16x32xf32> to vector<16x32xbf16>
    %cst_20 = arith.constant dense<0.000000e+00> : vector<64x32xf32>
    %70 = tpu.matmul %68, %69, %cst_20 {dimension_numbers = #tpu.dot_dimension_numbers<[1], [0], [0], [1], [0, 0, 1, 1], [], []>} : vector<64x16xbf16>, vector<16x32xbf16>, vector<64x32xf32> -> vector<64x32xf32>
    %71 = vector.shape_cast %70 : vector<64x32xf32> to vector<4x16x32xf32>
    %72 = vector.shape_cast %0 : vector<4x32xf32> to vector<4x1x32xf32>
    %73 = vector.broadcast %72 : vector<4x1x32xf32> to vector<4x16x32xf32>
    %74 = arith.mulf %71, %73 : vector<4x16x32xf32>
    %cst_21 = arith.constant dense<0.000000e+00> : vector<16x32xf32>
    %75 = vector.multi_reduction <add>, %74, %cst_21 [0] : vector<4x16x32xf32> to vector<16x32xf32>
    %76 = arith.truncf %75 : vector<16x32xf32> to vector<16x32xbf16>
    %77 = arith.truncf %20 : vector<32x32xf32> to vector<32x32xbf16>
    %cst_22 = arith.constant dense<0.000000e+00> : vector<16x32xf32>
    %78 = tpu.matmul %76, %77, %cst_22 {dimension_numbers = #tpu.dot_dimension_numbers<[1], [0], [0], [1], [0, 0, 1, 1], [], []>} : vector<16x32xbf16>, vector<32x32xbf16>, vector<16x32xf32> -> vector<16x32xf32>
    %79 = arith.addf %15, %78 : vector<16x32xf32>
    %c1 = arith.constant 1 : index
    %c0_23 = arith.constant 0 : index
    %80 = vector.load %arg5[%c1, %c0_23] : memref<10x32xf32, #tpu.memory_space<vmem>>, vector<1x32xf32>
    %81 = arith.mulf %79, %79 : vector<16x32xf32>
    %cst_24 = arith.constant dense<0.000000e+00> : vector<16xf32>
    %82 = vector.multi_reduction <add>, %81, %cst_24 [1] : vector<16x32xf32> to vector<16xf32>
    %83 = vector.shape_cast %82 : vector<16xf32> to vector<16x1xf32>
    %cst_25 = arith.constant 3.200000e+01 : f32
    %84 = vector.broadcast %cst_25 : f32 to vector<16x1xf32>
    %85 = arith.divf %83, %84 : vector<16x1xf32>
    %cst_26 = arith.constant 9.99999974E-6 : f32
    %86 = vector.broadcast %cst_26 : f32 to vector<16x1xf32>
    %87 = arith.addf %85, %86 : vector<16x1xf32>
    %88 = math.rsqrt %87 : vector<16x1xf32>
    %89 = vector.broadcast %88 : vector<16x1xf32> to vector<16x32xf32>
    %90 = arith.mulf %79, %89 : vector<16x32xf32>
    %91 = vector.broadcast %80 : vector<1x32xf32> to vector<16x32xf32>
    %92 = arith.mulf %90, %91 : vector<16x32xf32>
    %93 = arith.truncf %92 : vector<16x32xf32> to vector<16x32xbf16>
    %94 = arith.truncf %19 : vector<32x192xf32> to vector<32x192xbf16>
    %cst_27 = arith.constant dense<0.000000e+00> : vector<16x192xf32>
    %95 = tpu.matmul %93, %94, %cst_27 {dimension_numbers = #tpu.dot_dimension_numbers<[1], [0], [0], [1], [0, 0, 1, 1], [], []>} : vector<16x32xbf16>, vector<32x192xbf16>, vector<16x192xf32> -> vector<16x192xf32>
    %96 = vector.extract_strided_slice %95 {offsets = [0, 0], sizes = [16, 96], strides = [1, 1]} : vector<16x192xf32> to vector<16x96xf32>
    %97 = vector.extract_strided_slice %95 {offsets = [0, 96], sizes = [16, 96], strides = [1, 1]} : vector<16x192xf32> to vector<16x96xf32>
    %98 = arith.negf %96 : vector<16x96xf32>
    %99 = math.exp %98 : vector<16x96xf32>
    %cst_28 = arith.constant 1.000000e+00 : f32
    %100 = vector.broadcast %cst_28 : f32 to vector<16x96xf32>
    %101 = arith.addf %100, %99 : vector<16x96xf32>
    %102 = arith.divf %100, %101 : vector<16x96xf32>
    %103 = arith.mulf %96, %102 : vector<16x96xf32>
    %104 = arith.mulf %103, %97 : vector<16x96xf32>
    %c0_29 = arith.constant 0 : index
    %c0_30 = arith.constant 0 : index
    %c0_31 = arith.constant 0 : index
    %105 = vector.load %arg4[%c0_29, %c0_30, %c0_31] : memref<4x96x32xf32, #tpu.memory_space<vmem>>, vector<1x96x32xf32>
    %106 = vector.shape_cast %105 : vector<1x96x32xf32> to vector<96x32xf32>
    %107 = arith.truncf %104 : vector<16x96xf32> to vector<16x96xbf16>
    %108 = arith.truncf %106 : vector<96x32xf32> to vector<96x32xbf16>
    %cst_32 = arith.constant dense<0.000000e+00> : vector<16x32xf32>
    %109 = tpu.matmul %107, %108, %cst_32 {dimension_numbers = #tpu.dot_dimension_numbers<[1], [0], [0], [1], [0, 0, 1, 1], [], []>} : vector<16x96xbf16>, vector<96x32xbf16>, vector<16x32xf32> -> vector<16x32xf32>
    %110 = arith.addf %79, %109 : vector<16x32xf32>
    %c1_33 = arith.constant 1 : index
    %c0_34 = arith.constant 0 : index
    %c0_35 = arith.constant 0 : index
    %111 = vector.load %arg3[%c1_33, %c0_34, %c0_35] : memref<4x32x384xf32, #tpu.memory_space<vmem>>, vector<1x32x384xf32>
    %112 = vector.shape_cast %111 : vector<1x32x384xf32> to vector<32x384xf32>
    %113 = vector.extract_strided_slice %112 {offsets = [0, 0], sizes = [32, 160], strides = [1, 1]} : vector<32x384xf32> to vector<32x160xf32>
    %114 = vector.extract_strided_slice %112 {offsets = [0, 160], sizes = [32, 192], strides = [1, 1]} : vector<32x384xf32> to vector<32x192xf32>
    %115 = vector.extract_strided_slice %112 {offsets = [0, 352], sizes = [32, 32], strides = [1, 1]} : vector<32x384xf32> to vector<32x32xf32>
    %c2 = arith.constant 2 : index
    %c0_36 = arith.constant 0 : index
    %116 = vector.load %arg5[%c2, %c0_36] : memref<10x32xf32, #tpu.memory_space<vmem>>, vector<1x32xf32>
    %117 = arith.mulf %110, %110 : vector<16x32xf32>
    %cst_37 = arith.constant dense<0.000000e+00> : vector<16xf32>
    %118 = vector.multi_reduction <add>, %117, %cst_37 [1] : vector<16x32xf32> to vector<16xf32>
    %119 = vector.shape_cast %118 : vector<16xf32> to vector<16x1xf32>
    %cst_38 = arith.constant 3.200000e+01 : f32
    %120 = vector.broadcast %cst_38 : f32 to vector<16x1xf32>
    %121 = arith.divf %119, %120 : vector<16x1xf32>
    %cst_39 = arith.constant 9.99999974E-6 : f32
    %122 = vector.broadcast %cst_39 : f32 to vector<16x1xf32>
    %123 = arith.addf %121, %122 : vector<16x1xf32>
    %124 = math.rsqrt %123 : vector<16x1xf32>
    %125 = vector.broadcast %124 : vector<16x1xf32> to vector<16x32xf32>
    %126 = arith.mulf %110, %125 : vector<16x32xf32>
    %127 = vector.broadcast %116 : vector<1x32xf32> to vector<16x32xf32>
    %128 = arith.mulf %126, %127 : vector<16x32xf32>
    %129 = arith.truncf %128 : vector<16x32xf32> to vector<16x32xbf16>
    %130 = arith.truncf %113 : vector<32x160xf32> to vector<32x160xbf16>
    %cst_40 = arith.constant dense<0.000000e+00> : vector<16x160xf32>
    %131 = tpu.matmul %129, %130, %cst_40 {dimension_numbers = #tpu.dot_dimension_numbers<[1], [0], [0], [1], [0, 0, 1, 1], [], []>} : vector<16x32xbf16>, vector<32x160xbf16>, vector<16x160xf32> -> vector<16x160xf32>
    %132 = vector.extract_strided_slice %131 {offsets = [0, 0], sizes = [16, 32], strides = [1, 1]} : vector<16x160xf32> to vector<16x32xf32>
    %133 = arith.mulf %132, %1 : vector<16x32xf32>
    %134 = vector.extract_strided_slice %131 {offsets = [0, 96], sizes = [16, 32], strides = [1, 1]} : vector<16x160xf32> to vector<16x32xf32>
    %135 = arith.mulf %134, %2 : vector<16x32xf32>
    %136 = arith.addf %133, %135 : vector<16x32xf32>
    %137 = vector.extract_strided_slice %131 {offsets = [0, 32], sizes = [16, 32], strides = [1, 1]} : vector<16x160xf32> to vector<16x32xf32>
    %138 = arith.mulf %137, %1 : vector<16x32xf32>
    %139 = vector.extract_strided_slice %131 {offsets = [0, 128], sizes = [16, 32], strides = [1, 1]} : vector<16x160xf32> to vector<16x32xf32>
    %140 = arith.mulf %139, %2 : vector<16x32xf32>
    %141 = arith.addf %138, %140 : vector<16x32xf32>
    %142 = vector.extract_strided_slice %131 {offsets = [0, 64], sizes = [16, 32], strides = [1, 1]} : vector<16x160xf32> to vector<16x32xf32>
    %143 = vector.shape_cast %136 : vector<16x32xf32> to vector<1x16x32xf32>
    %144 = vector.shape_cast %0 : vector<4x32xf32> to vector<4x1x32xf32>
    %145 = vector.broadcast %143 : vector<1x16x32xf32> to vector<4x16x32xf32>
    %146 = vector.broadcast %144 : vector<4x1x32xf32> to vector<4x16x32xf32>
    %147 = arith.mulf %145, %146 : vector<4x16x32xf32>
    %148 = vector.shape_cast %147 : vector<4x16x32xf32> to vector<64x32xf32>
    %149 = arith.truncf %148 : vector<64x32xf32> to vector<64x32xbf16>
    %150 = arith.truncf %141 : vector<16x32xf32> to vector<16x32xbf16>
    %cst_41 = arith.constant dense<0.000000e+00> : vector<64x16xf32>
    %151 = tpu.matmul %149, %150, %cst_41 {dimension_numbers = #tpu.dot_dimension_numbers<[1], [1], [0], [0], [0, 0, 1, 0], [], []>} : vector<64x32xbf16>, vector<16x32xbf16>, vector<64x16xf32> -> vector<64x16xf32>
    %152 = arith.addf %151, %9 : vector<64x16xf32>
    %cst_42 = arith.constant dense<0xFF800000> : vector<64xf32>
    %153 = vector.multi_reduction <maximumf>, %152, %cst_42 [1] : vector<64x16xf32> to vector<64xf32>
    %154 = vector.shape_cast %153 : vector<64xf32> to vector<64x1xf32>
    %155 = vector.broadcast %154 : vector<64x1xf32> to vector<64x16xf32>
    %156 = arith.subf %152, %155 : vector<64x16xf32>
    %157 = math.exp %156 : vector<64x16xf32>
    %cst_43 = arith.constant dense<0.000000e+00> : vector<64xf32>
    %158 = vector.multi_reduction <add>, %157, %cst_43 [1] : vector<64x16xf32> to vector<64xf32>
    %159 = vector.shape_cast %158 : vector<64xf32> to vector<64x1xf32>
    %160 = tpu.reciprocal %159 : vector<64x1xf32> -> vector<64x1xf32>
    %161 = vector.broadcast %160 : vector<64x1xf32> to vector<64x16xf32>
    %162 = arith.mulf %157, %161 : vector<64x16xf32>
    %163 = arith.truncf %162 : vector<64x16xf32> to vector<64x16xbf16>
    %164 = arith.truncf %142 : vector<16x32xf32> to vector<16x32xbf16>
    %cst_44 = arith.constant dense<0.000000e+00> : vector<64x32xf32>
    %165 = tpu.matmul %163, %164, %cst_44 {dimension_numbers = #tpu.dot_dimension_numbers<[1], [0], [0], [1], [0, 0, 1, 1], [], []>} : vector<64x16xbf16>, vector<16x32xbf16>, vector<64x32xf32> -> vector<64x32xf32>
    %166 = vector.shape_cast %165 : vector<64x32xf32> to vector<4x16x32xf32>
    %167 = vector.shape_cast %0 : vector<4x32xf32> to vector<4x1x32xf32>
    %168 = vector.broadcast %167 : vector<4x1x32xf32> to vector<4x16x32xf32>
    %169 = arith.mulf %166, %168 : vector<4x16x32xf32>
    %cst_45 = arith.constant dense<0.000000e+00> : vector<16x32xf32>
    %170 = vector.multi_reduction <add>, %169, %cst_45 [0] : vector<4x16x32xf32> to vector<16x32xf32>
    %171 = arith.truncf %170 : vector<16x32xf32> to vector<16x32xbf16>
    %172 = arith.truncf %115 : vector<32x32xf32> to vector<32x32xbf16>
    %cst_46 = arith.constant dense<0.000000e+00> : vector<16x32xf32>
    %173 = tpu.matmul %171, %172, %cst_46 {dimension_numbers = #tpu.dot_dimension_numbers<[1], [0], [0], [1], [0, 0, 1, 1], [], []>} : vector<16x32xbf16>, vector<32x32xbf16>, vector<16x32xf32> -> vector<16x32xf32>
    %174 = arith.addf %110, %173 : vector<16x32xf32>
    %c3 = arith.constant 3 : index
    %c0_47 = arith.constant 0 : index
    %175 = vector.load %arg5[%c3, %c0_47] : memref<10x32xf32, #tpu.memory_space<vmem>>, vector<1x32xf32>
    %176 = arith.mulf %174, %174 : vector<16x32xf32>
    %cst_48 = arith.constant dense<0.000000e+00> : vector<16xf32>
    %177 = vector.multi_reduction <add>, %176, %cst_48 [1] : vector<16x32xf32> to vector<16xf32>
    %178 = vector.shape_cast %177 : vector<16xf32> to vector<16x1xf32>
    %cst_49 = arith.constant 3.200000e+01 : f32
    %179 = vector.broadcast %cst_49 : f32 to vector<16x1xf32>
    %180 = arith.divf %178, %179 : vector<16x1xf32>
    %cst_50 = arith.constant 9.99999974E-6 : f32
    %181 = vector.broadcast %cst_50 : f32 to vector<16x1xf32>
    %182 = arith.addf %180, %181 : vector<16x1xf32>
    %183 = math.rsqrt %182 : vector<16x1xf32>
    %184 = vector.broadcast %183 : vector<16x1xf32> to vector<16x32xf32>
    %185 = arith.mulf %174, %184 : vector<16x32xf32>
    %186 = vector.broadcast %175 : vector<1x32xf32> to vector<16x32xf32>
    %187 = arith.mulf %185, %186 : vector<16x32xf32>
    %188 = arith.truncf %187 : vector<16x32xf32> to vector<16x32xbf16>
    %189 = arith.truncf %114 : vector<32x192xf32> to vector<32x192xbf16>
    %cst_51 = arith.constant dense<0.000000e+00> : vector<16x192xf32>
    %190 = tpu.matmul %188, %189, %cst_51 {dimension_numbers = #tpu.dot_dimension_numbers<[1], [0], [0], [1], [0, 0, 1, 1], [], []>} : vector<16x32xbf16>, vector<32x192xbf16>, vector<16x192xf32> -> vector<16x192xf32>
    %191 = vector.extract_strided_slice %190 {offsets = [0, 0], sizes = [16, 96], strides = [1, 1]} : vector<16x192xf32> to vector<16x96xf32>
    %192 = vector.extract_strided_slice %190 {offsets = [0, 96], sizes = [16, 96], strides = [1, 1]} : vector<16x192xf32> to vector<16x96xf32>
    %193 = arith.negf %191 : vector<16x96xf32>
    %194 = math.exp %193 : vector<16x96xf32>
    %cst_52 = arith.constant 1.000000e+00 : f32
    %195 = vector.broadcast %cst_52 : f32 to vector<16x96xf32>
    %196 = arith.addf %195, %194 : vector<16x96xf32>
    %197 = arith.divf %195, %196 : vector<16x96xf32>
    %198 = arith.mulf %191, %197 : vector<16x96xf32>
    %199 = arith.mulf %198, %192 : vector<16x96xf32>
    %c1_53 = arith.constant 1 : index
    %c0_54 = arith.constant 0 : index
    %c0_55 = arith.constant 0 : index
    %200 = vector.load %arg4[%c1_53, %c0_54, %c0_55] : memref<4x96x32xf32, #tpu.memory_space<vmem>>, vector<1x96x32xf32>
    %201 = vector.shape_cast %200 : vector<1x96x32xf32> to vector<96x32xf32>
    %202 = arith.truncf %199 : vector<16x96xf32> to vector<16x96xbf16>
    %203 = arith.truncf %201 : vector<96x32xf32> to vector<96x32xbf16>
    %cst_56 = arith.constant dense<0.000000e+00> : vector<16x32xf32>
    %204 = tpu.matmul %202, %203, %cst_56 {dimension_numbers = #tpu.dot_dimension_numbers<[1], [0], [0], [1], [0, 0, 1, 1], [], []>} : vector<16x96xbf16>, vector<96x32xbf16>, vector<16x32xf32> -> vector<16x32xf32>
    %205 = arith.addf %174, %204 : vector<16x32xf32>
    %c2_57 = arith.constant 2 : index
    %c0_58 = arith.constant 0 : index
    %c0_59 = arith.constant 0 : index
    %206 = vector.load %arg3[%c2_57, %c0_58, %c0_59] : memref<4x32x384xf32, #tpu.memory_space<vmem>>, vector<1x32x384xf32>
    %207 = vector.shape_cast %206 : vector<1x32x384xf32> to vector<32x384xf32>
    %208 = vector.extract_strided_slice %207 {offsets = [0, 0], sizes = [32, 160], strides = [1, 1]} : vector<32x384xf32> to vector<32x160xf32>
    %209 = vector.extract_strided_slice %207 {offsets = [0, 160], sizes = [32, 192], strides = [1, 1]} : vector<32x384xf32> to vector<32x192xf32>
    %210 = vector.extract_strided_slice %207 {offsets = [0, 352], sizes = [32, 32], strides = [1, 1]} : vector<32x384xf32> to vector<32x32xf32>
    %c4 = arith.constant 4 : index
    %c0_60 = arith.constant 0 : index
    %211 = vector.load %arg5[%c4, %c0_60] : memref<10x32xf32, #tpu.memory_space<vmem>>, vector<1x32xf32>
    %212 = arith.mulf %205, %205 : vector<16x32xf32>
    %cst_61 = arith.constant dense<0.000000e+00> : vector<16xf32>
    %213 = vector.multi_reduction <add>, %212, %cst_61 [1] : vector<16x32xf32> to vector<16xf32>
    %214 = vector.shape_cast %213 : vector<16xf32> to vector<16x1xf32>
    %cst_62 = arith.constant 3.200000e+01 : f32
    %215 = vector.broadcast %cst_62 : f32 to vector<16x1xf32>
    %216 = arith.divf %214, %215 : vector<16x1xf32>
    %cst_63 = arith.constant 9.99999974E-6 : f32
    %217 = vector.broadcast %cst_63 : f32 to vector<16x1xf32>
    %218 = arith.addf %216, %217 : vector<16x1xf32>
    %219 = math.rsqrt %218 : vector<16x1xf32>
    %220 = vector.broadcast %219 : vector<16x1xf32> to vector<16x32xf32>
    %221 = arith.mulf %205, %220 : vector<16x32xf32>
    %222 = vector.broadcast %211 : vector<1x32xf32> to vector<16x32xf32>
    %223 = arith.mulf %221, %222 : vector<16x32xf32>
    %224 = arith.truncf %223 : vector<16x32xf32> to vector<16x32xbf16>
    %225 = arith.truncf %208 : vector<32x160xf32> to vector<32x160xbf16>
    %cst_64 = arith.constant dense<0.000000e+00> : vector<16x160xf32>
    %226 = tpu.matmul %224, %225, %cst_64 {dimension_numbers = #tpu.dot_dimension_numbers<[1], [0], [0], [1], [0, 0, 1, 1], [], []>} : vector<16x32xbf16>, vector<32x160xbf16>, vector<16x160xf32> -> vector<16x160xf32>
    %227 = vector.extract_strided_slice %226 {offsets = [0, 0], sizes = [16, 32], strides = [1, 1]} : vector<16x160xf32> to vector<16x32xf32>
    %228 = arith.mulf %227, %1 : vector<16x32xf32>
    %229 = vector.extract_strided_slice %226 {offsets = [0, 96], sizes = [16, 32], strides = [1, 1]} : vector<16x160xf32> to vector<16x32xf32>
    %230 = arith.mulf %229, %2 : vector<16x32xf32>
    %231 = arith.addf %228, %230 : vector<16x32xf32>
    %232 = vector.extract_strided_slice %226 {offsets = [0, 32], sizes = [16, 32], strides = [1, 1]} : vector<16x160xf32> to vector<16x32xf32>
    %233 = arith.mulf %232, %1 : vector<16x32xf32>
    %234 = vector.extract_strided_slice %226 {offsets = [0, 128], sizes = [16, 32], strides = [1, 1]} : vector<16x160xf32> to vector<16x32xf32>
    %235 = arith.mulf %234, %2 : vector<16x32xf32>
    %236 = arith.addf %233, %235 : vector<16x32xf32>
    %237 = vector.extract_strided_slice %226 {offsets = [0, 64], sizes = [16, 32], strides = [1, 1]} : vector<16x160xf32> to vector<16x32xf32>
    %238 = vector.shape_cast %231 : vector<16x32xf32> to vector<1x16x32xf32>
    %239 = vector.shape_cast %0 : vector<4x32xf32> to vector<4x1x32xf32>
    %240 = vector.broadcast %238 : vector<1x16x32xf32> to vector<4x16x32xf32>
    %241 = vector.broadcast %239 : vector<4x1x32xf32> to vector<4x16x32xf32>
    %242 = arith.mulf %240, %241 : vector<4x16x32xf32>
    %243 = vector.shape_cast %242 : vector<4x16x32xf32> to vector<64x32xf32>
    %244 = arith.truncf %243 : vector<64x32xf32> to vector<64x32xbf16>
    %245 = arith.truncf %236 : vector<16x32xf32> to vector<16x32xbf16>
    %cst_65 = arith.constant dense<0.000000e+00> : vector<64x16xf32>
    %246 = tpu.matmul %244, %245, %cst_65 {dimension_numbers = #tpu.dot_dimension_numbers<[1], [1], [0], [0], [0, 0, 1, 0], [], []>} : vector<64x32xbf16>, vector<16x32xbf16>, vector<64x16xf32> -> vector<64x16xf32>
    %247 = arith.addf %246, %9 : vector<64x16xf32>
    %cst_66 = arith.constant dense<0xFF800000> : vector<64xf32>
    %248 = vector.multi_reduction <maximumf>, %247, %cst_66 [1] : vector<64x16xf32> to vector<64xf32>
    %249 = vector.shape_cast %248 : vector<64xf32> to vector<64x1xf32>
    %250 = vector.broadcast %249 : vector<64x1xf32> to vector<64x16xf32>
    %251 = arith.subf %247, %250 : vector<64x16xf32>
    %252 = math.exp %251 : vector<64x16xf32>
    %cst_67 = arith.constant dense<0.000000e+00> : vector<64xf32>
    %253 = vector.multi_reduction <add>, %252, %cst_67 [1] : vector<64x16xf32> to vector<64xf32>
    %254 = vector.shape_cast %253 : vector<64xf32> to vector<64x1xf32>
    %255 = tpu.reciprocal %254 : vector<64x1xf32> -> vector<64x1xf32>
    %256 = vector.broadcast %255 : vector<64x1xf32> to vector<64x16xf32>
    %257 = arith.mulf %252, %256 : vector<64x16xf32>
    %258 = arith.truncf %257 : vector<64x16xf32> to vector<64x16xbf16>
    %259 = arith.truncf %237 : vector<16x32xf32> to vector<16x32xbf16>
    %cst_68 = arith.constant dense<0.000000e+00> : vector<64x32xf32>
    %260 = tpu.matmul %258, %259, %cst_68 {dimension_numbers = #tpu.dot_dimension_numbers<[1], [0], [0], [1], [0, 0, 1, 1], [], []>} : vector<64x16xbf16>, vector<16x32xbf16>, vector<64x32xf32> -> vector<64x32xf32>
    %c0_69 = arith.constant 0 : index
    %c0_70 = arith.constant 0 : index
    %c0_71 = arith.constant 0 : index
    %261 = vector.load %arg6[%c0_69, %c0_70, %c0_71] : memref<2x8x32xf32, #tpu.memory_space<vmem>>, vector<1x8x32xf32>
    %262 = vector.shape_cast %261 : vector<1x8x32xf32> to vector<8x32xf32>
    %263 = vector.extract_strided_slice %262 {offsets = [0, 0], sizes = [4, 32], strides = [1, 1]} : vector<8x32xf32> to vector<4x32xf32>
    %264 = vector.extract_strided_slice %262 {offsets = [4, 0], sizes = [4, 32], strides = [1, 1]} : vector<8x32xf32> to vector<4x32xf32>
    %265 = arith.truncf %243 : vector<64x32xf32> to vector<64x32xbf16>
    %266 = arith.truncf %263 : vector<4x32xf32> to vector<4x32xbf16>
    %cst_72 = arith.constant dense<0.000000e+00> : vector<64x4xf32>
    %267 = tpu.matmul %265, %266, %cst_72 {dimension_numbers = #tpu.dot_dimension_numbers<[1], [1], [0], [0], [0, 0, 1, 0], [], []>} : vector<64x32xbf16>, vector<4x32xbf16>, vector<64x4xf32> -> vector<64x4xf32>
    %cst_73 = arith.constant dense<0xFF800000> : vector<64xf32>
    %268 = vector.multi_reduction <maximumf>, %267, %cst_73 [1] : vector<64x4xf32> to vector<64xf32>
    %269 = vector.shape_cast %268 : vector<64xf32> to vector<64x1xf32>
    %270 = vector.broadcast %269 : vector<64x1xf32> to vector<64x4xf32>
    %271 = arith.subf %267, %270 : vector<64x4xf32>
    %272 = math.exp %271 : vector<64x4xf32>
    %cst_74 = arith.constant dense<0.000000e+00> : vector<64xf32>
    %273 = vector.multi_reduction <add>, %272, %cst_74 [1] : vector<64x4xf32> to vector<64xf32>
    %274 = vector.shape_cast %273 : vector<64xf32> to vector<64x1xf32>
    %275 = tpu.reciprocal %274 : vector<64x1xf32> -> vector<64x1xf32>
    %276 = vector.broadcast %275 : vector<64x1xf32> to vector<64x4xf32>
    %277 = arith.mulf %272, %276 : vector<64x4xf32>
    %278 = arith.truncf %277 : vector<64x4xf32> to vector<64x4xbf16>
    %279 = arith.truncf %264 : vector<4x32xf32> to vector<4x32xbf16>
    %cst_75 = arith.constant dense<0.000000e+00> : vector<64x32xf32>
    %280 = tpu.matmul %278, %279, %cst_75 {dimension_numbers = #tpu.dot_dimension_numbers<[1], [0], [0], [1], [0, 0, 1, 1], [], []>} : vector<64x4xbf16>, vector<4x32xbf16>, vector<64x32xf32> -> vector<64x32xf32>
    %281 = arith.addf %260, %280 : vector<64x32xf32>
    %282 = vector.shape_cast %281 : vector<64x32xf32> to vector<4x16x32xf32>
    %283 = vector.shape_cast %0 : vector<4x32xf32> to vector<4x1x32xf32>
    %284 = vector.broadcast %283 : vector<4x1x32xf32> to vector<4x16x32xf32>
    %285 = arith.mulf %282, %284 : vector<4x16x32xf32>
    %cst_76 = arith.constant dense<0.000000e+00> : vector<16x32xf32>
    %286 = vector.multi_reduction <add>, %285, %cst_76 [0] : vector<4x16x32xf32> to vector<16x32xf32>
    %287 = arith.truncf %286 : vector<16x32xf32> to vector<16x32xbf16>
    %288 = arith.truncf %210 : vector<32x32xf32> to vector<32x32xbf16>
    %cst_77 = arith.constant dense<0.000000e+00> : vector<16x32xf32>
    %289 = tpu.matmul %287, %288, %cst_77 {dimension_numbers = #tpu.dot_dimension_numbers<[1], [0], [0], [1], [0, 0, 1, 1], [], []>} : vector<16x32xbf16>, vector<32x32xbf16>, vector<16x32xf32> -> vector<16x32xf32>
    %290 = arith.addf %205, %289 : vector<16x32xf32>
    %c5 = arith.constant 5 : index
    %c0_78 = arith.constant 0 : index
    %291 = vector.load %arg5[%c5, %c0_78] : memref<10x32xf32, #tpu.memory_space<vmem>>, vector<1x32xf32>
    %292 = arith.mulf %290, %290 : vector<16x32xf32>
    %cst_79 = arith.constant dense<0.000000e+00> : vector<16xf32>
    %293 = vector.multi_reduction <add>, %292, %cst_79 [1] : vector<16x32xf32> to vector<16xf32>
    %294 = vector.shape_cast %293 : vector<16xf32> to vector<16x1xf32>
    %cst_80 = arith.constant 3.200000e+01 : f32
    %295 = vector.broadcast %cst_80 : f32 to vector<16x1xf32>
    %296 = arith.divf %294, %295 : vector<16x1xf32>
    %cst_81 = arith.constant 9.99999974E-6 : f32
    %297 = vector.broadcast %cst_81 : f32 to vector<16x1xf32>
    %298 = arith.addf %296, %297 : vector<16x1xf32>
    %299 = math.rsqrt %298 : vector<16x1xf32>
    %300 = vector.broadcast %299 : vector<16x1xf32> to vector<16x32xf32>
    %301 = arith.mulf %290, %300 : vector<16x32xf32>
    %302 = vector.broadcast %291 : vector<1x32xf32> to vector<16x32xf32>
    %303 = arith.mulf %301, %302 : vector<16x32xf32>
    %304 = arith.truncf %303 : vector<16x32xf32> to vector<16x32xbf16>
    %305 = arith.truncf %209 : vector<32x192xf32> to vector<32x192xbf16>
    %cst_82 = arith.constant dense<0.000000e+00> : vector<16x192xf32>
    %306 = tpu.matmul %304, %305, %cst_82 {dimension_numbers = #tpu.dot_dimension_numbers<[1], [0], [0], [1], [0, 0, 1, 1], [], []>} : vector<16x32xbf16>, vector<32x192xbf16>, vector<16x192xf32> -> vector<16x192xf32>
    %307 = vector.extract_strided_slice %306 {offsets = [0, 0], sizes = [16, 96], strides = [1, 1]} : vector<16x192xf32> to vector<16x96xf32>
    %308 = vector.extract_strided_slice %306 {offsets = [0, 96], sizes = [16, 96], strides = [1, 1]} : vector<16x192xf32> to vector<16x96xf32>
    %309 = arith.negf %307 : vector<16x96xf32>
    %310 = math.exp %309 : vector<16x96xf32>
    %cst_83 = arith.constant 1.000000e+00 : f32
    %311 = vector.broadcast %cst_83 : f32 to vector<16x96xf32>
    %312 = arith.addf %311, %310 : vector<16x96xf32>
    %313 = arith.divf %311, %312 : vector<16x96xf32>
    %314 = arith.mulf %307, %313 : vector<16x96xf32>
    %315 = arith.mulf %314, %308 : vector<16x96xf32>
    %c2_84 = arith.constant 2 : index
    %c0_85 = arith.constant 0 : index
    %c0_86 = arith.constant 0 : index
    %316 = vector.load %arg4[%c2_84, %c0_85, %c0_86] : memref<4x96x32xf32, #tpu.memory_space<vmem>>, vector<1x96x32xf32>
    %317 = vector.shape_cast %316 : vector<1x96x32xf32> to vector<96x32xf32>
    %318 = arith.truncf %315 : vector<16x96xf32> to vector<16x96xbf16>
    %319 = arith.truncf %317 : vector<96x32xf32> to vector<96x32xbf16>
    %cst_87 = arith.constant dense<0.000000e+00> : vector<16x32xf32>
    %320 = tpu.matmul %318, %319, %cst_87 {dimension_numbers = #tpu.dot_dimension_numbers<[1], [0], [0], [1], [0, 0, 1, 1], [], []>} : vector<16x96xbf16>, vector<96x32xbf16>, vector<16x32xf32> -> vector<16x32xf32>
    %321 = arith.addf %290, %320 : vector<16x32xf32>
    %c0_88 = arith.constant 0 : index
    %c0_89 = arith.constant 0 : index
    %322 = vector.load %arg7[%c0_88, %c0_89] : memref<32x96xf32, #tpu.memory_space<vmem>>, vector<32x32xf32>
    %c0_90 = arith.constant 0 : index
    %c32_91 = arith.constant 32 : index
    %323 = vector.load %arg7[%c0_90, %c32_91] : memref<32x96xf32, #tpu.memory_space<vmem>>, vector<32x32xf32>
    %c0_92 = arith.constant 0 : index
    %c64 = arith.constant 64 : index
    %324 = vector.load %arg7[%c0_92, %c64] : memref<32x96xf32, #tpu.memory_space<vmem>>, vector<32x16xf32>
    %c0_93 = arith.constant 0 : index
    %c80 = arith.constant 80 : index
    %325 = vector.load %arg7[%c0_93, %c80] : memref<32x96xf32, #tpu.memory_space<vmem>>, vector<32x16xf32>
    %c0_94 = arith.constant 0 : index
    %c0_95 = arith.constant 0 : index
    %326 = vector.load %arg8[%c0_94, %c0_95] : memref<16x32xf32, #tpu.memory_space<vmem>>, vector<16x16xf32>
    %c0_96 = arith.constant 0 : index
    %c16_97 = arith.constant 16 : index
    %327 = vector.load %arg8[%c0_96, %c16_97] : memref<16x32xf32, #tpu.memory_space<vmem>>, vector<16x2xf32>
    %c9 = arith.constant 9 : index
    %c0_98 = arith.constant 0 : index
    %328 = vector.load %arg5[%c9, %c0_98] : memref<10x32xf32, #tpu.memory_space<vmem>>, vector<1x2xf32>
    %c80_99 = arith.constant 80 : index
    %c0_100 = arith.constant 0 : index
    %329 = vector.load %arg1[%c80_99, %c0_100] : memref<142x32xf32, #tpu.memory_space<vmem>>, vector<16x32xf32>
    %330 = arith.mulf %321, %329 : vector<16x32xf32>
    %331 = arith.truncf %330 : vector<16x32xf32> to vector<16x32xbf16>
    %332 = arith.truncf %322 : vector<32x32xf32> to vector<32x32xbf16>
    %cst_101 = arith.constant dense<0.000000e+00> : vector<16x32xf32>
    %333 = tpu.matmul %331, %332, %cst_101 {dimension_numbers = #tpu.dot_dimension_numbers<[1], [0], [0], [1], [0, 0, 1, 1], [], []>} : vector<16x32xbf16>, vector<32x32xbf16>, vector<16x32xf32> -> vector<16x32xf32>
    %cst_102 = arith.constant 0.000000e+00 : f32
    %334 = vector.broadcast %cst_102 : f32 to vector<16x32xf32>
    %335 = arith.cmpf oge, %333, %334 : vector<16x32xf32>
    %cst_103 = arith.constant 0.00999999977 : f32
    %336 = vector.broadcast %cst_103 : f32 to vector<16x32xf32>
    %337 = arith.mulf %336, %333 : vector<16x32xf32>
    %338 = arith.select %335, %333, %337 : vector<16x32xi1>, vector<16x32xf32>
    %339 = arith.truncf %338 : vector<16x32xf32> to vector<16x32xbf16>
    %340 = arith.truncf %324 : vector<32x16xf32> to vector<32x16xbf16>
    %cst_104 = arith.constant dense<0.000000e+00> : vector<16x16xf32>
    %341 = tpu.matmul %339, %340, %cst_104 {dimension_numbers = #tpu.dot_dimension_numbers<[1], [0], [0], [1], [0, 0, 1, 1], [], []>} : vector<16x32xbf16>, vector<32x16xbf16>, vector<16x16xf32> -> vector<16x16xf32>
    %cst_105 = arith.constant 0.000000e+00 : f32
    %342 = vector.broadcast %cst_105 : f32 to vector<16x16xf32>
    %343 = arith.cmpf oge, %341, %342 : vector<16x16xf32>
    %cst_106 = arith.constant 0.00999999977 : f32
    %344 = vector.broadcast %cst_106 : f32 to vector<16x16xf32>
    %345 = arith.mulf %344, %341 : vector<16x16xf32>
    %346 = arith.select %343, %341, %345 : vector<16x16xi1>, vector<16x16xf32>
    %347 = arith.truncf %346 : vector<16x16xf32> to vector<16x16xbf16>
    %348 = arith.truncf %326 : vector<16x16xf32> to vector<16x16xbf16>
    %cst_107 = arith.constant dense<0.000000e+00> : vector<16x16xf32>
    %349 = tpu.matmul %347, %348, %cst_107 {dimension_numbers = #tpu.dot_dimension_numbers<[1], [0], [0], [1], [0, 0, 1, 1], [], []>} : vector<16x16xbf16>, vector<16x16xbf16>, vector<16x16xf32> -> vector<16x16xf32>
    %c0_108 = arith.constant 0 : index
    %c0_109 = arith.constant 0 : index
    %350 = vector.load %arg10[%c0_108, %c0_109] : memref<16x128xf32, #tpu.memory_space<vmem>>, vector<16x128xf32>
    %351 = arith.truncf %349 : vector<16x16xf32> to vector<16x16xbf16>
    %352 = arith.truncf %350 : vector<16x128xf32> to vector<16x128xbf16>
    %cst_110 = arith.constant dense<0.000000e+00> : vector<16x128xf32>
    %353 = tpu.matmul %351, %352, %cst_110 {dimension_numbers = #tpu.dot_dimension_numbers<[1], [0], [0], [1], [0, 0, 1, 1], [], []>} : vector<16x16xbf16>, vector<16x128xbf16>, vector<16x128xf32> -> vector<16x128xf32>
    %c140 = arith.constant 140 : index
    %c0_111 = arith.constant 0 : index
    %354 = vector.load %arg1[%c140, %c0_111] : memref<142x32xf32, #tpu.memory_space<vmem>>, vector<2x16xf32>
    %cst_112 = arith.constant dense<0.000000e+00> : vector<2x32xf32>
    %355 = tpu.matmul %354, %321, %cst_112 {dimension_numbers = #tpu.dot_dimension_numbers<[1], [0], [0], [1], [0, 0, 1, 1], [], []>, precision = #tpu.contract_precision<fp32>} : vector<2x16xf32>, vector<16x32xf32>, vector<2x32xf32> -> vector<2x32xf32>
    %356 = arith.truncf %355 : vector<2x32xf32> to vector<2x32xbf16>
    %357 = arith.truncf %323 : vector<32x32xf32> to vector<32x32xbf16>
    %cst_113 = arith.constant dense<0.000000e+00> : vector<2x32xf32>
    %358 = tpu.matmul %356, %357, %cst_113 {dimension_numbers = #tpu.dot_dimension_numbers<[1], [0], [0], [1], [0, 0, 1, 1], [], []>} : vector<2x32xbf16>, vector<32x32xbf16>, vector<2x32xf32> -> vector<2x32xf32>
    %cst_114 = arith.constant 0.000000e+00 : f32
    %359 = vector.broadcast %cst_114 : f32 to vector<2x32xf32>
    %360 = arith.cmpf oge, %358, %359 : vector<2x32xf32>
    %cst_115 = arith.constant 0.00999999977 : f32
    %361 = vector.broadcast %cst_115 : f32 to vector<2x32xf32>
    %362 = arith.mulf %361, %358 : vector<2x32xf32>
    %363 = arith.select %360, %358, %362 : vector<2x32xi1>, vector<2x32xf32>
    %364 = arith.truncf %363 : vector<2x32xf32> to vector<2x32xbf16>
    %365 = arith.truncf %325 : vector<32x16xf32> to vector<32x16xbf16>
    %cst_116 = arith.constant dense<0.000000e+00> : vector<2x16xf32>
    %366 = tpu.matmul %364, %365, %cst_116 {dimension_numbers = #tpu.dot_dimension_numbers<[1], [0], [0], [1], [0, 0, 1, 1], [], []>} : vector<2x32xbf16>, vector<32x16xbf16>, vector<2x16xf32> -> vector<2x16xf32>
    %cst_117 = arith.constant 0.000000e+00 : f32
    %367 = vector.broadcast %cst_117 : f32 to vector<2x16xf32>
    %368 = arith.cmpf oge, %366, %367 : vector<2x16xf32>
    %cst_118 = arith.constant 0.00999999977 : f32
    %369 = vector.broadcast %cst_118 : f32 to vector<2x16xf32>
    %370 = arith.mulf %369, %366 : vector<2x16xf32>
    %371 = arith.select %368, %366, %370 : vector<2x16xi1>, vector<2x16xf32>
    %372 = arith.truncf %371 : vector<2x16xf32> to vector<2x16xbf16>
    %373 = arith.truncf %327 : vector<16x2xf32> to vector<16x2xbf16>
    %cst_119 = arith.constant dense<0.000000e+00> : vector<2x2xf32>
    %374 = tpu.matmul %372, %373, %cst_119 {dimension_numbers = #tpu.dot_dimension_numbers<[1], [0], [0], [1], [0, 0, 1, 1], [], []>} : vector<2x16xbf16>, vector<16x2xbf16>, vector<2x2xf32> -> vector<2x2xf32>
    %375 = arith.mulf %374, %374 : vector<2x2xf32>
    %cst_120 = arith.constant dense<0.000000e+00> : vector<2xf32>
    %376 = vector.multi_reduction <add>, %375, %cst_120 [1] : vector<2x2xf32> to vector<2xf32>
    %377 = vector.shape_cast %376 : vector<2xf32> to vector<2x1xf32>
    %cst_121 = arith.constant 2.000000e+00 : f32
    %378 = vector.broadcast %cst_121 : f32 to vector<2x1xf32>
    %379 = arith.divf %377, %378 : vector<2x1xf32>
    %cst_122 = arith.constant 9.99999974E-6 : f32
    %380 = vector.broadcast %cst_122 : f32 to vector<2x1xf32>
    %381 = arith.addf %379, %380 : vector<2x1xf32>
    %382 = math.rsqrt %381 : vector<2x1xf32>
    %383 = vector.broadcast %382 : vector<2x1xf32> to vector<2x2xf32>
    %384 = arith.mulf %374, %383 : vector<2x2xf32>
    %385 = vector.broadcast %328 : vector<1x2xf32> to vector<2x2xf32>
    %386 = arith.mulf %384, %385 : vector<2x2xf32>
    %c0_123 = arith.constant 0 : index
    %c0_124 = arith.constant 0 : index
    %387 = vector.load %arg12[%c0_123, %c0_124] : memref<2x2xf32, #tpu.memory_space<vmem>>, vector<2x2xf32>
    tpu.vector_store %arg12[%c0_123, %c0_124], %386 {strides = array<i32>} : memref<2x2xf32, #tpu.memory_space<vmem>>, vector<2x2xf32>,
    %388 = vector.extract_strided_slice %386 {offsets = [0, 1], sizes = [2, 1], strides = [1, 1]} : vector<2x2xf32> to vector<2x1xf32>
    %389 = vector.extract_strided_slice %386 {offsets = [0, 0], sizes = [2, 1], strides = [1, 1]} : vector<2x2xf32> to vector<2x1xf32>
    %390 = arith.cmpf ogt, %388, %389 : vector<2x1xf32>
    %391 = arith.extui %390 : vector<2x1xi1> to vector<2x1xi32>
    %392 = arith.sitofp %391 : vector<2x1xi32> to vector<2x1xf32>
    %393 = vector.extract_strided_slice %353 {offsets = [0, 0], sizes = [16, 64], strides = [1, 1]} : vector<16x128xf32> to vector<16x64xf32>
    %394 = tpu.iota {dimensions = array<i32: 1>} : vector<16x64xi32>
    %395 = arith.sitofp %394 : vector<16x64xi32> to vector<16x64xf32>
    %cst_125 = arith.constant dense<0xFF800000> : vector<16xf32>
    %396 = vector.multi_reduction <maximumf>, %393, %cst_125 [1] : vector<16x64xf32> to vector<16xf32>
    %397 = vector.shape_cast %396 : vector<16xf32> to vector<16x1xf32>
    %398 = vector.broadcast %397 : vector<16x1xf32> to vector<16x64xf32>
    %399 = arith.cmpf oeq, %393, %398 : vector<16x64xf32>
    %cst_126 = arith.constant 6.400000e+01 : f32
    %400 = vector.broadcast %cst_126 : f32 to vector<16x64xf32>
    %401 = arith.select %399, %395, %400 : vector<16x64xi1>, vector<16x64xf32>
    %cst_127 = arith.constant dense<0x7F800000> : vector<16xf32>
    %402 = vector.multi_reduction <minimumf>, %401, %cst_127 [1] : vector<16x64xf32> to vector<16xf32>
    %403 = vector.shape_cast %402 : vector<16xf32> to vector<16x1xf32>
    %404 = vector.broadcast %403 : vector<16x1xf32> to vector<16x64xf32>
    %405 = arith.cmpf oeq, %395, %404 : vector<16x64xf32>
    %406 = arith.extui %405 : vector<16x64xi1> to vector<16x64xi32>
    %407 = arith.sitofp %406 : vector<16x64xi32> to vector<16x64xf32>
    %c0_128 = arith.constant 0 : index
    %c0_129 = arith.constant 0 : index
    %408 = vector.load %arg2[%c0_128, %c0_129] : memref<64x32xf32, #tpu.memory_space<vmem>>, vector<64x32xf32>
    %cst_130 = arith.constant dense<0.000000e+00> : vector<16x32xf32>
    %409 = tpu.matmul %407, %408, %cst_130 {dimension_numbers = #tpu.dot_dimension_numbers<[1], [0], [0], [1], [0, 0, 1, 1], [], []>, precision = #tpu.contract_precision<fp32>} : vector<16x64xf32>, vector<64x32xf32>, vector<16x32xf32> -> vector<16x32xf32>
    %410 = vector.extract_strided_slice %353 {offsets = [0, 0], sizes = [4, 128], strides = [1, 1]} : vector<16x128xf32> to vector<4x128xf32>
    %c0_131 = arith.constant 0 : index
    %c0_132 = arith.constant 0 : index
    %411 = vector.load %arg13[%c0_131, %c0_132] : memref<8x128xf32, #tpu.memory_space<vmem>>, vector<4x128xf32>
    tpu.vector_store %arg13[%c0_131, %c0_132], %410 {strides = array<i32>} : memref<8x128xf32, #tpu.memory_space<vmem>>, vector<4x128xf32>,
    %412 = vector.extract_strided_slice %409 {offsets = [0, 0], sizes = [4, 32], strides = [1, 1]} : vector<16x32xf32> to vector<4x32xf32>
    %413 = vector.extract_strided_slice %392 {offsets = [0, 0], sizes = [1, 1], strides = [1, 1]} : vector<2x1xf32> to vector<1x1xf32>
    %414 = vector.broadcast %413 : vector<1x1xf32> to vector<4x32xf32>
    %415 = arith.mulf %412, %414 : vector<4x32xf32>
    %c0_133 = arith.constant 0 : index
    %c0_134 = arith.constant 0 : index
    %416 = vector.load %arg14[%c0_133, %c0_134] : memref<24x32xf32, #tpu.memory_space<vmem>>, vector<4x32xf32>
    tpu.vector_store %arg14[%c0_133, %c0_134], %415 {strides = array<i32>} : memref<24x32xf32, #tpu.memory_space<vmem>>, vector<4x32xf32>,
    %417 = vector.extract_strided_slice %321 {offsets = [0, 0], sizes = [8, 32], strides = [1, 1]} : vector<16x32xf32> to vector<8x32xf32>
    %c4_135 = arith.constant 4 : index
    %c0_136 = arith.constant 0 : index
    %418 = vector.load %arg14[%c4_135, %c0_136] : memref<24x32xf32, #tpu.memory_space<vmem>>, vector<8x32xf32>
    tpu.vector_store %arg14[%c4_135, %c0_136], %417 {strides = array<i32>} : memref<24x32xf32, #tpu.memory_space<vmem>>, vector<8x32xf32>,
    %419 = vector.extract_strided_slice %353 {offsets = [8, 0], sizes = [4, 128], strides = [1, 1]} : vector<16x128xf32> to vector<4x128xf32>
    %c4_137 = arith.constant 4 : index
    %c0_138 = arith.constant 0 : index
    %420 = vector.load %arg13[%c4_137, %c0_138] : memref<8x128xf32, #tpu.memory_space<vmem>>, vector<4x128xf32>
    tpu.vector_store %arg13[%c4_137, %c0_138], %419 {strides = array<i32>} : memref<8x128xf32, #tpu.memory_space<vmem>>, vector<4x128xf32>,
    %421 = vector.extract_strided_slice %409 {offsets = [8, 0], sizes = [4, 32], strides = [1, 1]} : vector<16x32xf32> to vector<4x32xf32>
    %422 = vector.extract_strided_slice %392 {offsets = [1, 0], sizes = [1, 1], strides = [1, 1]} : vector<2x1xf32> to vector<1x1xf32>
    %423 = vector.broadcast %422 : vector<1x1xf32> to vector<4x32xf32>
    %424 = arith.mulf %421, %423 : vector<4x32xf32>
    %c12 = arith.constant 12 : index
    %c0_139 = arith.constant 0 : index
    %425 = vector.load %arg14[%c12, %c0_139] : memref<24x32xf32, #tpu.memory_space<vmem>>, vector<4x32xf32>
    tpu.vector_store %arg14[%c12, %c0_139], %424 {strides = array<i32>} : memref<24x32xf32, #tpu.memory_space<vmem>>, vector<4x32xf32>,
    %426 = vector.extract_strided_slice %321 {offsets = [8, 0], sizes = [8, 32], strides = [1, 1]} : vector<16x32xf32> to vector<8x32xf32>
    %c16_140 = arith.constant 16 : index
    %c0_141 = arith.constant 0 : index
    %427 = vector.load %arg14[%c16_140, %c0_141] : memref<24x32xf32, #tpu.memory_space<vmem>>, vector<8x32xf32>
    tpu.vector_store %arg14[%c16_140, %c0_141], %426 {strides = array<i32>} : memref<24x32xf32, #tpu.memory_space<vmem>>, vector<8x32xf32>,
    %c0_142 = arith.constant 0 : index
    %c0_143 = arith.constant 0 : index
    %428 = vector.load %arg14[%c0_142, %c0_143] : memref<24x32xf32, #tpu.memory_space<vmem>>, vector<24x32xf32>
    %c3_144 = arith.constant 3 : index
    %c0_145 = arith.constant 0 : index
    %c0_146 = arith.constant 0 : index
    %429 = vector.load %arg3[%c3_144, %c0_145, %c0_146] : memref<4x32x384xf32, #tpu.memory_space<vmem>>, vector<1x32x384xf32>
    %430 = vector.shape_cast %429 : vector<1x32x384xf32> to vector<32x384xf32>
    %431 = vector.extract_strided_slice %430 {offsets = [0, 0], sizes = [32, 160], strides = [1, 1]} : vector<32x384xf32> to vector<32x160xf32>
    %432 = vector.extract_strided_slice %430 {offsets = [0, 160], sizes = [32, 192], strides = [1, 1]} : vector<32x384xf32> to vector<32x192xf32>
    %433 = vector.extract_strided_slice %430 {offsets = [0, 352], sizes = [32, 32], strides = [1, 1]} : vector<32x384xf32> to vector<32x32xf32>
    %c6 = arith.constant 6 : index
    %c0_147 = arith.constant 0 : index
    %434 = vector.load %arg5[%c6, %c0_147] : memref<10x32xf32, #tpu.memory_space<vmem>>, vector<1x32xf32>
    %435 = arith.mulf %428, %428 : vector<24x32xf32>
    %cst_148 = arith.constant dense<0.000000e+00> : vector<24xf32>
    %436 = vector.multi_reduction <add>, %435, %cst_148 [1] : vector<24x32xf32> to vector<24xf32>
    %437 = vector.shape_cast %436 : vector<24xf32> to vector<24x1xf32>
    %cst_149 = arith.constant 3.200000e+01 : f32
    %438 = vector.broadcast %cst_149 : f32 to vector<24x1xf32>
    %439 = arith.divf %437, %438 : vector<24x1xf32>
    %cst_150 = arith.constant 9.99999974E-6 : f32
    %440 = vector.broadcast %cst_150 : f32 to vector<24x1xf32>
    %441 = arith.addf %439, %440 : vector<24x1xf32>
    %442 = math.rsqrt %441 : vector<24x1xf32>
    %443 = vector.broadcast %442 : vector<24x1xf32> to vector<24x32xf32>
    %444 = arith.mulf %428, %443 : vector<24x32xf32>
    %445 = vector.broadcast %434 : vector<1x32xf32> to vector<24x32xf32>
    %446 = arith.mulf %444, %445 : vector<24x32xf32>
    %447 = arith.truncf %446 : vector<24x32xf32> to vector<24x32xbf16>
    %448 = arith.truncf %431 : vector<32x160xf32> to vector<32x160xbf16>
    %cst_151 = arith.constant dense<0.000000e+00> : vector<24x160xf32>
    %449 = tpu.matmul %447, %448, %cst_151 {dimension_numbers = #tpu.dot_dimension_numbers<[1], [0], [0], [1], [0, 0, 1, 1], [], []>} : vector<24x32xbf16>, vector<32x160xbf16>, vector<24x160xf32> -> vector<24x160xf32>
    %450 = vector.extract_strided_slice %449 {offsets = [0, 0], sizes = [24, 32], strides = [1, 1]} : vector<24x160xf32> to vector<24x32xf32>
    %451 = arith.mulf %450, %3 : vector<24x32xf32>
    %452 = vector.extract_strided_slice %449 {offsets = [0, 96], sizes = [24, 32], strides = [1, 1]} : vector<24x160xf32> to vector<24x32xf32>
    %453 = arith.mulf %452, %4 : vector<24x32xf32>
    %454 = arith.addf %451, %453 : vector<24x32xf32>
    %455 = vector.extract_strided_slice %449 {offsets = [0, 32], sizes = [24, 32], strides = [1, 1]} : vector<24x160xf32> to vector<24x32xf32>
    %456 = arith.mulf %455, %3 : vector<24x32xf32>
    %457 = vector.extract_strided_slice %449 {offsets = [0, 128], sizes = [24, 32], strides = [1, 1]} : vector<24x160xf32> to vector<24x32xf32>
    %458 = arith.mulf %457, %4 : vector<24x32xf32>
    %459 = arith.addf %456, %458 : vector<24x32xf32>
    %460 = vector.extract_strided_slice %449 {offsets = [0, 64], sizes = [24, 32], strides = [1, 1]} : vector<24x160xf32> to vector<24x32xf32>
    %461 = vector.shape_cast %454 : vector<24x32xf32> to vector<1x24x32xf32>
    %462 = vector.shape_cast %0 : vector<4x32xf32> to vector<4x1x32xf32>
    %463 = vector.broadcast %461 : vector<1x24x32xf32> to vector<4x24x32xf32>
    %464 = vector.broadcast %462 : vector<4x1x32xf32> to vector<4x24x32xf32>
    %465 = arith.mulf %463, %464 : vector<4x24x32xf32>
    %466 = vector.shape_cast %465 : vector<4x24x32xf32> to vector<96x32xf32>
    %467 = arith.truncf %466 : vector<96x32xf32> to vector<96x32xbf16>
    %468 = arith.truncf %459 : vector<24x32xf32> to vector<24x32xbf16>
    %cst_152 = arith.constant dense<0.000000e+00> : vector<96x24xf32>
    %469 = tpu.matmul %467, %468, %cst_152 {dimension_numbers = #tpu.dot_dimension_numbers<[1], [1], [0], [0], [0, 0, 1, 0], [], []>} : vector<96x32xbf16>, vector<24x32xbf16>, vector<96x24xf32> -> vector<96x24xf32>
    %470 = arith.addf %469, %14 : vector<96x24xf32>
    %cst_153 = arith.constant dense<0xFF800000> : vector<96xf32>
    %471 = vector.multi_reduction <maximumf>, %470, %cst_153 [1] : vector<96x24xf32> to vector<96xf32>
    %472 = vector.shape_cast %471 : vector<96xf32> to vector<96x1xf32>
    %473 = vector.broadcast %472 : vector<96x1xf32> to vector<96x24xf32>
    %474 = arith.subf %470, %473 : vector<96x24xf32>
    %475 = math.exp %474 : vector<96x24xf32>
    %cst_154 = arith.constant dense<0.000000e+00> : vector<96xf32>
    %476 = vector.multi_reduction <add>, %475, %cst_154 [1] : vector<96x24xf32> to vector<96xf32>
    %477 = vector.shape_cast %476 : vector<96xf32> to vector<96x1xf32>
    %478 = tpu.reciprocal %477 : vector<96x1xf32> -> vector<96x1xf32>
    %479 = vector.broadcast %478 : vector<96x1xf32> to vector<96x24xf32>
    %480 = arith.mulf %475, %479 : vector<96x24xf32>
    %481 = arith.truncf %480 : vector<96x24xf32> to vector<96x24xbf16>
    %482 = arith.truncf %460 : vector<24x32xf32> to vector<24x32xbf16>
    %cst_155 = arith.constant dense<0.000000e+00> : vector<96x32xf32>
    %483 = tpu.matmul %481, %482, %cst_155 {dimension_numbers = #tpu.dot_dimension_numbers<[1], [0], [0], [1], [0, 0, 1, 1], [], []>} : vector<96x24xbf16>, vector<24x32xbf16>, vector<96x32xf32> -> vector<96x32xf32>
    %c1_156 = arith.constant 1 : index
    %c0_157 = arith.constant 0 : index
    %c0_158 = arith.constant 0 : index
    %484 = vector.load %arg6[%c1_156, %c0_157, %c0_158] : memref<2x8x32xf32, #tpu.memory_space<vmem>>, vector<1x8x32xf32>
    %485 = vector.shape_cast %484 : vector<1x8x32xf32> to vector<8x32xf32>
    %486 = vector.extract_strided_slice %485 {offsets = [0, 0], sizes = [4, 32], strides = [1, 1]} : vector<8x32xf32> to vector<4x32xf32>
    %487 = vector.extract_strided_slice %485 {offsets = [4, 0], sizes = [4, 32], strides = [1, 1]} : vector<8x32xf32> to vector<4x32xf32>
    %488 = arith.truncf %466 : vector<96x32xf32> to vector<96x32xbf16>
    %489 = arith.truncf %486 : vector<4x32xf32> to vector<4x32xbf16>
    %cst_159 = arith.constant dense<0.000000e+00> : vector<96x4xf32>
    %490 = tpu.matmul %488, %489, %cst_159 {dimension_numbers = #tpu.dot_dimension_numbers<[1], [1], [0], [0], [0, 0, 1, 0], [], []>} : vector<96x32xbf16>, vector<4x32xbf16>, vector<96x4xf32> -> vector<96x4xf32>
    %cst_160 = arith.constant dense<0xFF800000> : vector<96xf32>
    %491 = vector.multi_reduction <maximumf>, %490, %cst_160 [1] : vector<96x4xf32> to vector<96xf32>
    %492 = vector.shape_cast %491 : vector<96xf32> to vector<96x1xf32>
    %493 = vector.broadcast %492 : vector<96x1xf32> to vector<96x4xf32>
    %494 = arith.subf %490, %493 : vector<96x4xf32>
    %495 = math.exp %494 : vector<96x4xf32>
    %cst_161 = arith.constant dense<0.000000e+00> : vector<96xf32>
    %496 = vector.multi_reduction <add>, %495, %cst_161 [1] : vector<96x4xf32> to vector<96xf32>
    %497 = vector.shape_cast %496 : vector<96xf32> to vector<96x1xf32>
    %498 = tpu.reciprocal %497 : vector<96x1xf32> -> vector<96x1xf32>
    %499 = vector.broadcast %498 : vector<96x1xf32> to vector<96x4xf32>
    %500 = arith.mulf %495, %499 : vector<96x4xf32>
    %501 = arith.truncf %500 : vector<96x4xf32> to vector<96x4xbf16>
    %502 = arith.truncf %487 : vector<4x32xf32> to vector<4x32xbf16>
    %cst_162 = arith.constant dense<0.000000e+00> : vector<96x32xf32>
    %503 = tpu.matmul %501, %502, %cst_162 {dimension_numbers = #tpu.dot_dimension_numbers<[1], [0], [0], [1], [0, 0, 1, 1], [], []>} : vector<96x4xbf16>, vector<4x32xbf16>, vector<96x32xf32> -> vector<96x32xf32>
    %504 = arith.addf %483, %503 : vector<96x32xf32>
    %505 = vector.shape_cast %504 : vector<96x32xf32> to vector<4x24x32xf32>
    %506 = vector.shape_cast %0 : vector<4x32xf32> to vector<4x1x32xf32>
    %507 = vector.broadcast %506 : vector<4x1x32xf32> to vector<4x24x32xf32>
    %508 = arith.mulf %505, %507 : vector<4x24x32xf32>
    %cst_163 = arith.constant dense<0.000000e+00> : vector<24x32xf32>
    %509 = vector.multi_reduction <add>, %508, %cst_163 [0] : vector<4x24x32xf32> to vector<24x32xf32>
    %510 = arith.truncf %509 : vector<24x32xf32> to vector<24x32xbf16>
    %511 = arith.truncf %433 : vector<32x32xf32> to vector<32x32xbf16>
    %cst_164 = arith.constant dense<0.000000e+00> : vector<24x32xf32>
    %512 = tpu.matmul %510, %511, %cst_164 {dimension_numbers = #tpu.dot_dimension_numbers<[1], [0], [0], [1], [0, 0, 1, 1], [], []>} : vector<24x32xbf16>, vector<32x32xbf16>, vector<24x32xf32> -> vector<24x32xf32>
    %513 = arith.addf %428, %512 : vector<24x32xf32>
    %c7 = arith.constant 7 : index
    %c0_165 = arith.constant 0 : index
    %514 = vector.load %arg5[%c7, %c0_165] : memref<10x32xf32, #tpu.memory_space<vmem>>, vector<1x32xf32>
    %515 = arith.mulf %513, %513 : vector<24x32xf32>
    %cst_166 = arith.constant dense<0.000000e+00> : vector<24xf32>
    %516 = vector.multi_reduction <add>, %515, %cst_166 [1] : vector<24x32xf32> to vector<24xf32>
    %517 = vector.shape_cast %516 : vector<24xf32> to vector<24x1xf32>
    %cst_167 = arith.constant 3.200000e+01 : f32
    %518 = vector.broadcast %cst_167 : f32 to vector<24x1xf32>
    %519 = arith.divf %517, %518 : vector<24x1xf32>
    %cst_168 = arith.constant 9.99999974E-6 : f32
    %520 = vector.broadcast %cst_168 : f32 to vector<24x1xf32>
    %521 = arith.addf %519, %520 : vector<24x1xf32>
    %522 = math.rsqrt %521 : vector<24x1xf32>
    %523 = vector.broadcast %522 : vector<24x1xf32> to vector<24x32xf32>
    %524 = arith.mulf %513, %523 : vector<24x32xf32>
    %525 = vector.broadcast %514 : vector<1x32xf32> to vector<24x32xf32>
    %526 = arith.mulf %524, %525 : vector<24x32xf32>
    %527 = arith.truncf %526 : vector<24x32xf32> to vector<24x32xbf16>
    %528 = arith.truncf %432 : vector<32x192xf32> to vector<32x192xbf16>
    %cst_169 = arith.constant dense<0.000000e+00> : vector<24x192xf32>
    %529 = tpu.matmul %527, %528, %cst_169 {dimension_numbers = #tpu.dot_dimension_numbers<[1], [0], [0], [1], [0, 0, 1, 1], [], []>} : vector<24x32xbf16>, vector<32x192xbf16>, vector<24x192xf32> -> vector<24x192xf32>
    %530 = vector.extract_strided_slice %529 {offsets = [0, 0], sizes = [24, 96], strides = [1, 1]} : vector<24x192xf32> to vector<24x96xf32>
    %531 = vector.extract_strided_slice %529 {offsets = [0, 96], sizes = [24, 96], strides = [1, 1]} : vector<24x192xf32> to vector<24x96xf32>
    %532 = arith.negf %530 : vector<24x96xf32>
    %533 = math.exp %532 : vector<24x96xf32>
    %cst_170 = arith.constant 1.000000e+00 : f32
    %534 = vector.broadcast %cst_170 : f32 to vector<24x96xf32>
    %535 = arith.addf %534, %533 : vector<24x96xf32>
    %536 = arith.divf %534, %535 : vector<24x96xf32>
    %537 = arith.mulf %530, %536 : vector<24x96xf32>
    %538 = arith.mulf %537, %531 : vector<24x96xf32>
    %c3_171 = arith.constant 3 : index
    %c0_172 = arith.constant 0 : index
    %c0_173 = arith.constant 0 : index
    %539 = vector.load %arg4[%c3_171, %c0_172, %c0_173] : memref<4x96x32xf32, #tpu.memory_space<vmem>>, vector<1x96x32xf32>
    %540 = vector.shape_cast %539 : vector<1x96x32xf32> to vector<96x32xf32>
    %541 = arith.truncf %538 : vector<24x96xf32> to vector<24x96xbf16>
    %542 = arith.truncf %540 : vector<96x32xf32> to vector<96x32xbf16>
    %cst_174 = arith.constant dense<0.000000e+00> : vector<24x32xf32>
    %543 = tpu.matmul %541, %542, %cst_174 {dimension_numbers = #tpu.dot_dimension_numbers<[1], [0], [0], [1], [0, 0, 1, 1], [], []>} : vector<24x96xbf16>, vector<96x32xbf16>, vector<24x32xf32> -> vector<24x32xf32>
    %544 = arith.addf %513, %543 : vector<24x32xf32>
    %c8 = arith.constant 8 : index
    %c0_175 = arith.constant 0 : index
    %545 = vector.load %arg5[%c8, %c0_175] : memref<10x32xf32, #tpu.memory_space<vmem>>, vector<1x32xf32>
    %546 = arith.mulf %544, %544 : vector<24x32xf32>
    %cst_176 = arith.constant dense<0.000000e+00> : vector<24xf32>
    %547 = vector.multi_reduction <add>, %546, %cst_176 [1] : vector<24x32xf32> to vector<24xf32>
    %548 = vector.shape_cast %547 : vector<24xf32> to vector<24x1xf32>
    %cst_177 = arith.constant 3.200000e+01 : f32
    %549 = vector.broadcast %cst_177 : f32 to vector<24x1xf32>
    %550 = arith.divf %548, %549 : vector<24x1xf32>
    %cst_178 = arith.constant 9.99999974E-6 : f32
    %551 = vector.broadcast %cst_178 : f32 to vector<24x1xf32>
    %552 = arith.addf %550, %551 : vector<24x1xf32>
    %553 = math.rsqrt %552 : vector<24x1xf32>
    %554 = vector.broadcast %553 : vector<24x1xf32> to vector<24x32xf32>
    %555 = arith.mulf %544, %554 : vector<24x32xf32>
    %556 = vector.broadcast %545 : vector<1x32xf32> to vector<24x32xf32>
    %557 = arith.mulf %555, %556 : vector<24x32xf32>
    %c0_179 = arith.constant 0 : index
    %c0_180 = arith.constant 0 : index
    %558 = vector.load %arg9[%c0_179, %c0_180] : memref<32x128xf32, #tpu.memory_space<vmem>>, vector<32x128xf32>
    %559 = arith.truncf %557 : vector<24x32xf32> to vector<24x32xbf16>
    %560 = arith.truncf %558 : vector<32x128xf32> to vector<32x128xbf16>
    %cst_181 = arith.constant dense<0.000000e+00> : vector<24x128xf32>
    %561 = tpu.matmul %559, %560, %cst_181 {dimension_numbers = #tpu.dot_dimension_numbers<[1], [0], [0], [1], [0, 0, 1, 1], [], []>} : vector<24x32xbf16>, vector<32x128xbf16>, vector<24x128xf32> -> vector<24x128xf32>
    %c0_182 = arith.constant 0 : index
    %c0_183 = arith.constant 0 : index
    %562 = vector.load %arg11[%c0_182, %c0_183] : memref<24x128xf32, #tpu.memory_space<vmem>>, vector<24x128xf32>
    tpu.vector_store %arg11[%c0_182, %c0_183], %561 {strides = array<i32>} : memref<24x128xf32, #tpu.memory_space<vmem>>, vector<24x128xf32>,
    return
  }
}

</mosaic_0001>

<bundles_post_ra>
// kernel: mul.21
= control target key start
LH: loop header
LB: loop body
LE: loop exit
PB: predicated region body
PF: predicated region fallthrough
CT: control target
= control target key end

     0   :  { %vm7_vm0 = vcmask 64512   ;;  %s37_s8 = smov 8   ;;  %s38_s9 = smov 16   ;;  %vm13_vm1 = vcmask 261312   ;;  %vm19_vm2 = vcmask 195712   ;;  %vm25_vm3 = vcmask 130112   ;;  %s55_s0 = inlined_call_operand.vmem [shape: f32[4,8], index: 0, kind: input, shape index: {}]   ;;  %s56_s1 = inlined_call_operand.vmem [shape: f32[32], index: 1, kind: output, shape index: {}]  }
   0x1   :  { %v4_v0 = vld [vmem:[%s55_s0] sm:$0xf]  ;;  %s36_s0 = smov 24  }
   0x2   :  { %5 = vst [vmem:[#allocation1] sm:$0xf] %v4_v0 }
   0x9   :  { %v10_v1 = vld [vmem:[#allocation1 + $0x3] sm:$0x1]   ;;  %v22_v2 = vld [vmem:[#allocation1 + $0x1] sm:$0x1]   ;;  %v6_v3 = vld [vmem:[#allocation1] sm:$0x1]  }
   0xa   :  { %11 = vrot.lane.b32.xlu0 %v10_v1, %s36_s0  ;;  %23 = vrot.lane.b32.xlu1 %v22_v2, %s37_s8  ;;  %v16_v4 = vld [vmem:[#allocation1 + $0x2] sm:$0x1]   ;;  %8 = vst.msk [vmem:[#allocation0] sm:$0x1] %vm7_vm0, %v6_v3  }
   0xe   :  { %17 = vrot.lane.b32.xlu0 %v16_v4, %s38_s9 }
  0x7c   :  { %v12_v5 = vpop.permute.xlu0 %11   ;;  %v24_v6 = vpop.permute.xlu1 %23  }
  0x7d   :  { %14 = vst.msk [vmem:[#allocation0] sm:$0x1] %vm13_vm1, %v12_v5  }
  0x80   :  { %v18_v7 = vpop.permute.xlu0 %17  }
  0x81   :  { %20 = vst.msk [vmem:[#allocation0] sm:$0x1] %vm19_vm2, %v18_v7  }
  0x82   :  { %26 = vst.msk [vmem:[#allocation0] sm:$0x1] %vm25_vm3, %v24_v6  }
  0x89   :  { %v30_v8 = vld [vmem:[#allocation0] sm:$0x1] }
  0x8a   :  { %32 = vst [vmem:[%s56_s1] sm:$0x1] %v30_v8 }

// kernel: transformer_forward.1
= control target key start
LH: loop header
LB: loop body
LE: loop exit
PB: predicated region body
PF: predicated region fallthrough
CT: control target
= control target key end

     0   :  { %19 = vsyncpa [#allocation4], 0  ;;  %vm77_vm0 = vcmask 261120   ;;  %s8440_s0 = inlined_call_operand.vmem [shape: f32[16,32], index: 0, kind: input, shape index: {}]   ;;  %s8441_s1 = inlined_call_operand.vmem [shape: f32[142,32], index: 1, kind: input, shape index: {}]   ;;  %s8442_s2 = inlined_call_operand.vmem [shape: f32[64,32], index: 2, kind: input, shape index: {}]   ;;  %s8443_s3 = inlined_call_operand.vmem [shape: f32[4,32,384], index: 3, kind: input, shape index: {}]   ;;  %s8444_s4 = inlined_call_operand.vmem [shape: f32[4,96,32], index: 4, kind: input, shape index: {}]   ;;  %s8445_s5 = inlined_call_operand.vmem [shape: f32[10,32], index: 5, kind: input, shape index: {}]   ;;  %s8446_s6 = inlined_call_operand.vmem [shape: f32[2,8,32], index: 6, kind: input, shape index: {}]   ;;  %s8447_s7 = inlined_call_operand.vmem [shape: f32[32,96], index: 7, kind: input, shape index: {}]   ;;  %s8448_s8 = inlined_call_operand.vmem [shape: f32[16,32], index: 8, kind: input, shape index: {}]   ;;  %s8449_s9 = inlined_call_operand.vmem [shape: f32[32,128], index: 9, kind: input, shape index: {}]   ;;  %s8450_s10 = inlined_call_operand.vmem [shape: f32[16,128], index: 10, kind: input, shape index: {}]   ;;  %s8451_s11 = inlined_call_operand.vmem [shape: f32[24,128], index: 11, kind: output, shape index: {0}]   ;;  %s8452_s12 = inlined_call_operand.hbm [shape: f32[2,2], index: 12, kind: output, shape index: {1}]   ;;  %s8453_s13 = inlined_call_operand.hbm [shape: f32[8,128], index: 13, kind: output, shape index: {2}]  }
   0x1   :  { %v6650_v0 = vld [vmem:[%s8440_s0] sm:$0xff]  ;;  %v6655_v1 = vld [vmem:[%s8440_s0 + $0x8] sm:$0xff] }
   0x2   :  { %20 = vsyncpa [#allocation6], 0  ;;  %v75_v2 = vmul.f32 %v6650_v0, %v6650_v0  ;;  %v76_v3 = vmul.f32 %v6655_v1, %v6655_v1  ;;  %v63_v6 = vld [vmem:[%s8443_s3 + $0x8] sm:$0xff]  ;;  %v66_v7 = vld [vmem:[%s8443_s3 + $0x20] sm:$0xff]  ;;  %v8454_v13 = vmov 0   ;;  %s6564_s29 = smov 32   ;;  %v206_v59 = vlaneseq }
   0x3   :  { %v62_v8 = vld [vmem:[%s8443_s3] sm:$0xff]  ;;  %v6672_v9 = vpack.c.bf16 %v66_v7, %v63_v6  ;;  %v65_v10 = vld [vmem:[%s8443_s3 + $0x18] sm:$0xff]  ;;  %v72_v12 = vld [vmem:[%s8443_s3 + $0x50] sm:$0xff]  ;;  %139 = vmatprep.mubr.bf16.mxu0 %v8454_v13  ;;  %s6565_s16 = smov 96   ;;  %v6566_v57 = vmov 1966171168  }
   0x4   :  { %v78_v4 = vsel %vm77_vm0, %v75_v2, 0.0  ;;  %v81_v5 = vsel %vm77_vm0, %v76_v3, 0.0  ;;  %v69_v11 = vld [vmem:[%s8443_s3 + $0x38] sm:$0xff]  ;;  %v100_v14 = vpack.c.bf16 %v65_v10, %v62_v8  ;;  %v68_v16 = vld [vmem:[%s8443_s3 + $0x30] sm:$0xff]  ;;  %v71_v17 = vld [vmem:[%s8443_s3 + $0x48] sm:$0xff]  ;;  %v204_v58 = vunpack.c.l.s4 %v6566_v57  ;;  %s6567_s27 = smov 64  }
   0x5   :  { %79 = vadd.xlane.f32.xlu0 %v78_v4  ;;  %v6684_v15 = vpack.c.bf16 %v72_v12, %v69_v11  ;;  %107 = vmatprep.subr.bf16.mxu0 %v6672_v9  ;;  %v102_v18 = vpack.c.bf16 %v71_v17, %v68_v16  ;;  %v6697_v19 = vld [vmem:[%s8441_s1] sm:$0xff]  ;;  %v6704_v20 = vld [vmem:[%s8441_s1 + $0x8] sm:$0xff]  ;;  %v6711_v21 = vld [vmem:[%s8441_s1 + $0x10] sm:$0xff]  ;;  %v207_v61 = vshrl.u32 %v206_v59, 7  ;;  %vm335_vm1 = vcmask 130048   ;;  %s6571_s19 = smov 48  }
   0x6   :  { %108 = vmatpush1.bf16.msra.mxu0 %v100_v14  ;;  %174 = vrot.lane.b32.xlu1 %v6697_v19, %s6564_s29  ;;  %v5166_v31 = vld [vmem:[%s8445_s5] ss:$0 sm:$0xff]  ;;  %v6728_v39 = vld [vmem:[%s8441_s1 + $0x18] sm:$0xff]  ;;  %v205_v60 = vunpack.c.0.s8 %v204_v58  ;;  %vm6569_vm2 = vmmov 0   ;;  %vm623_vm3 = vcmask 785408   ;;  %vm1796_vm4 = vcmask 31744  }
   0x7   :  { %109 = vmatprep.subr.bf16.mxu0 %v6684_v15  ;;  %v5168_v62 = vld.sshfl [vmem:[%s8441_s1 + $0x88] sm:$0x33 pattern:$0x75316420]  ;;  %v221_v6 = vsub.s32 0, %v207_v61  ;;  %vm1903_vm5 = vcmask 1041408  }
   0x8   :  { %v202_v63 = vcombine.high %v5168_v62, %v5168_v62  ;;  %v208_v2 = vsub.s32 %v205_v60, %v207_v61  ;;  %s6572_s20 = smov 112   ;;  %vm3176_vm10 = vcmask 523264   ;;  %s6575_s18 = smov [#allocation3]  }
   0x9   :  { %82 = vadd.xlane.f32.xlu0 %v81_v5 }
   0xa   :  { %110 = vmatpush1.bf16.msra.mxu0 %v102_v18  ;;  %176 = vrot.lane.b32.xlu1 %v6704_v20, %s6564_s29  ;;  %v209_v3 = vrot.slane %v5168_v62, %v208_v2  ;;  %v216_v4 = vrot.slane %v202_v63, %v208_v2 }
   0xc   :  { %v217_v7 = vcombine.high %v209_v3, %v209_v3  ;;  %v218_v8 = vcombine.high %v216_v4, %v216_v4  ;;  %v6765_v14 = vrot.slane %v209_v3, %v221_v6  ;;  %v6767_v17 = vrot.slane %v216_v4, %v221_v6 }
   0xe   :  { %154 = vrot.lane.b32.xlu1 %v6711_v21, %s6565_s16  ;;  %v6769_v18 = vrot.slane %v217_v7, %v221_v6 }
  0x78   :  { %v6721_v36 = vpop.permute.xlu1 %174 }
  0x7c   :  { %v6733_v42 = vpop.permute.xlu1 %176 }
  0x80   :  { %v6740_v46 = vpop.permute.xlu1 %154 }
  0x92   :  { %v80_v22 = vpop.xlane.xlu0 %79 }
  0x93   :  { %v85_v23 = vmul.f32 0.03125, %v80_v22  ;;  %v6771_v22 = vrot.slane %v218_v8, %v221_v6 }
  0x95   :  { %v87_v24 = vadd.f32 1e-05, %v85_v23 }
  0x96   :  { %v83_v25 = vpop.xlane.xlu0 %82 }
  0x97   :  { %6202 = vrsqrt.f32 %v87_v24  ;;  %v86_v26 = vmul.f32 0.03125, %v83_v25 }
  0x99   :  { %v88_v27 = vadd.f32 1e-05, %v86_v26 }
  0x9b   :  { %6204 = vrsqrt.f32 %v88_v27 }
  0xa1   :  { %v6203_v28 = vpop.eup %6202 }
  0xa2   :  { %v91_v29 = vmul.f32 %v6203_v28, %v6650_v0 }
  0xa4   :  { %v97_v33 = vmul.f32 %v5166_v31, %v91_v29 }
  0xa5   :  { %v6205_v30 = vpop.eup %6204 }
  0xa6   :  { %v92_v32 = vmul.f32 %v6205_v30, %v6655_v1 }
  0xa8   :  { %v98_v34 = vmul.f32 %v5166_v31, %v92_v32 }
  0xaa   :  { %v99_v35 = vpack.c.bf16 %v98_v34, %v97_v33 }
  0xac   :  { %5167 = vmatmul.mubr.msk.bf16.vlgmr.msra.gmra.mrb[0].mxu0 %vm77_vm0, %v99_v35 }
 0x17f   :  { %v6723_v37 = vpop.f32.mrb[0].mxu0 }
 0x180   :  { %v143_v38 = vpop.f32.mrb[1].mxu0  ;;  %v160_v47 = vmul.f32 %v6740_v46, %v6723_v37  ;;  %v180_v49 = vmul.f32 %v6721_v36, %v6723_v37  ;;  %v150_v10 = vmul.f32 %v6723_v37, %v6697_v19 }
 0x181   :  { %v182_v40 = vmul.f32 %v143_v38, %v6711_v21  ;;  %v6731_v41 = vpop.f32.mrb[2].mxu0 }
 0x182   :  { %v147_v43 = vpop.f32.mrb[3].mxu0  ;;  %v428_v44 = vpack.c.bf16 %v6731_v41, %v6723_v37  ;;  %v181_v50 = vmul.f32 %v6733_v42, %v6731_v41  ;;  %v151_v23 = vmul.f32 %v6731_v41, %v6704_v20 }
 0x183   :  { %v183_v45 = vmul.f32 %v147_v43, %v6728_v39  ;;  %186 = vrot.lane.b32.xlu0 %v182_v40, %s6564_s29  ;;  %v6790_v43 = vld [vmem:[%s8441_s1 + $0x60] sm:$0xff] }
 0x185   :  { %188 = vrot.lane.b32.xlu1 %v183_v45, %s6564_s29 }
 0x189   :  { %156 = vrot.lane.b32.xlu1 %v6728_v39, %s6565_s16 }
 0x18d   :  { %164 = vrot.lane.b32.xlu1 %v160_v47, %s6564_s29 }
 0x1f5   :  { %v187_v48 = vpop.permute.xlu0 %186 }
 0x1f6   :  { %v192_v52 = vadd.f32 %v187_v48, %v180_v49  ;;  %v6795_v48 = vld [vmem:[%s8441_s1 + $0x68] sm:$0xff] }
 0x1f7   :  { %v189_v51 = vpop.permute.xlu1 %188 }
 0x1f8   :  { %v193_v53 = vadd.f32 %v189_v51, %v181_v50 }
 0x1fa   :  { %v251_v54 = vpack.c.bf16 %v193_v53, %v192_v52 }
 0x1fb   :  { %v6751_v55 = vpop.permute.xlu1 %156 }
 0x1fc   :  { %253 = vrot.lane.b32.xlu1 %v251_v54, %s6565_s16  ;;  %v161_v56 = vmul.f32 %v6751_v55, %v6731_v41 }
 0x1ff   :  { %v165_v5 = vpop.permute.xlu1 %164 }
 0x200   :  { %166 = vrot.lane.b32.xlu1 %v161_v56, %s6564_s29  ;;  %v170_v16 = vadd.f32 %v165_v5, %v150_v10 }
 0x202   :  { %v239_v26 = vmul.f32 %v6765_v14, %v170_v16  ;;  %v241_v27 = vmul.f32 %v6767_v17, %v170_v16  ;;  %v243_v28 = vmul.f32 %v6769_v18, %v170_v16  ;;  %v245_v29 = vmul.f32 %v6771_v22, %v170_v16 }
 0x26e   :  { %v254_v11 = vpop.permute.xlu1 %253 }
 0x26f   :  { %6169 = vmatprep.subr.msk.bf16.mxu1 %vm77_vm0, %v254_v11  ;;  %v268_v12 = vsel %vm77_vm0, %v254_v11, 0 }
 0x270   :  { %5566 = vmatpush3.bf16.xpose.msra.mxu1 %v268_v12 }
 0x272   :  { %v167_v24 = vpop.permute.xlu1 %166 }
 0x273   :  { %v171_v25 = vadd.f32 %v167_v24, %v151_v23 }
 0x275   :  { %v240_v30 = vmul.f32 %v6765_v14, %v171_v25  ;;  %v242_v31 = vmul.f32 %v6767_v17, %v171_v25  ;;  %v244_v32 = vmul.f32 %v6769_v18, %v171_v25  ;;  %v246_v33 = vmul.f32 %v6771_v22, %v171_v25 }
 0x277   :  { %v247_v34 = vpack.c.bf16 %v240_v30, %v239_v26  ;;  %v248_v35 = vpack.c.bf16 %v242_v31, %v241_v27  ;;  %v249_v38 = vpack.c.bf16 %v244_v32, %v243_v28  ;;  %v250_v40 = vpack.c.bf16 %v246_v33, %v245_v29 }
 0x279   :  { %5567 = vmatprep.mubr.msk.bf16.mxu1 %vm77_vm0, %v247_v34 }
 0x27a   :  { %5568 = vmatmul.mubr.msk.bf16.vlgmr.msra.gmra.mrb[0].mxu1 %vm77_vm0, %v248_v35 }
 0x27b   :  { %5571 = vmatprep.mubr.msk.bf16.mxu1 %vm77_vm0, %v249_v38 }
 0x282   :  { %5572 = vmatmul.mubr.msk.bf16.gmra.mrb[4].mxu1 %vm77_vm0, %v250_v40 }
 0x34d   :  { %v5569_v45 = vpop.f32.mrb[0].mxu1 }
 0x34e   :  { %v304_v47 = vpop.f32.mrb[1].mxu1  ;;  %v313_v52 = vadd.f32 %v5569_v45, %v6790_v43 }
 0x34f   :  { %v305_v49 = vadd.f32 %v304_v47, %v6790_v43  ;;  %v5570_v50 = vpop.f32.mrb[2].mxu1 }
 0x350   :  { %v307_v51 = vpop.f32.mrb[3].mxu1  ;;  %v316_v57 = vadd.f32 %v5570_v50, %v6795_v48  ;;  %v342_v60 = vsel %vm335_vm1, %v313_v52, -inf }
 0x351   :  { %v308_v53 = vadd.f32 %v307_v51, %v6795_v48  ;;  %v336_v54 = vsel %vm335_vm1, %v305_v49, -inf }
 0x352   :  { %337 = vmax.xlane.f32.xlu0 %v336_v54  ;;  %v345_v5 = vsel %vm335_vm1, %v316_v57, -inf }
 0x353   :  { %v339_v56 = vsel %vm335_vm1, %v308_v53, -inf }
 0x354   :  { %340 = vmax.xlane.f32.xlu1 %v339_v56 }
 0x355   :  { %v5573_v58 = vpop.f32.mrb[4].mxu1 }
 0x356   :  { %343 = vmax.xlane.f32.xlu0 %v342_v60  ;;  %v320_v61 = vpop.f32.mrb[5].mxu1  ;;  %v329_v3 = vadd.f32 %v5573_v58, %v6790_v43 }
 0x357   :  { %v321_v62 = vadd.f32 %v320_v61, %v6790_v43  ;;  %v5574_v63 = vpop.f32.mrb[6].mxu1 }
 0x358   :  { %v323_v2 = vpop.f32.mrb[7].mxu1  ;;  %v332_v7 = vadd.f32 %v5574_v63, %v6795_v48  ;;  %v354_v10 = vsel %vm335_vm1, %v329_v3, -inf }
 0x359   :  { %v324_v4 = vadd.f32 %v323_v2, %v6795_v48  ;;  %v348_v6 = vsel %vm335_vm1, %v321_v62, -inf }
 0x35a   :  { %346 = vmax.xlane.f32.xlu0 %v345_v5  ;;  %349 = vmax.xlane.f32.xlu1 %v348_v6  ;;  %v357_v11 = vsel %vm335_vm1, %v332_v7, -inf }
 0x35b   :  { %v351_v8 = vsel %vm335_vm1, %v324_v4, -inf }
 0x35e   :  { %352 = vmax.xlane.f32.xlu0 %v351_v8  ;;  %355 = vmax.xlane.f32.xlu1 %v354_v10 }
 0x362   :  { %358 = vmax.xlane.f32.xlu0 %v357_v11  ;;  %v64_v11 = vld [vmem:[%s8443_s3 + $0x10] sm:$0xff] }
 0x3df   :  { %v338_v12 = vpop.xlane.xlu0 %337 }
 0x3e0   :  { %v360_v23 = vsub.f32 %v305_v49, %v338_v12  ;;  %v67_v12 = vld [vmem:[%s8443_s3 + $0x28] sm:$0xff] }
 0x3e1   :  { %v341_v16 = vpop.xlane.xlu1 %340 }
 0x3e2   :  { %v361_v24 = vsub.f32 %v308_v53, %v341_v16  ;;  %v368_v28 = vmul.f32 1.442695, %v360_v23  ;;  %v70_v16 = vld [vmem:[%s8443_s3 + $0x40] sm:$0xff]  ;;  %v533_v23 = vpack.c.bf16 %v67_v12, %v64_v11 }
 0x3e3   :  { %v344_v25 = vpop.xlane.xlu0 %343 }
 0x3e4   :  { %v370_v26 = vmul.f32 1.442695, %v361_v24  ;;  %v362_v27 = vsub.f32 %v313_v52, %v344_v25  ;;  %v73_v24 = vld [vmem:[%s8443_s3 + $0x58] sm:$0xff] }
 0x3e5   :  { %v6840_v25 = vpack.c.bf16 %v73_v24, %v70_v16 }
 0x3e6   :  { %6206 = vpow2.f32 %v370_v26  ;;  %v372_v29 = vmul.f32 1.442695, %v362_v27 }
 0x3e7   :  { %v347_v30 = vpop.xlane.xlu0 %346  ;;  %v350_v31 = vpop.xlane.xlu1 %349 }
 0x3e8   :  { %6208 = vpow2.f32 %v372_v29  ;;  %v363_v32 = vsub.f32 %v316_v57, %v347_v30  ;;  %v364_v34 = vsub.f32 %v321_v62, %v350_v31 }
 0x3e9   :  { %6210 = vpow2.f32 %v368_v28 }
 0x3ea   :  { %v374_v33 = vmul.f32 1.442695, %v363_v32  ;;  %v376_v50 = vmul.f32 1.442695, %v364_v34 }
 0x3eb   :  { %v353_v35 = vpop.xlane.xlu0 %352  ;;  %v356_v38 = vpop.xlane.xlu1 %355 }
 0x3ec   :  { %6212 = vpow2.f32 %v374_v33  ;;  %v365_v40 = vsub.f32 %v324_v4, %v353_v35  ;;  %v366_v45 = vsub.f32 %v329_v3, %v356_v38 }
 0x3ee   :  { %v378_v47 = vmul.f32 1.442695, %v365_v40  ;;  %v380_v49 = vmul.f32 1.442695, %v366_v45 }
 0x3ef   :  { %v359_v51 = vpop.xlane.xlu0 %358 }
 0x3f0   :  { %v6813_v52 = vpop.eup %6206  ;;  %6214 = vpow2.f32 %v378_v47  ;;  %v367_v53 = vsub.f32 %v332_v7, %v359_v51 }
 0x3f1   :  { %6216 = vpow2.f32 %v380_v49  ;;  %v387_v54 = vsel %vm335_vm1, %v6813_v52, 0.0 }
 0x3f2   :  { %v6209_v56 = vpop.eup %6208  ;;  %v382_v57 = vmul.f32 1.442695, %v367_v53  ;;  %388 = vadd.xlane.f32.xlu0 %v387_v54  ;;  %6218 = vpow2.f32 %v376_v50 }
 0x3f3   :  { %v390_v58 = vsel %vm335_vm1, %v6209_v56, 0.0  ;;  %v6211_v60 = vpop.eup %6210 }
 0x3f4   :  { %6220 = vpow2.f32 %v382_v57  ;;  %391 = vadd.xlane.f32.xlu1 %v390_v58  ;;  %v384_v63 = vsel %vm335_vm1, %v6211_v60, 0.0 }
 0x3f6   :  { %v6213_v61 = vpop.eup %6212 }
 0x3f7   :  { %v393_v62 = vsel %vm335_vm1, %v6213_v61, 0.0 }
 0x3f8   :  { %394 = vadd.xlane.f32.xlu0 %v393_v62  ;;  %385 = vadd.xlane.f32.xlu1 %v384_v63 }
 0x3fa   :  { %v6215_v2 = vpop.eup %6214 }
 0x3fb   :  { %v6217_v3 = vpop.eup %6216  ;;  %v399_v4 = vsel %vm335_vm1, %v6215_v2, 0.0 }
 0x3fc   :  { %400 = vadd.xlane.f32.xlu0 %v399_v4  ;;  %v402_v5 = vsel %vm335_vm1, %v6217_v3, 0.0  ;;  %v6219_v6 = vpop.eup %6218 }
 0x3fd   :  { %403 = vadd.xlane.f32.xlu1 %v402_v5  ;;  %v396_v10 = vsel %vm335_vm1, %v6219_v6, 0.0 }
 0x3fe   :  { %v6221_v7 = vpop.eup %6220 }
 0x3ff   :  { %v405_v8 = vsel %vm335_vm1, %v6221_v7, 0.0 }
 0x400   :  { %406 = vadd.xlane.f32.xlu0 %v405_v8 }
 0x401   :  { %397 = vadd.xlane.f32.xlu1 %v396_v10 }
 0x412   :  { %430 = vrot.lane.b32.xlu1 %v428_v44, %s6567_s27 }
 0x416   :  { %537 = vrot.lane.b32.xlu0 %v533_v23, %s6564_s29  ;;  %539 = vrot.lane.b32.xlu1 %v6840_v25, %s6564_s29 }
 0x41a   :  { %615 = vrot.lane.b32.xlu0 %v6672_v9, %s6565_s16  ;;  %617 = vrot.lane.b32.xlu1 %v533_v23, %s6565_s16 }
 0x47f   :  { %v389_v37 = vpop.xlane.xlu0 %388 }
 0x481   :  { %v392_v41 = vpop.xlane.xlu1 %391 }
 0x482   :  { %6222 = vrcp.f32 %v392_v41 }
 0x483   :  { %6224 = vrcp.f32 %v389_v37 }
 0x485   :  { %v395_v44 = vpop.xlane.xlu0 %394  ;;  %v386_v26 = vpop.xlane.xlu1 %385 }
 0x486   :  { %6226 = vrcp.f32 %v395_v44 }
 0x487   :  { %6228 = vrcp.f32 %v386_v26 }
 0x489   :  { %v401_v27 = vpop.xlane.xlu0 %400 }
 0x48a   :  { %v404_v28 = vpop.xlane.xlu1 %403 }
 0x48b   :  { %6230 = vrcp.f32 %v404_v28 }
 0x48c   :  { %6232 = vrcp.f32 %v401_v27  ;;  %v6223_v30 = vpop.eup %6222 }
 0x48d   :  { %v407_v29 = vpop.xlane.xlu0 %406  ;;  %v6225_v32 = vpop.eup %6224  ;;  %v418_v34 = vmul.f32 %v6223_v30, %v6209_v56 }
 0x48e   :  { %6234 = vrcp.f32 %v407_v29  ;;  %v398_v31 = vpop.xlane.xlu1 %397  ;;  %v417_v45 = vmul.f32 %v6225_v32, %v6813_v52  ;;  %v6568_v52 = vmov 0.0  }
 0x48f   :  { %6236 = vrcp.f32 %v398_v31  ;;  %5585 = vmatprep.subr.bf16.mxu1 %v6568_v52  ;;  %5589 = vmatprep.mubr.msk.bf16.mxu1 %vm6569_vm2, %v6568_v52 }
 0x490   :  { %v6227_v9 = vpop.eup %6226 }
 0x491   :  { %v6229_v33 = vpop.eup %6228  ;;  %v419_v35 = vmul.f32 %v6227_v9, %v6213_v61  ;;  %v538_v63 = vpop.permute.xlu0 %537 }
 0x492   :  { %v431_v38 = vpop.permute.xlu1 %430  ;;  %v416_v40 = vmul.f32 %v6229_v33, %v6211_v60  ;;  %5586 = vmatpush3.bf16.msra.mxu1 %v538_v63 }
 0x493   :  { %5575 = vmatprep.subr.bf16.mxu0 %v431_v38  ;;  %v425_v47 = vpack.c.bf16 %v419_v35, %v418_v34  ;;  %5587 = vmatprep.subr.bf16.mxu1 %v6568_v52 }
 0x494   :  { %5576 = vmatpush3.bf16.msra.mxu0 %v431_v38  ;;  %v424_v49 = vpack.c.bf16 %v417_v45, %v416_v40 }
 0x495   :  { %v6231_v50 = vpop.eup %6230 }
 0x496   :  { %5577 = vmatprep.mubr.msk.bf16.mxu0 %vm335_vm1, %v424_v49  ;;  %v6233_v51 = vpop.eup %6232  ;;  %v422_v57 = vmul.f32 %v6231_v50, %v6217_v3  ;;  %v540_v4 = vpop.permute.xlu1 %539 }
 0x497   :  { %5578 = vmatmul.mubr.msk.bf16.vlgmr.msra.gmra.mrb[4].mxu0 %vm335_vm1, %v425_v47  ;;  %v421_v61 = vmul.f32 %v6233_v51, %v6215_v2  ;;  %5588 = vmatpush3.bf16.msra.mxu1 %v540_v4  ;;  %v616_v50 = vpop.permute.xlu0 %615 }
 0x498   :  { %v6235_v53 = vpop.eup %6234  ;;  %5593 = vmatprep.subr.bf16.mxu1 %v6568_v52 }
 0x499   :  { %v6237_v54 = vpop.eup %6236  ;;  %v423_v58 = vmul.f32 %v6235_v53, %v6221_v7 }
 0x49a   :  { %v420_v56 = vmul.f32 %v6237_v54, %v6219_v6  ;;  %v618_v51 = vpop.permute.xlu1 %617 }
 0x49b   :  { %v427_v62 = vpack.c.bf16 %v423_v58, %v422_v57  ;;  %633 = vmatprep.subr.bf16.mxu0 %v618_v51  ;;  %v624_v53 = vsel %vm623_vm3, %v616_v50, %v618_v51 }
 0x49c   :  { %v426_v60 = vpack.c.bf16 %v421_v61, %v420_v56  ;;  %634 = vmatpush1.bf16.msra.mxu0 %v624_v53 }
 0x49e   :  { %5581 = vmatprep.mubr.msk.bf16.mxu0 %vm335_vm1, %v426_v60 }
 0x49f   :  { %5582 = vmatmul.mubr.msk.bf16.gmra.mrb[8].mxu0 %vm335_vm1, %v427_v62 }
 0x4a0   :  { %665 = vmatprep.mubr.bf16.mxu0 %v8454_v13 }
 0x56a   :  { %v5579_v2 = vpop.f32.mrb[4].mxu0 }
 0x56b   :  { %v512_v3 = vmul.f32 %v5579_v2, %v6767_v17  ;;  %v479_v5 = vpop.f32.mrb[5].mxu0 }
 0x56c   :  { %v510_v6 = vmul.f32 %v479_v5, %v6765_v14  ;;  %v5580_v7 = vpop.f32.mrb[6].mxu0 }
 0x56d   :  { %v519_v8 = vsel %vm77_vm0, %v512_v3, 0.0  ;;  %v513_v10 = vmul.f32 %v5580_v7, %v6767_v17  ;;  %v482_v11 = vpop.f32.mrb[7].mxu0 }
 0x56e   :  { %v518_v12 = vsel %vm77_vm0, %v510_v6, 0.0  ;;  %v511_v16 = vmul.f32 %v482_v11, %v6765_v14 }
 0x56f   :  { %v520_v23 = vadd.f32 %v519_v8, %v518_v12  ;;  %v526_v24 = vsel %vm77_vm0, %v513_v10, 0.0 }
 0x570   :  { %v525_v37 = vsel %vm77_vm0, %v511_v16, 0.0 }
 0x571   :  { %v527_v41 = vadd.f32 %v526_v24, %v525_v37 }
 0x572   :  { %v5583_v44 = vpop.f32.mrb[8].mxu0 }
 0x573   :  { %v495_v26 = vpop.f32.mrb[9].mxu0  ;;  %v516_v27 = vmul.f32 %v5583_v44, %v6771_v22  ;;  %v708_v44 = vld [vmem:[%s8444_s4] sm:$0xff] }
 0x574   :  { %v514_v28 = vmul.f32 %v495_v26, %v6769_v18  ;;  %v5584_v29 = vpop.f32.mrb[10].mxu0  ;;  %v709_v26 = vld [vmem:[%s8444_s4 + $0x8] sm:$0xff] }
 0x575   :  { %v498_v30 = vpop.f32.mrb[11].mxu0  ;;  %v517_v32 = vmul.f32 %v5584_v29, %v6771_v22  ;;  %v523_v34 = vsel %vm77_vm0, %v516_v27, 0.0  ;;  %v710_v27 = vld [vmem:[%s8444_s4 + $0x10] sm:$0xff]  ;;  %v711_v29 = vld [vmem:[%s8444_s4 + $0x18] sm:$0xff] }
 0x576   :  { %v521_v31 = vsel %vm77_vm0, %v514_v28, 0.0  ;;  %v515_v9 = vmul.f32 %v498_v30, %v6769_v18  ;;  %v721_v28 = vpack.c.bf16 %v709_v26, %v708_v44  ;;  %v722_v30 = vpack.c.bf16 %v711_v29, %v710_v27 }
 0x577   :  { %v522_v33 = vadd.f32 %v521_v31, %v520_v23  ;;  %v530_v45 = vsel %vm77_vm0, %v517_v32, 0.0  ;;  %v712_v31 = vld [vmem:[%s8444_s4 + $0x20] sm:$0xff]  ;;  %v713_v32 = vld [vmem:[%s8444_s4 + $0x28] sm:$0xff] }
 0x578   :  { %v528_v35 = vsel %vm77_vm0, %v515_v9, 0.0  ;;  %v723_v9 = vpack.c.bf16 %v713_v32, %v712_v31  ;;  %v5183_v32 = vld [vmem:[%s8443_s3 + $0x60] sm:$0xff] }
 0x579   :  { %v524_v38 = vadd.f32 %v523_v34, %v522_v33  ;;  %v529_v40 = vadd.f32 %v528_v35, %v527_v41  ;;  %v714_v33 = vld [vmem:[%s8444_s4 + $0x30] sm:$0xff]  ;;  %v715_v34 = vld [vmem:[%s8444_s4 + $0x38] sm:$0xff] }
 0x57a   :  { %v724_v35 = vpack.c.bf16 %v715_v34, %v714_v33  ;;  %v5190_v34 = vld [vmem:[%s8443_s3 + $0x98] sm:$0xff] }
 0x57b   :  { %v531_v47 = vadd.f32 %v530_v45, %v529_v40  ;;  %v717_v40 = vld [vmem:[%s8444_s4 + $0x48] sm:$0xff] }
 0x57d   :  { %v532_v49 = vpack.c.bf16 %v531_v47, %v524_v38  ;;  %v716_v38 = vld [vmem:[%s8444_s4 + $0x40] sm:$0xff]  ;;  %v718_v47 = vld [vmem:[%s8444_s4 + $0x50] sm:$0xff] }
 0x57e   :  { %v725_v45 = vpack.c.bf16 %v717_v40, %v716_v38  ;;  %v5189_v40 = vld [vmem:[%s8443_s3 + $0x90] sm:$0xff] }
 0x57f   :  { %5590 = vmatmul.mubr.msk.bf16.vlgmr.msra.gmra.mrb[8].mxu1 %vm77_vm0, %v532_v49  ;;  %v719_v49 = vld [vmem:[%s8444_s4 + $0x58] sm:$0xff] }
 0x580   :  { %5605 = vmatprep.mubr.msk.bf16.mxu1 %vm6569_vm2, %v6568_v52  ;;  %5594 = vmatpush3.bf16.msra.mxu1 %v721_v28  ;;  %v726_v50 = vpack.c.bf16 %v719_v49, %v718_v47 }
 0x581   :  { %5595 = vmatprep.subr.bf16.mxu1 %v6568_v52 }
 0x584   :  { %5596 = vmatpush3.bf16.msra.mxu1 %v722_v30 }
 0x585   :  { %5597 = vmatprep.subr.bf16.mxu1 %v6568_v52 }
 0x588   :  { %5598 = vmatpush3.bf16.msra.mxu1 %v723_v9  ;;  %v5186_v9 = vld [vmem:[%s8443_s3 + $0x78] sm:$0xff] }
 0x589   :  { %5599 = vmatprep.subr.bf16.mxu1 %v6568_v52  ;;  %v811_v33 = vpack.c.bf16 %v5186_v9, %v5183_v32 }
 0x58c   :  { %5600 = vmatpush3.bf16.msra.mxu1 %v724_v35  ;;  %v5193_v35 = vld [vmem:[%s8443_s3 + $0xb0] sm:$0xff] }
 0x58d   :  { %5601 = vmatprep.subr.bf16.mxu1 %v6568_v52  ;;  %v6984_v38 = vpack.c.bf16 %v5193_v35, %v5190_v34 }
 0x590   :  { %5602 = vmatpush3.bf16.msra.mxu1 %v725_v45  ;;  %v5192_v45 = vld [vmem:[%s8443_s3 + $0xa8] sm:$0xff] }
 0x591   :  { %5603 = vmatprep.subr.bf16.mxu1 %v6568_v52  ;;  %v813_v47 = vpack.c.bf16 %v5192_v45, %v5189_v40 }
 0x594   :  { %5604 = vmatpush3.bf16.msra.mxu1 %v726_v50 }
 0x652   :  { %v580_v54 = vpop.f32.mrb[8].mxu1 }
 0x653   :  { %v6880_v57 = vadd.f32 %v580_v54, %v6650_v0  ;;  %v5591_v58 = vpop.f32.mrb[9].mxu1 }
 0x654   :  { %v583_v56 = vpop.f32.mrb[10].mxu1 }
 0x655   :  { %v6883_v61 = vadd.f32 %v583_v56, %v6655_v1  ;;  %v5592_v62 = vpop.f32.mrb[11].mxu1  ;;  %v590_v60 = vmul.f32 %v6880_v57, %v6880_v57 }
 0x657   :  { %v592_v63 = vsel %vm77_vm0, %v590_v60, 0.0  ;;  %v591_v4 = vmul.f32 %v6883_v61, %v6883_v61 }
 0x658   :  { %593 = vadd.xlane.f32.xlu1 %v592_v63 }
 0x659   :  { %v595_v2 = vsel %vm77_vm0, %v591_v4, 0.0 }
 0x65a   :  { %596 = vadd.xlane.f32.xlu0 %v595_v2 }
 0x669   :  { %619 = vrot.lane.b32.xlu1 %v6684_v15, %s6565_s16 }
 0x670   :  { %621 = vrot.lane.b32.xlu0 %v6840_v25, %s6565_s16  ;;  %v5178_v25 = vld [vmem:[%s8445_s5 + $0x1] ss:$0 sm:$0xff] }
 0x6e5   :  { %v594_v0 = vpop.xlane.xlu1 %593 }
 0x6e6   :  { %v598_v1 = vmul.f32 0.03125, %v594_v0 }
 0x6e7   :  { %v597_v3 = vpop.xlane.xlu0 %596 }
 0x6e8   :  { %v600_v5 = vadd.f32 1e-05, %v598_v1  ;;  %v599_v6 = vmul.f32 0.03125, %v597_v3 }
 0x6e9   :  { %v620_v7 = vpop.permute.xlu1 %619 }
 0x6ea   :  { %6238 = vrsqrt.f32 %v600_v5  ;;  %v601_v8 = vadd.f32 1e-05, %v599_v6 }
 0x6eb   :  { %v622_v10 = vpop.permute.xlu0 %621 }
 0x6ec   :  { %6240 = vrsqrt.f32 %v601_v8  ;;  %v625_v11 = vsel %vm623_vm3, %v620_v7, %v622_v10  ;;  %635 = vmatprep.subr.bf16.mxu0 %v622_v10 }
 0x6ed   :  { %636 = vmatpush1.bf16.msra.mxu0 %v625_v11 }
 0x6f4   :  { %v6239_v12 = vpop.eup %6238 }
 0x6f5   :  { %v604_v15 = vmul.f32 %v6239_v12, %v6880_v57 }
 0x6f6   :  { %v6241_v16 = vpop.eup %6240 }
 0x6f7   :  { %v605_v23 = vmul.f32 %v6241_v16, %v6883_v61  ;;  %v610_v24 = vmul.f32 %v5178_v25, %v604_v15 }
 0x6f9   :  { %v611_v37 = vmul.f32 %v5178_v25, %v605_v23 }
 0x6fb   :  { %v612_v41 = vpack.c.bf16 %v611_v37, %v610_v24 }
 0x6fd   :  { %5179 = vmatmul.mubr.msk.bf16.vlgmr.msra.gmra.mrb[12].mxu0 %vm77_vm0, %v612_v41 }
 0x6fe   :  { %850 = vmatprep.mubr.bf16.mxu0 %v8454_v13 }
 0x7d0   :  { %v667_v51 = vpop.f32.mrb[12].mxu0 }
 0x7d1   :  { %694 = vrot.lane.b32.xlu1 %v667_v51, %s6564_s29  ;;  %v669_v53 = vpop.f32.mrb[13].mxu0  ;;  %v5180_v56 = vmul.f32 -1.442695, %v667_v51 }
 0x7d2   :  { %696 = vrot.lane.b32.xlu0 %v669_v53, %s6564_s29  ;;  %v671_v54 = vpop.f32.mrb[14].mxu0 }
 0x7d3   :  { %v673_v58 = vpop.f32.mrb[15].mxu0  ;;  %v5181_v62 = vmul.f32 -1.442695, %v671_v54  ;;  %6242 = vpow2.f32 %v5180_v56 }
 0x7d5   :  { %698 = vrot.lane.b32.xlu1 %v671_v54, %s6564_s29  ;;  %6244 = vpow2.f32 %v5181_v62 }
 0x7d6   :  { %700 = vrot.lane.b32.xlu0 %v673_v58, %s6564_s29 }
 0x7dd   :  { %v6243_v60 = vpop.eup %6242 }
 0x7de   :  { %v682_v4 = vadd.f32 1.0, %v6243_v60 }
 0x7df   :  { %v6245_v63 = vpop.eup %6244 }
 0x7e0   :  { %v683_v2 = vadd.f32 1.0, %v6245_v63  ;;  %6246 = vrcp.f32 %v682_v4  ;;  %v5195_v63 = vld [vmem:[%s8445_s5 + $0x2] ss:$0 sm:$0xff] }
 0x7e2   :  { %6248 = vrcp.f32 %v683_v2 }
 0x7ea   :  { %v6247_v1 = vpop.eup %6246 }
 0x7eb   :  { %v688_v8 = vmul.f32 %v6247_v1, %v667_v51 }
 0x7ec   :  { %v6249_v5 = vpop.eup %6248 }
 0x7ed   :  { %v689_v10 = vmul.f32 %v6249_v5, %v671_v54 }
 0x843   :  { %v695_v0 = vpop.permute.xlu1 %694 }
 0x844   :  { %v697_v3 = vpop.permute.xlu0 %696 }
 0x845   :  { %v702_v6 = vsel %vm77_vm0, %v695_v0, %v697_v3 }
 0x846   :  { %v706_v15 = vmul.f32 %v702_v6, %v688_v8 }
 0x847   :  { %v699_v7 = vpop.permute.xlu1 %698 }
 0x848   :  { %v701_v11 = vpop.permute.xlu0 %700 }
 0x849   :  { %v703_v12 = vsel %vm77_vm0, %v699_v7, %v701_v11 }
 0x84a   :  { %v707_v16 = vmul.f32 %v703_v12, %v689_v10 }
 0x84c   :  { %v720_v25 = vpack.c.bf16 %v707_v16, %v706_v15 }
 0x84e   :  { %5606 = vmatmul.mubr.msk.bf16.vlgmr.msra.gmra.mrb[12].mxu1 %vm623_vm3, %v720_v25 }
 0x921   :  { %v765_v23 = vpop.f32.mrb[12].mxu1 }
 0x922   :  { %v6952_v24 = vadd.f32 %v765_v23, %v6880_v57  ;;  %v5607_v37 = vpop.f32.mrb[13].mxu1  ;;  %v5184_v57 = vld [vmem:[%s8443_s3 + $0x68] sm:$0xff] }
 0x923   :  { %v768_v41 = vpop.f32.mrb[14].mxu1 }
 0x924   :  { %v6955_v44 = vadd.f32 %v768_v41, %v6883_v61  ;;  %v5608_v26 = vpop.f32.mrb[15].mxu1  ;;  %v788_v27 = vmul.f32 %v6952_v24, %v6952_v24  ;;  %v5187_v61 = vld [vmem:[%s8443_s3 + $0x80] sm:$0xff] }
 0x925   :  { %v6969_v31 = vpack.c.bf16 %v5187_v61, %v5184_v57 }
 0x926   :  { %v790_v28 = vsel %vm77_vm0, %v788_v27, 0.0  ;;  %v789_v29 = vmul.f32 %v6955_v44, %v6955_v44 }
 0x927   :  { %791 = vadd.xlane.f32.xlu1 %v790_v28  ;;  %818 = vmatprep.subr.bf16.mxu0 %v6969_v31 }
 0x928   :  { %v793_v30 = vsel %vm77_vm0, %v789_v29, 0.0  ;;  %819 = vmatpush1.bf16.msra.mxu0 %v811_v33 }
 0x929   :  { %794 = vadd.xlane.f32.xlu0 %v793_v30  ;;  %820 = vmatprep.subr.bf16.mxu0 %v6984_v38 }
 0x92c   :  { %821 = vmatpush1.bf16.msra.mxu0 %v813_v47 }
 0x9b4   :  { %v792_v49 = vpop.xlane.xlu1 %791 }
 0x9b5   :  { %v796_v50 = vmul.f32 0.03125, %v792_v49 }
 0x9b6   :  { %v795_v51 = vpop.xlane.xlu0 %794 }
 0x9b7   :  { %v798_v53 = vadd.f32 1e-05, %v796_v50  ;;  %v797_v54 = vmul.f32 0.03125, %v795_v51 }
 0x9b9   :  { %6250 = vrsqrt.f32 %v798_v53  ;;  %v799_v58 = vadd.f32 1e-05, %v797_v54 }
 0x9bb   :  { %6252 = vrsqrt.f32 %v799_v58 }
 0x9c3   :  { %v6251_v56 = vpop.eup %6250 }
 0x9c4   :  { %v802_v62 = vmul.f32 %v6251_v56, %v6952_v24 }
 0x9c5   :  { %v6253_v60 = vpop.eup %6252 }
 0x9c6   :  { %v803_v4 = vmul.f32 %v6253_v60, %v6955_v44  ;;  %v808_v2 = vmul.f32 %v5195_v63, %v802_v62 }
 0x9c8   :  { %v809_v0 = vmul.f32 %v5195_v63, %v803_v4 }
 0x9ca   :  { %v810_v1 = vpack.c.bf16 %v809_v0, %v808_v2 }
 0x9cc   :  { %5196 = vmatmul.mubr.msk.bf16.vlgmr.msra.gmra.mrb[16].mxu0 %vm77_vm0, %v810_v1 }
 0xa9f   :  { %v6999_v3 = vpop.f32.mrb[16].mxu0 }
 0xaa0   :  { %v854_v5 = vpop.f32.mrb[17].mxu0  ;;  %v863_v12 = vmul.f32 %v6999_v3, %v6740_v46  ;;  %v861_v27 = vmul.f32 %v6999_v3, %v6697_v19 }
 0xaa1   :  { %v877_v6 = vmul.f32 %v854_v5, %v6711_v21  ;;  %v7002_v7 = vpop.f32.mrb[18].mxu0  ;;  %v875_v21 = vmul.f32 %v6999_v3, %v6721_v36 }
 0xaa2   :  { %v858_v8 = vpop.f32.mrb[19].mxu0  ;;  %v1077_v10 = vpack.c.bf16 %v7002_v7, %v6999_v3  ;;  %v876_v16 = vmul.f32 %v7002_v7, %v6733_v42  ;;  %v864_v41 = vmul.f32 %v7002_v7, %v6751_v55  ;;  %v862_v57 = vmul.f32 %v7002_v7, %v6704_v20 }
 0xaa3   :  { %v878_v11 = vmul.f32 %v858_v8, %v6728_v39  ;;  %881 = vrot.lane.b32.xlu0 %v877_v6, %s6564_s29 }
 0xaa5   :  { %883 = vrot.lane.b32.xlu1 %v878_v11, %s6564_s29 }
 0xaa7   :  { %867 = vrot.lane.b32.xlu0 %v863_v12, %s6564_s29 }
 0xb15   :  { %v882_v15 = vpop.permute.xlu0 %881 }
 0xb16   :  { %v887_v23 = vadd.f32 %v882_v15, %v875_v21 }
 0xb17   :  { %v884_v25 = vpop.permute.xlu1 %883 }
 0xb18   :  { %v888_v37 = vadd.f32 %v884_v25, %v876_v16 }
 0xb19   :  { %v868_v26 = vpop.permute.xlu0 %867 }
 0xb1a   :  { %v901_v39 = vpack.c.bf16 %v888_v37, %v887_v23  ;;  %v873_v30 = vadd.f32 %v868_v26, %v861_v27 }
 0xb1c   :  { %903 = vrot.lane.b32.xlu1 %v901_v39, %s6565_s16  ;;  %v891_v9 = vmul.f32 %v873_v30, %v6767_v17  ;;  %v889_v33 = vmul.f32 %v873_v30, %v6765_v14  ;;  %v893_v19 = vmul.f32 %v873_v30, %v6769_v18  ;;  %v895_v34 = vmul.f32 %v873_v30, %v6771_v22 }
 0xb20   :  { %869 = vrot.lane.b32.xlu1 %v864_v41, %s6564_s29 }
 0xb8e   :  { %v904_v28 = vpop.permute.xlu1 %903 }
 0xb8f   :  { %6170 = vmatprep.subr.msk.bf16.mxu0 %vm77_vm0, %v904_v28  ;;  %v918_v29 = vsel %vm77_vm0, %v904_v28, 0 }
 0xb90   :  { %5610 = vmatpush3.bf16.xpose.msra.mxu0 %v918_v29 }
 0xb91   :  { %5629 = vmatprep.subr.bf16.mxu0 %v6568_v52 }
 0xb92   :  { %v870_v61 = vpop.permute.xlu1 %869 }
 0xb93   :  { %v874_v32 = vadd.f32 %v870_v61, %v862_v57 }
 0xb95   :  { %v892_v35 = vmul.f32 %v874_v32, %v6767_v17  ;;  %v890_v40 = vmul.f32 %v874_v32, %v6765_v14  ;;  %v894_v45 = vmul.f32 %v874_v32, %v6769_v18  ;;  %v896_v20 = vmul.f32 %v874_v32, %v6771_v22 }
 0xb97   :  { %v898_v47 = vpack.c.bf16 %v892_v35, %v891_v9  ;;  %v897_v49 = vpack.c.bf16 %v890_v40, %v889_v33  ;;  %v899_v50 = vpack.c.bf16 %v894_v45, %v893_v19  ;;  %v900_v51 = vpack.c.bf16 %v896_v20, %v895_v34 }
 0xb99   :  { %5611 = vmatprep.mubr.msk.bf16.mxu0 %vm77_vm0, %v897_v49 }
 0xb9a   :  { %5612 = vmatmul.mubr.msk.bf16.vlgmr.msra.gmra.mrb[20].mxu0 %vm77_vm0, %v898_v47 }
 0xb9b   :  { %5615 = vmatprep.mubr.msk.bf16.mxu0 %vm77_vm0, %v899_v50 }
 0xba2   :  { %5616 = vmatmul.mubr.msk.bf16.gmra.mrb[24].mxu0 %vm77_vm0, %v900_v51 }
 0xba3   :  { %5633 = vmatprep.mubr.msk.bf16.mxu0 %vm6569_vm2, %v6568_v52 }
 0xc6d   :  { %v5613_v53 = vpop.f32.mrb[20].mxu0 }
 0xc6e   :  { %v954_v54 = vpop.f32.mrb[21].mxu0  ;;  %v963_v60 = vadd.f32 %v5613_v53, %v6790_v43 }
 0xc6f   :  { %v955_v58 = vadd.f32 %v954_v54, %v6790_v43  ;;  %v5614_v56 = vpop.f32.mrb[22].mxu0 }
 0xc70   :  { %v957_v62 = vpop.f32.mrb[23].mxu0  ;;  %v966_v0 = vadd.f32 %v5614_v56, %v6795_v48  ;;  %v991_v5 = vsel %vm335_vm1, %v963_v60, -inf }
 0xc71   :  { %v958_v63 = vadd.f32 %v957_v62, %v6795_v48  ;;  %v985_v4 = vsel %vm335_vm1, %v955_v58, -inf }
 0xc72   :  { %986 = vmax.xlane.f32.xlu0 %v985_v4  ;;  %v994_v25 = vsel %vm335_vm1, %v966_v0, -inf }
 0xc73   :  { %v988_v2 = vsel %vm335_vm1, %v958_v63, -inf }
 0xc74   :  { %989 = vmax.xlane.f32.xlu1 %v988_v2 }
 0xc75   :  { %v5617_v1 = vpop.f32.mrb[24].mxu0 }
 0xc76   :  { %v970_v6 = vpop.f32.mrb[25].mxu0  ;;  %992 = vmax.xlane.f32.xlu0 %v991_v5  ;;  %v979_v15 = vadd.f32 %v5617_v1, %v6790_v43 }
 0xc77   :  { %v971_v8 = vadd.f32 %v970_v6, %v6790_v43  ;;  %v5618_v11 = vpop.f32.mrb[26].mxu0 }
 0xc78   :  { %v973_v12 = vpop.f32.mrb[27].mxu0  ;;  %v982_v23 = vadd.f32 %v5618_v11, %v6795_v48  ;;  %v1003_v37 = vsel %vm335_vm1, %v979_v15, -inf }
 0xc79   :  { %v974_v21 = vadd.f32 %v973_v12, %v6795_v48  ;;  %v997_v16 = vsel %vm335_vm1, %v971_v8, -inf }
 0xc7a   :  { %998 = vmax.xlane.f32.xlu1 %v997_v16  ;;  %995 = vmax.xlane.f32.xlu0 %v994_v25  ;;  %v1006_v41 = vsel %vm335_vm1, %v982_v23, -inf  ;;  %v5185_v16 = vld [vmem:[%s8443_s3 + $0x70] sm:$0xff]  ;;  %v5188_v25 = vld [vmem:[%s8443_s3 + $0x88] sm:$0xff] }
 0xc7b   :  { %v1000_v39 = vsel %vm335_vm1, %v974_v21, -inf }
 0xc7e   :  { %1004 = vmax.xlane.f32.xlu1 %v1003_v37  ;;  %1001 = vmax.xlane.f32.xlu0 %v1000_v39  ;;  %v1182_v37 = vpack.c.bf16 %v5188_v25, %v5185_v16  ;;  %v5194_v39 = vld [vmem:[%s8443_s3 + $0xb8] sm:$0xff] }
 0xc82   :  { %1007 = vmax.xlane.f32.xlu0 %v1006_v41 }
 0xcff   :  { %v987_v43 = vpop.xlane.xlu0 %986 }
 0xd00   :  { %v1009_v27 = vsub.f32 %v955_v58, %v987_v43 }
 0xd01   :  { %v990_v26 = vpop.xlane.xlu1 %989 }
 0xd02   :  { %v1010_v28 = vsub.f32 %v958_v63, %v990_v26  ;;  %v1017_v61 = vmul.f32 1.442695, %v1009_v27 }
 0xd03   :  { %v993_v29 = vpop.xlane.xlu0 %992 }
 0xd04   :  { %v1019_v30 = vmul.f32 1.442695, %v1010_v28  ;;  %v1011_v57 = vsub.f32 %v963_v60, %v993_v29 }
 0xd06   :  { %6254 = vpow2.f32 %v1019_v30  ;;  %v1021_v32 = vmul.f32 1.442695, %v1011_v57 }
 0xd07   :  { %v999_v48 = vpop.xlane.xlu1 %998  ;;  %v996_v9 = vpop.xlane.xlu0 %995 }
 0xd08   :  { %6256 = vpow2.f32 %v1021_v32  ;;  %v1012_v33 = vsub.f32 %v966_v0, %v996_v9  ;;  %v1013_v19 = vsub.f32 %v971_v8, %v999_v48 }
 0xd09   :  { %6258 = vpow2.f32 %v1017_v61 }
 0xd0a   :  { %v1023_v34 = vmul.f32 1.442695, %v1012_v33  ;;  %v1025_v47 = vmul.f32 1.442695, %v1013_v19 }
 0xd0b   :  { %v1005_v35 = vpop.xlane.xlu1 %1004  ;;  %v1002_v40 = vpop.xlane.xlu0 %1001 }
 0xd0c   :  { %v1015_v45 = vsub.f32 %v979_v15, %v1005_v35  ;;  %v1014_v20 = vsub.f32 %v974_v21, %v1002_v40  ;;  %6260 = vpow2.f32 %v1023_v34 }
 0xd0e   :  { %v1029_v49 = vmul.f32 1.442695, %v1015_v45  ;;  %v1027_v50 = vmul.f32 1.442695, %v1014_v20 }
 0xd0f   :  { %v1008_v51 = vpop.xlane.xlu0 %1007 }
 0xd10   :  { %v7057_v53 = vpop.eup %6254  ;;  %6262 = vpow2.f32 %v1029_v49  ;;  %v1016_v54 = vsub.f32 %v982_v23, %v1008_v51  ;;  %v5191_v23 = vld [vmem:[%s8443_s3 + $0xa0] sm:$0xff] }
 0xd11   :  { %6264 = vpow2.f32 %v1027_v50  ;;  %v1036_v58 = vsel %vm335_vm1, %v7057_v53, 0.0  ;;  %v7084_v41 = vpack.c.bf16 %v5194_v39, %v5191_v23 }
 0xd12   :  { %v6257_v56 = vpop.eup %6256  ;;  %6266 = vpow2.f32 %v1025_v47  ;;  %v1031_v62 = vmul.f32 1.442695, %v1016_v54  ;;  %1037 = vadd.xlane.f32.xlu0 %v1036_v58 }
 0xd13   :  { %v1039_v60 = vsel %vm335_vm1, %v6257_v56, 0.0  ;;  %v6259_v63 = vpop.eup %6258 }
 0xd14   :  { %6268 = vpow2.f32 %v1031_v62  ;;  %1040 = vadd.xlane.f32.xlu1 %v1039_v60  ;;  %v1033_v2 = vsel %vm335_vm1, %v6259_v63, 0.0 }
 0xd16   :  { %v6261_v4 = vpop.eup %6260 }
 0xd17   :  { %v1042_v0 = vsel %vm335_vm1, %v6261_v4, 0.0 }
 0xd18   :  { %1034 = vadd.xlane.f32.xlu1 %v1033_v2  ;;  %1043 = vadd.xlane.f32.xlu0 %v1042_v0 }
 0xd1a   :  { %v6263_v1 = vpop.eup %6262 }
 0xd1b   :  { %v6265_v5 = vpop.eup %6264  ;;  %v1051_v6 = vsel %vm335_vm1, %v6263_v1, 0.0 }
 0xd1c   :  { %v6267_v8 = vpop.eup %6266  ;;  %1052 = vadd.xlane.f32.xlu1 %v1051_v6  ;;  %v1048_v11 = vsel %vm335_vm1, %v6265_v5, 0.0 }
 0xd1d   :  { %1049 = vadd.xlane.f32.xlu0 %v1048_v11  ;;  %v1045_v15 = vsel %vm335_vm1, %v6267_v8, 0.0 }
 0xd1e   :  { %v6269_v12 = vpop.eup %6268 }
 0xd1f   :  { %v1054_v21 = vsel %vm335_vm1, %v6269_v12, 0.0 }
 0xd20   :  { %1046 = vadd.xlane.f32.xlu1 %v1045_v15 }
 0xd21   :  { %1055 = vadd.xlane.f32.xlu0 %v1054_v21 }
 0xd31   :  { %1079 = vrot.lane.b32.xlu1 %v1077_v10, %s6567_s27 }
 0xd35   :  { %1188 = vrot.lane.b32.xlu1 %v7084_v41, %s6564_s29 }
 0xd37   :  { %1186 = vrot.lane.b32.xlu0 %v1182_v37, %s6564_s29 }
 0xd39   :  { %1266 = vrot.lane.b32.xlu1 %v1182_v37, %s6565_s16 }
 0xd3b   :  { %1264 = vrot.lane.b32.xlu0 %v6969_v31, %s6565_s16 }
 0xd9f   :  { %v1038_v3 = vpop.xlane.xlu0 %1037 }
 0xda0   :  { %6270 = vrcp.f32 %v1038_v3 }
 0xda1   :  { %v1041_v7 = vpop.xlane.xlu1 %1040 }
 0xda2   :  { %6272 = vrcp.f32 %v1041_v7 }
 0xda5   :  { %v1035_v10 = vpop.xlane.xlu1 %1034  ;;  %v1044_v43 = vpop.xlane.xlu0 %1043 }
 0xda6   :  { %6274 = vrcp.f32 %v1035_v10 }
 0xda7   :  { %6276 = vrcp.f32 %v1044_v43 }
 0xda9   :  { %v1053_v26 = vpop.xlane.xlu1 %1052 }
 0xdaa   :  { %v1050_v27 = vpop.xlane.xlu0 %1049  ;;  %v6271_v29 = vpop.eup %6270 }
 0xdab   :  { %6278 = vrcp.f32 %v1050_v27  ;;  %v1066_v9 = vmul.f32 %v6271_v29, %v7057_v53 }
 0xdac   :  { %6280 = vrcp.f32 %v1053_v26  ;;  %v6273_v57 = vpop.eup %6272 }
 0xdad   :  { %v1047_v28 = vpop.xlane.xlu1 %1046  ;;  %v1067_v33 = vmul.f32 %v6273_v57, %v6257_v56 }
 0xdae   :  { %6282 = vrcp.f32 %v1047_v28  ;;  %v1056_v30 = vpop.xlane.xlu0 %1055 }
 0xdaf   :  { %6284 = vrcp.f32 %v1056_v30 }
 0xdb0   :  { %v6275_v31 = vpop.eup %6274 }
 0xdb1   :  { %v6277_v61 = vpop.eup %6276  ;;  %v1080_v32 = vpop.permute.xlu1 %1079  ;;  %v1065_v48 = vmul.f32 %v6275_v31, %v6259_v63 }
 0xdb2   :  { %v1068_v19 = vmul.f32 %v6277_v61, %v6261_v4  ;;  %5619 = vmatprep.subr.bf16.mxu1 %v1080_v32  ;;  %v1187_v56 = vpop.permute.xlu0 %1186 }
 0xdb3   :  { %5620 = vmatpush3.bf16.msra.mxu1 %v1080_v32  ;;  %v1073_v34 = vpack.c.bf16 %v1066_v9, %v1065_v48  ;;  %5630 = vmatpush3.bf16.msra.mxu0 %v1187_v56 }
 0xdb4   :  { %v1074_v35 = vpack.c.bf16 %v1068_v19, %v1067_v33  ;;  %5637 = vmatprep.subr.bf16.mxu1 %v6568_v52  ;;  %5631 = vmatprep.subr.bf16.mxu0 %v6568_v52 }
 0xdb5   :  { %5621 = vmatprep.mubr.msk.bf16.mxu1 %vm335_vm1, %v1073_v34  ;;  %v6279_v40 = vpop.eup %6278  ;;  %v1189_v62 = vpop.permute.xlu1 %1188 }
 0xdb6   :  { %5622 = vmatmul.mubr.msk.bf16.vlgmr.msra.gmra.mrb[16].mxu1 %vm335_vm1, %v1074_v35  ;;  %v6281_v45 = vpop.eup %6280  ;;  %v1070_v50 = vmul.f32 %v6279_v40, %v6265_v5  ;;  %v1265_v9 = vpop.permute.xlu0 %1264 }
 0xdb7   :  { %v1071_v51 = vmul.f32 %v6281_v45, %v6263_v1  ;;  %5632 = vmatpush3.bf16.msra.mxu0 %v1189_v62 }
 0xdb8   :  { %v6283_v20 = vpop.eup %6282 }
 0xdb9   :  { %v6285_v47 = vpop.eup %6284  ;;  %v1069_v49 = vmul.f32 %v6283_v20, %v6267_v8  ;;  %v1267_v48 = vpop.permute.xlu1 %1266 }
 0xdba   :  { %v1072_v53 = vmul.f32 %v6285_v47, %v6269_v12  ;;  %v1272_v33 = vsel %vm623_vm3, %v1265_v9, %v1267_v48  ;;  %1281 = vmatprep.subr.bf16.mxu0 %v1267_v48 }
 0xdbb   :  { %v1075_v54 = vpack.c.bf16 %v1070_v50, %v1069_v49 }
 0xdbc   :  { %v1076_v58 = vpack.c.bf16 %v1072_v53, %v1071_v51 }
 0xdbd   :  { %5625 = vmatprep.mubr.msk.bf16.mxu1 %vm335_vm1, %v1075_v54 }
 0xdbe   :  { %5626 = vmatmul.mubr.msk.bf16.gmra.mrb[20].mxu1 %vm335_vm1, %v1076_v58 }
 0xdbf   :  { %5649 = vmatprep.mubr.msk.bf16.mxu1 %vm6569_vm2, %v6568_v52 }
 0xe89   :  { %v5623_v60 = vpop.f32.mrb[16].mxu1 }
 0xe8a   :  { %v1161_v63 = vmul.f32 %v5623_v60, %v6767_v17  ;;  %v1128_v4 = vpop.f32.mrb[17].mxu1 }
 0xe8b   :  { %v1159_v2 = vmul.f32 %v1128_v4, %v6765_v14  ;;  %v5624_v0 = vpop.f32.mrb[18].mxu1 }
 0xe8c   :  { %v1168_v1 = vsel %vm77_vm0, %v1161_v63, 0.0  ;;  %v1162_v5 = vmul.f32 %v5624_v0, %v6767_v17  ;;  %v1131_v6 = vpop.f32.mrb[19].mxu1 }
 0xe8d   :  { %v1167_v8 = vsel %vm77_vm0, %v1159_v2, 0.0  ;;  %v1160_v11 = vmul.f32 %v1131_v6, %v6765_v14 }
 0xe8e   :  { %v1169_v12 = vadd.f32 %v1168_v1, %v1167_v8  ;;  %v1175_v15 = vsel %vm77_vm0, %v1162_v5, 0.0  ;;  %v5210_v8 = vld [vmem:[%s8444_s4 + $0x60] sm:$0xff] }
 0xe8f   :  { %v1174_v21 = vsel %vm77_vm0, %v1160_v11, 0.0  ;;  %v5211_v11 = vld [vmem:[%s8444_s4 + $0x68] sm:$0xff] }
 0xe90   :  { %v1176_v16 = vadd.f32 %v1175_v15, %v1174_v21  ;;  %v1370_v15 = vpack.c.bf16 %v5211_v11, %v5210_v8  ;;  %v5213_v21 = vld [vmem:[%s8444_s4 + $0x78] sm:$0xff]  ;;  %v5223_v11 = vld [vmem:[%s8443_s3 + $0xc0] sm:$0xff] }
 0xe91   :  { %v5627_v25 = vpop.f32.mrb[20].mxu1 }
 0xe92   :  { %v1144_v23 = vpop.f32.mrb[21].mxu1  ;;  %v1165_v37 = vmul.f32 %v5627_v25, %v6771_v22  ;;  %5638 = vmatpush3.bf16.msra.mxu1 %v1370_v15  ;;  %v5214_v25 = vld [vmem:[%s8444_s4 + $0x80] sm:$0xff] }
 0xe93   :  { %v1163_v39 = vmul.f32 %v1144_v23, %v6769_v18  ;;  %v5628_v3 = vpop.f32.mrb[22].mxu1  ;;  %5639 = vmatprep.subr.bf16.mxu1 %v6568_v52  ;;  %v5215_v23 = vld [vmem:[%s8444_s4 + $0x88] sm:$0xff] }
 0xe94   :  { %v1147_v7 = vpop.f32.mrb[23].mxu1  ;;  %v1166_v43 = vmul.f32 %v5628_v3, %v6771_v22  ;;  %v1172_v28 = vsel %vm77_vm0, %v1165_v37, 0.0  ;;  %v1372_v37 = vpack.c.bf16 %v5215_v23, %v5214_v25  ;;  %v5217_v3 = vld [vmem:[%s8444_s4 + $0x98] sm:$0xff]  ;;  %v5229_v25 = vld [vmem:[%s8443_s3 + $0xf0] sm:$0xff] }
 0xe95   :  { %v1170_v10 = vsel %vm77_vm0, %v1163_v39, 0.0  ;;  %v1164_v26 = vmul.f32 %v1147_v7, %v6769_v18  ;;  %v5216_v39 = vld [vmem:[%s8444_s4 + $0x90] sm:$0xff] }
 0xe96   :  { %v1171_v27 = vadd.f32 %v1170_v10, %v1169_v12  ;;  %v1179_v31 = vsel %vm77_vm0, %v1166_v43, 0.0  ;;  %v5212_v12 = vld [vmem:[%s8444_s4 + $0x70] sm:$0xff]  ;;  %v1373_v7 = vpack.c.bf16 %v5217_v3, %v5216_v39  ;;  %v5218_v10 = vld [vmem:[%s8444_s4 + $0xa0] sm:$0xff]  ;;  %v5219_v43 = vld [vmem:[%s8444_s4 + $0xa8] sm:$0xff] }
 0xe97   :  { %v1177_v29 = vsel %vm77_vm0, %v1164_v26, 0.0  ;;  %v1374_v26 = vpack.c.bf16 %v5219_v43, %v5218_v10 }
 0xe98   :  { %v1173_v30 = vadd.f32 %v1172_v28, %v1171_v27  ;;  %v1178_v57 = vadd.f32 %v1177_v29, %v1176_v16  ;;  %v1371_v16 = vpack.c.bf16 %v5213_v21, %v5212_v12  ;;  %v5220_v27 = vld [vmem:[%s8444_s4 + $0xb0] sm:$0xff]  ;;  %v5221_v28 = vld [vmem:[%s8444_s4 + $0xb8] sm:$0xff] }
 0xe99   :  { %v1375_v29 = vpack.c.bf16 %v5221_v28, %v5220_v27  ;;  %v5226_v12 = vld [vmem:[%s8443_s3 + $0xd8] sm:$0xff] }
 0xe9a   :  { %v1180_v61 = vadd.f32 %v1179_v31, %v1178_v57  ;;  %5640 = vmatpush3.bf16.msra.mxu1 %v1371_v16  ;;  %v1459_v15 = vpack.c.bf16 %v5226_v12, %v5223_v11  ;;  %v5230_v21 = vld [vmem:[%s8443_s3 + $0xf8] sm:$0xff]  ;;  %v5233_v16 = vld [vmem:[%s8443_s3 + $0x110] sm:$0xff] }
 0xe9b   :  { %5641 = vmatprep.subr.bf16.mxu1 %v6568_v52  ;;  %v7228_v23 = vpack.c.bf16 %v5233_v16, %v5230_v21 }
 0xe9c   :  { %v1181_v32 = vpack.c.bf16 %v1180_v61, %v1173_v30 }
 0xe9e   :  { %5634 = vmatmul.mubr.msk.bf16.vlgmr.msra.gmra.mrb[28].mxu0 %vm77_vm0, %v1181_v32  ;;  %5642 = vmatpush3.bf16.msra.mxu1 %v1372_v37  ;;  %v5232_v37 = vld [vmem:[%s8443_s3 + $0x108] sm:$0xff] }
 0xe9f   :  { %1313 = vmatprep.mubr.bf16.mxu0 %v8454_v13  ;;  %1282 = vmatpush1.bf16.msra.mxu0 %v1272_v33  ;;  %v1461_v39 = vpack.c.bf16 %v5232_v37, %v5229_v25 }
 0xea0   :  { %5643 = vmatprep.subr.bf16.mxu1 %v6568_v52 }
 0xea2   :  { %5644 = vmatpush3.bf16.msra.mxu1 %v1373_v7 }
 0xea3   :  { %5645 = vmatprep.subr.bf16.mxu1 %v6568_v52 }
 0xea6   :  { %5646 = vmatpush3.bf16.msra.mxu1 %v1374_v26 }
 0xea7   :  { %5647 = vmatprep.subr.bf16.mxu1 %v6568_v52 }
 0xeaa   :  { %5648 = vmatpush3.bf16.msra.mxu1 %v1375_v29 }
 0xf71   :  { %v1229_v19 = vpop.f32.mrb[28].mxu0 }
 0xf72   :  { %v7121_v34 = vadd.f32 %v1229_v19, %v6952_v24  ;;  %v5635_v35 = vpop.f32.mrb[29].mxu0 }
 0xf73   :  { %v1232_v40 = vpop.f32.mrb[30].mxu0 }
 0xf74   :  { %v7124_v45 = vadd.f32 %v1232_v40, %v6955_v44  ;;  %v5636_v20 = vpop.f32.mrb[31].mxu0  ;;  %v1239_v47 = vmul.f32 %v7121_v34, %v7121_v34 }
 0xf76   :  { %v1241_v49 = vsel %vm77_vm0, %v1239_v47, 0.0  ;;  %v1240_v50 = vmul.f32 %v7124_v45, %v7124_v45 }
 0xf77   :  { %1242 = vadd.xlane.f32.xlu1 %v1241_v49 }
 0xf78   :  { %v1244_v51 = vsel %vm77_vm0, %v1240_v50, 0.0 }
 0xf79   :  { %1245 = vadd.xlane.f32.xlu0 %v1244_v51 }
 0xf88   :  { %1268 = vrot.lane.b32.xlu1 %v6984_v38, %s6565_s16 }
 0xf8f   :  { %1270 = vrot.lane.b32.xlu0 %v7084_v41, %s6565_s16  ;;  %v5206_v41 = vld [vmem:[%s8445_s5 + $0x3] ss:$0 sm:$0xff] }
0x1004   :  { %v1243_v24 = vpop.xlane.xlu1 %1242 }
0x1005   :  { %v1247_v44 = vmul.f32 0.03125, %v1243_v24 }
0x1006   :  { %v1246_v53 = vpop.xlane.xlu0 %1245 }
0x1007   :  { %v1249_v54 = vadd.f32 1e-05, %v1247_v44  ;;  %v1248_v58 = vmul.f32 0.03125, %v1246_v53 }
0x1008   :  { %v1269_v56 = vpop.permute.xlu1 %1268 }
0x1009   :  { %6286 = vrsqrt.f32 %v1249_v54  ;;  %v1250_v62 = vadd.f32 1e-05, %v1248_v58 }
0x100a   :  { %v1271_v60 = vpop.permute.xlu0 %1270 }
0x100b   :  { %6288 = vrsqrt.f32 %v1250_v62  ;;  %1283 = vmatprep.subr.bf16.mxu0 %v1271_v60  ;;  %v1273_v63 = vsel %vm623_vm3, %v1269_v56, %v1271_v60 }
0x100c   :  { %1284 = vmatpush1.bf16.msra.mxu0 %v1273_v63 }
0x1013   :  { %v6287_v4 = vpop.eup %6286 }
0x1014   :  { %v1253_v38 = vmul.f32 %v6287_v4, %v7121_v34 }
0x1015   :  { %v6289_v2 = vpop.eup %6288 }
0x1016   :  { %v1254_v0 = vmul.f32 %v6289_v2, %v7124_v45  ;;  %v1259_v1 = vmul.f32 %v5206_v41, %v1253_v38 }
0x1018   :  { %v1260_v5 = vmul.f32 %v5206_v41, %v1254_v0 }
0x101a   :  { %v1261_v6 = vpack.c.bf16 %v1260_v5, %v1259_v1 }
0x101c   :  { %5207 = vmatmul.mubr.msk.bf16.vlgmr.msra.gmra.mrb[32].mxu0 %vm77_vm0, %v1261_v6 }
0x101d   :  { %1498 = vmatprep.mubr.bf16.mxu0 %v8454_v13 }
0x10ef   :  { %v1315_v30 = vpop.f32.mrb[32].mxu0 }
0x10f0   :  { %1342 = vrot.lane.b32.xlu1 %v1315_v30, %s6564_s29  ;;  %v1317_v57 = vpop.f32.mrb[33].mxu0  ;;  %v5208_v32 = vmul.f32 -1.442695, %v1315_v30 }
0x10f1   :  { %1344 = vrot.lane.b32.xlu0 %v1317_v57, %s6564_s29  ;;  %v1319_v31 = vpop.f32.mrb[34].mxu0  ;;  %v5235_v57 = vld [vmem:[%s8445_s5 + $0x4] ss:$0 sm:$0xff] }
0x10f2   :  { %v1321_v61 = vpop.f32.mrb[35].mxu0  ;;  %v5209_v48 = vmul.f32 -1.442695, %v1319_v31  ;;  %6290 = vpow2.f32 %v5208_v32 }
0x10f4   :  { %1346 = vrot.lane.b32.xlu1 %v1319_v31, %s6564_s29  ;;  %6292 = vpow2.f32 %v5209_v48 }
0x10f5   :  { %1348 = vrot.lane.b32.xlu0 %v1321_v61, %s6564_s29 }
0x10fc   :  { %v6291_v9 = vpop.eup %6290 }
0x10fd   :  { %v1330_v19 = vadd.f32 1.0, %v6291_v9  ;;  %v1726_v9 = vld [vmem:[%s8446_s6] sm:$0xff] }
0x10fe   :  { %v6293_v33 = vpop.eup %6292 }
0x10ff   :  { %v1331_v35 = vadd.f32 1.0, %v6293_v33  ;;  %6294 = vrcp.f32 %v1330_v19  ;;  %v7243_v33 = vpack.c.bf16 %v1726_v9, %v1726_v9 }
0x1101   :  { %6296 = vrcp.f32 %v1331_v35  ;;  %6172 = vmatprep.subr.msk.bf16.mxu1 %vm77_vm0, %v7243_v33  ;;  %v1729_v19 = vsel %vm77_vm0, %v7243_v33, 0 }
0x1109   :  { %v6295_v20 = vpop.eup %6294 }
0x110a   :  { %v1336_v24 = vmul.f32 %v6295_v20, %v1315_v30  ;;  %v6506_v20 = vld [vmem:[%s8441_s1 + $0x10] sm:$0xff] }
0x110b   :  { %v6297_v49 = vpop.eup %6296 }
0x110c   :  { %v1337_v44 = vmul.f32 %v6297_v49, %v1319_v31 }
0x1162   :  { %v1343_v40 = vpop.permute.xlu1 %1342 }
0x1163   :  { %v1345_v47 = vpop.permute.xlu0 %1344 }
0x1164   :  { %v1350_v50 = vsel %vm77_vm0, %v1343_v40, %v1345_v47 }
0x1165   :  { %v1354_v58 = vmul.f32 %v1350_v50, %v1336_v24  ;;  %v6507_v24 = vld [vmem:[%s8441_s1 + $0x18] sm:$0xff] }
0x1166   :  { %v1347_v51 = vpop.permute.xlu1 %1346 }
0x1167   :  { %v1349_v53 = vpop.permute.xlu0 %1348 }
0x1168   :  { %v1351_v54 = vsel %vm77_vm0, %v1347_v51, %v1349_v53 }
0x1169   :  { %v1355_v56 = vmul.f32 %v1351_v54, %v1337_v44 }
0x116b   :  { %v1369_v62 = vpack.c.bf16 %v1355_v56, %v1354_v58 }
0x116d   :  { %5650 = vmatmul.mubr.msk.bf16.vlgmr.msra.gmra.mrb[24].mxu1 %vm623_vm3, %v1369_v62 }
0x116e   :  { %5664 = vmatpush3.bf16.xpose.msra.mxu1 %v1729_v19 }
0x116f   :  { %5693 = vmatprep.subr.bf16.mxu1 %v6568_v52 }
0x1240   :  { %v1413_v60 = vpop.f32.mrb[24].mxu1 }
0x1241   :  { %v7193_v63 = vadd.f32 %v1413_v60, %v7121_v34  ;;  %v5651_v4 = vpop.f32.mrb[25].mxu1  ;;  %v5224_v34 = vld [vmem:[%s8443_s3 + $0xc8] sm:$0xff] }
0x1242   :  { %v1416_v38 = vpop.f32.mrb[26].mxu1 }
0x1243   :  { %v7196_v2 = vadd.f32 %v1416_v38, %v7124_v45  ;;  %v5652_v41 = vpop.f32.mrb[27].mxu1  ;;  %v1436_v0 = vmul.f32 %v7193_v63, %v7193_v63  ;;  %v5227_v45 = vld [vmem:[%s8443_s3 + $0xe0] sm:$0xff] }
0x1244   :  { %v7210_v8 = vpack.c.bf16 %v5227_v45, %v5224_v34 }
0x1245   :  { %v1438_v1 = vsel %vm77_vm0, %v1436_v0, 0.0  ;;  %v1437_v5 = vmul.f32 %v7196_v2, %v7196_v2 }
0x1246   :  { %1439 = vadd.xlane.f32.xlu1 %v1438_v1  ;;  %1466 = vmatprep.subr.bf16.mxu0 %v7210_v8 }
0x1247   :  { %v1441_v6 = vsel %vm77_vm0, %v1437_v5, 0.0  ;;  %1467 = vmatpush1.bf16.msra.mxu0 %v1459_v15  ;;  %v6509_v5 = vld [vmem:[%s8441_s1] sm:$0xff] }
0x1248   :  { %1442 = vadd.xlane.f32.xlu0 %v1441_v6  ;;  %1468 = vmatprep.subr.bf16.mxu0 %v7228_v23 }
0x124b   :  { %1469 = vmatpush1.bf16.msra.mxu0 %v1461_v39 }
0x12d3   :  { %v1440_v3 = vpop.xlane.xlu1 %1439 }
0x12d4   :  { %v1444_v7 = vmul.f32 0.03125, %v1440_v3 }
0x12d5   :  { %v1443_v10 = vpop.xlane.xlu0 %1442 }
0x12d6   :  { %v1446_v43 = vadd.f32 1e-05, %v1444_v7  ;;  %v1445_v26 = vmul.f32 0.03125, %v1443_v10 }
0x12d8   :  { %6298 = vrsqrt.f32 %v1446_v43  ;;  %v1447_v27 = vadd.f32 1e-05, %v1445_v26 }
0x12da   :  { %6300 = vrsqrt.f32 %v1447_v27 }
0x12e2   :  { %v6299_v28 = vpop.eup %6298 }
0x12e3   :  { %v1450_v29 = vmul.f32 %v6299_v28, %v7193_v63 }
0x12e4   :  { %v6301_v30 = vpop.eup %6300 }
0x12e5   :  { %v1451_v31 = vmul.f32 %v6301_v30, %v7196_v2  ;;  %v1456_v61 = vmul.f32 %v5235_v57, %v1450_v29 }
0x12e7   :  { %v1457_v32 = vmul.f32 %v5235_v57, %v1451_v31 }
0x12e9   :  { %v1458_v48 = vpack.c.bf16 %v1457_v32, %v1456_v61 }
0x12eb   :  { %5236 = vmatmul.mubr.msk.bf16.vlgmr.msra.gmra.mrb[36].mxu0 %vm77_vm0, %v1458_v48 }
0x13be   :  { %v7250_v35 = vpop.f32.mrb[36].mxu0 }
0x13bf   :  { %v1502_v40 = vpop.f32.mrb[37].mxu0  ;;  %v1511_v54 = vmul.f32 %v7250_v35, %v6740_v46  ;;  %v1523_v56 = vmul.f32 %v7250_v35, %v6721_v36  ;;  %v1509_v36 = vmul.f32 %v6509_v5, %v7250_v35 }
0x13c0   :  { %v1525_v47 = vmul.f32 %v6506_v20, %v1502_v40  ;;  %v7255_v49 = vpop.f32.mrb[38].mxu0 }
0x13c1   :  { %v1725_v50 = vpack.c.bf16 %v7255_v49, %v7250_v35  ;;  %v1506_v51 = vpop.f32.mrb[39].mxu0  ;;  %v1512_v53 = vmul.f32 %v7255_v49, %v6751_v55  ;;  %v1524_v62 = vmul.f32 %v7255_v49, %v6733_v42  ;;  %v6508_v55 = vld [vmem:[%s8441_s1 + $0x8] sm:$0xff] }
0x13c2   :  { %v1526_v44 = vmul.f32 %v6507_v24, %v1506_v51  ;;  %1529 = vrot.lane.b32.xlu0 %v1525_v47, %s6564_s29  ;;  %v1510_v41 = vmul.f32 %v6508_v55, %v7255_v49 }
0x13c4   :  { %1531 = vrot.lane.b32.xlu1 %v1526_v44, %s6564_s29 }
0x13c6   :  { %1517 = vrot.lane.b32.xlu0 %v1512_v53, %s6564_s29  ;;  %v6510_v53 = vld [vmem:[%s8441_s1 + $0x60] sm:$0xff] }
0x13c8   :  { %1515 = vrot.lane.b32.xlu1 %v1511_v54, %s6564_s29 }
0x1434   :  { %v1530_v58 = vpop.permute.xlu0 %1529 }
0x1435   :  { %v1535_v4 = vadd.f32 %v1530_v58, %v1523_v56 }
0x1436   :  { %v1532_v60 = vpop.permute.xlu1 %1531 }
0x1437   :  { %v1536_v38 = vadd.f32 %v1532_v60, %v1524_v62  ;;  %v6511_v60 = vld [vmem:[%s8441_s1 + $0x68] sm:$0xff] }
0x1438   :  { %v1518_v0 = vpop.permute.xlu0 %1517 }
0x1439   :  { %v1549_v46 = vpack.c.bf16 %v1536_v38, %v1535_v4  ;;  %v1522_v1 = vadd.f32 %v1518_v0, %v1510_v41 }
0x143a   :  { %v1516_v6 = vpop.permute.xlu1 %1515 }
0x143b   :  { %v1521_v42 = vadd.f32 %v1516_v6, %v1509_v36  ;;  %1551 = vrot.lane.b32.xlu1 %v1549_v46, %s6565_s16  ;;  %v1540_v34 = vmul.f32 %v1522_v1, %v6767_v17  ;;  %v1538_v45 = vmul.f32 %v1522_v1, %v6765_v14  ;;  %v1542_v11 = vmul.f32 %v1522_v1, %v6769_v18 }
0x143c   :  { %v1544_v12 = vmul.f32 %v1522_v1, %v6771_v22 }
0x143d   :  { %v1539_v15 = vmul.f32 %v1521_v42, %v6767_v17  ;;  %v1537_v21 = vmul.f32 %v1521_v42, %v6765_v14  ;;  %v1541_v16 = vmul.f32 %v1521_v42, %v6769_v18  ;;  %v1543_v25 = vmul.f32 %v1521_v42, %v6771_v22 }
0x143f   :  { %v1546_v37 = vpack.c.bf16 %v1540_v34, %v1539_v15  ;;  %v1545_v39 = vpack.c.bf16 %v1538_v45, %v1537_v21  ;;  %v1547_v3 = vpack.c.bf16 %v1542_v11, %v1541_v16  ;;  %v1548_v7 = vpack.c.bf16 %v1544_v12, %v1543_v25 }
0x1441   :  { %5655 = vmatprep.mubr.msk.bf16.mxu0 %vm77_vm0, %v1545_v39  ;;  %5665 = vmatprep.mubr.msk.bf16.mxu1 %vm77_vm0, %v1545_v39 }
0x1442   :  { %5666 = vmatmul.mubr.msk.bf16.vlgmr.msra.gmra.mrb[28].mxu1 %vm77_vm0, %v1546_v37 }
0x1443   :  { %5669 = vmatprep.mubr.msk.bf16.mxu1 %vm77_vm0, %v1547_v3 }
0x144a   :  { %5670 = vmatmul.mubr.msk.bf16.gmra.mrb[32].mxu1 %vm77_vm0, %v1548_v7 }
0x144b   :  { %5697 = vmatprep.mubr.msk.bf16.mxu1 %vm6569_vm2, %v6568_v52 }
0x14ad   :  { %v1552_v10 = vpop.permute.xlu1 %1551 }
0x14ae   :  { %6171 = vmatprep.subr.msk.bf16.mxu0 %vm77_vm0, %v1552_v10  ;;  %v1566_v43 = vsel %vm77_vm0, %v1552_v10, 0 }
0x14af   :  { %5654 = vmatpush3.bf16.xpose.msra.mxu0 %v1566_v43 }
0x14b6   :  { %5656 = vmatmul.mubr.msk.bf16.vlgmr.msra.gmra.mrb[40].mxu0 %vm77_vm0, %v1546_v37 }
0x14b7   :  { %5659 = vmatprep.mubr.msk.bf16.mxu0 %vm77_vm0, %v1547_v3 }
0x14be   :  { %5660 = vmatmul.mubr.msk.bf16.gmra.mrb[44].mxu0 %vm77_vm0, %v1548_v7 }
0x1515   :  { %v7303_v26 = vpop.f32.mrb[28].mxu1 }
0x1516   :  { %v7305_v27 = vpop.f32.mrb[29].mxu1  ;;  %v1803_v31 = vsel %vm1796_vm4, %v7303_v26, -inf }
0x1517   :  { %v7307_v28 = vpop.f32.mrb[30].mxu1  ;;  %v1797_v29 = vsel %vm1796_vm4, %v7305_v27, -inf }
0x1518   :  { %1798 = vmax.xlane.f32.xlu0 %v1797_v29  ;;  %v1768_v30 = vpop.f32.mrb[31].mxu1  ;;  %v1806_v9 = vsel %vm1796_vm4, %v7307_v28, -inf }
0x1519   :  { %v1800_v57 = vsel %vm1796_vm4, %v1768_v30, -inf }
0x151a   :  { %1801 = vmax.xlane.f32.xlu1 %v1800_v57 }
0x151c   :  { %1804 = vmax.xlane.f32.xlu0 %v1803_v31 }
0x151d   :  { %v7314_v61 = vpop.f32.mrb[32].mxu1 }
0x151e   :  { %v7316_v32 = vpop.f32.mrb[33].mxu1  ;;  %v1815_v20 = vsel %vm1796_vm4, %v7314_v61, -inf }
0x151f   :  { %v7318_v48 = vpop.f32.mrb[34].mxu1  ;;  %v1809_v19 = vsel %vm1796_vm4, %v7316_v32, -inf }
0x1520   :  { %1807 = vmax.xlane.f32.xlu0 %v1806_v9  ;;  %1810 = vmax.xlane.f32.xlu1 %v1809_v19  ;;  %v7324_v40 = vpop.f32.mrb[35].mxu1  ;;  %v1818_v51 = vsel %vm1796_vm4, %v7318_v48, -inf }
0x1521   :  { %v1812_v47 = vsel %vm1796_vm4, %v7324_v40, -inf }
0x1524   :  { %1816 = vmax.xlane.f32.xlu1 %v1815_v20  ;;  %1813 = vmax.xlane.f32.xlu0 %v1812_v47 }
0x1528   :  { %1819 = vmax.xlane.f32.xlu0 %v1818_v51 }
0x1589   :  { %v5657_v24 = vpop.f32.mrb[40].mxu0 }
0x158a   :  { %v1602_v44 = vpop.f32.mrb[41].mxu0  ;;  %v7337_v62 = vadd.f32 %v6510_v53, %v5657_v24 }
0x158b   :  { %v7335_v54 = vadd.f32 %v6510_v53, %v1602_v44  ;;  %v5658_v58 = vpop.f32.mrb[42].mxu0 }
0x158c   :  { %v1605_v56 = vpop.f32.mrb[43].mxu0  ;;  %v7346_v55 = vadd.f32 %v6511_v60, %v5658_v58  ;;  %v1639_v46 = vsel %vm335_vm1, %v7337_v62, -inf }
0x158d   :  { %v7342_v4 = vadd.f32 %v6511_v60, %v1605_v56  ;;  %v1633_v38 = vsel %vm335_vm1, %v7335_v54, -inf }
0x158e   :  { %1634 = vmax.xlane.f32.xlu1 %v1633_v38  ;;  %v1642_v6 = vsel %vm335_vm1, %v7346_v55, -inf }
0x158f   :  { %v1636_v41 = vsel %vm335_vm1, %v7342_v4, -inf }
0x1590   :  { %1637 = vmax.xlane.f32.xlu0 %v1636_v41 }
0x1591   :  { %v5661_v0 = vpop.f32.mrb[44].mxu0 }
0x1592   :  { %v1618_v1 = vpop.f32.mrb[45].mxu0  ;;  %1640 = vmax.xlane.f32.xlu1 %v1639_v46  ;;  %v7356_v34 = vadd.f32 %v6510_v53, %v5661_v0 }
0x1593   :  { %v7352_v5 = vadd.f32 %v6510_v53, %v1618_v1  ;;  %v5662_v36 = vpop.f32.mrb[46].mxu0 }
0x1594   :  { %v1621_v42 = vpop.f32.mrb[47].mxu0  ;;  %1643 = vmax.xlane.f32.xlu0 %v1642_v6  ;;  %v7362_v12 = vadd.f32 %v6511_v60, %v5662_v36  ;;  %v1651_v21 = vsel %vm335_vm1, %v7356_v34, -inf }
0x1595   :  { %v7358_v45 = vadd.f32 %v6511_v60, %v1621_v42  ;;  %v1645_v11 = vsel %vm335_vm1, %v7352_v5, -inf }
0x1596   :  { %1646 = vmax.xlane.f32.xlu1 %v1645_v11  ;;  %v1654_v16 = vsel %vm335_vm1, %v7362_v12, -inf }
0x1597   :  { %v1648_v15 = vsel %vm335_vm1, %v7358_v45, -inf }
0x1598   :  { %1649 = vmax.xlane.f32.xlu0 %v1648_v15 }
0x159a   :  { %1652 = vmax.xlane.f32.xlu1 %v1651_v21 }
0x159c   :  { %1655 = vmax.xlane.f32.xlu0 %v1654_v16  ;;  %v1890_v16 = vrot.slane %v7243_v33, 2 }
0x159e   :  { %6173 = vmatprep.subr.msk.bf16.mxu0 %vm1903_vm5, %v1890_v16 }
0x15a5   :  { %v1799_v25 = vpop.xlane.xlu0 %1798 }
0x15a6   :  { %v1821_v39 = vsub.f32 %v7305_v27, %v1799_v25  ;;  %v1905_v25 = vsel %vm1903_vm5, %v1890_v16, 0 }
0x15a7   :  { %v1802_v37 = vpop.xlane.xlu1 %1801  ;;  %5674 = vmatpush3.bf16.msra.mxu0 %v1905_v25 }
0x15a8   :  { %v1822_v3 = vsub.f32 %v1768_v30, %v1802_v37  ;;  %v1829_v29 = vmul.f32 1.442695, %v1821_v39 }
0x15a9   :  { %v1805_v7 = vpop.xlane.xlu0 %1804 }
0x15aa   :  { %v1831_v10 = vmul.f32 1.442695, %v1822_v3  ;;  %v1823_v43 = vsub.f32 %v7303_v26, %v1805_v7 }
0x15ac   :  { %6302 = vpow2.f32 %v1831_v10  ;;  %v1833_v57 = vmul.f32 1.442695, %v1823_v43 }
0x15ad   :  { %v1808_v31 = vpop.xlane.xlu0 %1807  ;;  %v1811_v9 = vpop.xlane.xlu1 %1810 }
0x15ae   :  { %6304 = vpow2.f32 %v1833_v57  ;;  %v1824_v19 = vsub.f32 %v7307_v28, %v1808_v31  ;;  %v1825_v47 = vsub.f32 %v7316_v32, %v1811_v9 }
0x15af   :  { %6306 = vpow2.f32 %v1829_v29 }
0x15b0   :  { %v1835_v20 = vmul.f32 1.442695, %v1824_v19  ;;  %v1837_v26 = vmul.f32 1.442695, %v1825_v47 }
0x15b1   :  { %v1817_v51 = vpop.xlane.xlu1 %1816  ;;  %v1814_v24 = vpop.xlane.xlu0 %1813 }
0x15b2   :  { %6308 = vpow2.f32 %v1835_v20  ;;  %v1827_v27 = vsub.f32 %v7314_v61, %v1817_v51  ;;  %v1826_v30 = vsub.f32 %v7324_v40, %v1814_v24 }
0x15b4   :  { %v1841_v44 = vmul.f32 1.442695, %v1827_v27  ;;  %v1839_v53 = vmul.f32 1.442695, %v1826_v30 }
0x15b5   :  { %v1820_v58 = vpop.xlane.xlu0 %1819 }
0x15b6   :  { %v7376_v56 = vpop.eup %6302  ;;  %6310 = vpow2.f32 %v1841_v44  ;;  %v1828_v28 = vsub.f32 %v7318_v48, %v1820_v58 }
0x15b7   :  { %6312 = vpow2.f32 %v1839_v53  ;;  %v1848_v32 = vsel %vm1796_vm4, %v7376_v56, 0.0 }
0x15b8   :  { %v7381_v60 = vpop.eup %6304  ;;  %6314 = vpow2.f32 %v1837_v26  ;;  %v1843_v38 = vmul.f32 1.442695, %v1828_v28  ;;  %1849 = vadd.xlane.f32.xlu0 %v1848_v32 }
0x15b9   :  { %v1851_v61 = vsel %vm1796_vm4, %v7381_v60, 0.0  ;;  %v7385_v40 = vpop.eup %6306 }
0x15ba   :  { %6316 = vpow2.f32 %v1843_v38  ;;  %1852 = vadd.xlane.f32.xlu1 %v1851_v61  ;;  %v1845_v48 = vsel %vm1796_vm4, %v7385_v40, 0.0 }
0x15bc   :  { %v7387_v41 = vpop.eup %6308 }
0x15bd   :  { %v1854_v0 = vsel %vm1796_vm4, %v7387_v41, 0.0 }
0x15be   :  { %1846 = vadd.xlane.f32.xlu1 %v1845_v48  ;;  %1855 = vadd.xlane.f32.xlu0 %v1854_v0 }
0x15c0   :  { %v7393_v46 = vpop.eup %6310 }
0x15c1   :  { %v7395_v1 = vpop.eup %6312  ;;  %v1863_v36 = vsel %vm1796_vm4, %v7393_v46, 0.0 }
0x15c2   :  { %v7399_v6 = vpop.eup %6314  ;;  %1864 = vadd.xlane.f32.xlu1 %v1863_v36  ;;  %v1860_v42 = vsel %vm1796_vm4, %v7395_v1, 0.0 }
0x15c3   :  { %1861 = vadd.xlane.f32.xlu0 %v1860_v42  ;;  %v1857_v15 = vsel %vm1796_vm4, %v7399_v6, 0.0 }
0x15c4   :  { %v7403_v11 = vpop.eup %6316 }
0x15c5   :  { %v1866_v21 = vsel %vm1796_vm4, %v7403_v11, 0.0 }
0x15c6   :  { %1858 = vadd.xlane.f32.xlu1 %v1857_v15 }
0x15c7   :  { %1867 = vadd.xlane.f32.xlu0 %v1866_v21 }
0x161b   :  { %v1635_v37 = vpop.xlane.xlu1 %1634 }
0x161c   :  { %v1657_v39 = vsub.f32 %v7335_v54, %v1635_v37 }
0x161d   :  { %v1638_v3 = vpop.xlane.xlu0 %1637 }
0x161e   :  { %v1658_v7 = vsub.f32 %v7342_v4, %v1638_v3  ;;  %v1665_v57 = vmul.f32 1.442695, %v1657_v39 }
0x161f   :  { %v1641_v10 = vpop.xlane.xlu1 %1640 }
0x1620   :  { %v1667_v43 = vmul.f32 1.442695, %v1658_v7  ;;  %v1659_v29 = vsub.f32 %v7337_v62, %v1641_v10 }
0x1621   :  { %v1644_v31 = vpop.xlane.xlu0 %1643 }
0x1622   :  { %6318 = vpow2.f32 %v1667_v43  ;;  %v1669_v33 = vmul.f32 1.442695, %v1659_v29  ;;  %v1660_v9 = vsub.f32 %v7346_v55, %v1644_v31 }
0x1623   :  { %v1647_v19 = vpop.xlane.xlu1 %1646 }
0x1624   :  { %6320 = vpow2.f32 %v1669_v33  ;;  %v1671_v20 = vmul.f32 1.442695, %v1660_v9  ;;  %v1661_v47 = vsub.f32 %v7352_v5, %v1647_v19 }
0x1625   :  { %6322 = vpow2.f32 %v1665_v57  ;;  %v1650_v54 = vpop.xlane.xlu0 %1649 }
0x1626   :  { %6324 = vpow2.f32 %v1671_v20  ;;  %v1662_v4 = vsub.f32 %v7358_v45, %v1650_v54  ;;  %v1673_v27 = vmul.f32 1.442695, %v1661_v47  ;;  %v5225_v47 = vld [vmem:[%s8443_s3 + $0xd0] sm:$0xff]  ;;  %v5228_v54 = vld [vmem:[%s8443_s3 + $0xe8] sm:$0xff] }
0x1627   :  { %v1653_v51 = vpop.xlane.xlu1 %1652 }
0x1628   :  { %v1675_v24 = vmul.f32 1.442695, %v1662_v4  ;;  %v1663_v62 = vsub.f32 %v7356_v34, %v1653_v51 }
0x1629   :  { %v1656_v30 = vpop.xlane.xlu0 %1655 }
0x162a   :  { %6326 = vpow2.f32 %v1675_v24  ;;  %v1677_v26 = vmul.f32 1.442695, %v1663_v62  ;;  %v1664_v55 = vsub.f32 %v7362_v12, %v1656_v30 }
0x162c   :  { %v7420_v44 = vpop.eup %6318  ;;  %6328 = vpow2.f32 %v1677_v26  ;;  %v1679_v53 = vmul.f32 1.442695, %v1664_v55 }
0x162d   :  { %6330 = vpow2.f32 %v1673_v27  ;;  %v1684_v5 = vsel %vm335_vm1, %v7420_v44, 0.0 }
0x162e   :  { %v7424_v58 = vpop.eup %6320  ;;  %6332 = vpow2.f32 %v1679_v53  ;;  %1685 = vadd.xlane.f32.xlu0 %v1684_v5 }
0x162f   :  { %v7426_v45 = vpop.eup %6322  ;;  %v1687_v34 = vsel %vm335_vm1, %v7424_v58, 0.0 }
0x1630   :  { %v7430_v28 = vpop.eup %6324  ;;  %1688 = vadd.xlane.f32.xlu1 %v1687_v34  ;;  %v1681_v32 = vsel %vm335_vm1, %v7426_v45, 0.0 }
0x1631   :  { %v1690_v12 = vsel %vm335_vm1, %v7430_v28, 0.0 }
0x1632   :  { %1691 = vadd.xlane.f32.xlu0 %v1690_v12 }
0x1634   :  { %v7436_v38 = vpop.eup %6326  ;;  %1682 = vadd.xlane.f32.xlu1 %v1681_v32 }
0x1635   :  { %v1696_v61 = vsel %vm335_vm1, %v7436_v38, 0.0 }
0x1636   :  { %v7440_v48 = vpop.eup %6328  ;;  %1697 = vadd.xlane.f32.xlu0 %v1696_v61 }
0x1637   :  { %v7442_v0 = vpop.eup %6330  ;;  %v1699_v36 = vsel %vm335_vm1, %v7440_v48, 0.0 }
0x1638   :  { %v7446_v42 = vpop.eup %6332  ;;  %1700 = vadd.xlane.f32.xlu1 %v1699_v36  ;;  %v1693_v21 = vsel %vm335_vm1, %v7442_v0, 0.0 }
0x1639   :  { %v1702_v15 = vsel %vm335_vm1, %v7446_v42, 0.0 }
0x163a   :  { %1703 = vadd.xlane.f32.xlu0 %v1702_v15 }
0x163c   :  { %1694 = vadd.xlane.f32.xlu1 %v1693_v21 }
0x1645   :  { %v1850_v16 = vpop.xlane.xlu0 %1849 }
0x1646   :  { %6334 = vrcp.f32 %v1850_v16 }
0x1647   :  { %v1853_v25 = vpop.xlane.xlu1 %1852 }
0x1648   :  { %6336 = vrcp.f32 %v1853_v25 }
0x164b   :  { %v1847_v37 = vpop.xlane.xlu1 %1846  ;;  %v1856_v39 = vpop.xlane.xlu0 %1855 }
0x164c   :  { %6338 = vrcp.f32 %v1847_v37 }
0x164d   :  { %6340 = vrcp.f32 %v1856_v39  ;;  %1973 = vrot.lane.b32.xlu1 %v1725_v50, %s6567_s27 }
0x164f   :  { %v1865_v3 = vpop.xlane.xlu1 %1864 }
0x1650   :  { %v1862_v7 = vpop.xlane.xlu0 %1861  ;;  %v6335_v43 = vpop.eup %6334 }
0x1651   :  { %6342 = vrcp.f32 %v1862_v7  ;;  %v1878_v19 = vmul.f32 %v6335_v43, %v7376_v56  ;;  %v2076_v56 = vpack.c.bf16 %v5228_v54, %v5225_v47 }
0x1652   :  { %6344 = vrcp.f32 %v1865_v3  ;;  %v6337_v57 = vpop.eup %6336 }
0x1653   :  { %v1859_v10 = vpop.xlane.xlu1 %1858  ;;  %v1879_v20 = vmul.f32 %v6337_v57, %v7381_v60  ;;  %v5234_v60 = vld [vmem:[%s8443_s3 + $0x118] sm:$0xff]  ;;  %2080 = vrot.lane.b32.xlu0 %v2076_v56, %s6564_s29 }
0x1654   :  { %6346 = vrcp.f32 %v1859_v10  ;;  %v1868_v29 = vpop.xlane.xlu0 %1867 }
0x1655   :  { %6348 = vrcp.f32 %v1868_v29 }
0x1656   :  { %v6339_v31 = vpop.eup %6338 }
0x1657   :  { %v6341_v33 = vpop.eup %6340  ;;  %v1877_v9 = vmul.f32 %v6339_v31, %v7385_v40  ;;  %v5231_v40 = vld [vmem:[%s8443_s3 + $0x100] sm:$0xff]  ;;  %2158 = vrot.lane.b32.xlu0 %v7210_v8, %s6565_s16 }
0x1658   :  { %v1880_v35 = vmul.f32 %v6341_v33, %v7387_v41  ;;  %v7474_v4 = vpack.c.bf16 %v5234_v60, %v5231_v40 }
0x1659   :  { %v1885_v49 = vpack.c.bf16 %v1878_v19, %v1877_v9 }
0x165a   :  { %v1886_v50 = vpack.c.bf16 %v1880_v35, %v1879_v20  ;;  %2082 = vrot.lane.b32.xlu1 %v7474_v4, %s6564_s29 }
0x165b   :  { %5675 = vmatprep.mubr.msk.bf16.mxu0 %vm1796_vm4, %v1885_v49  ;;  %v6343_v41 = vpop.eup %6342 }
0x165c   :  { %5676 = vmatmul.mubr.msk.bf16.vlgmr.msra.gmra.mrb[48].mxu0 %vm1796_vm4, %v1886_v50  ;;  %v6345_v51 = vpop.eup %6344  ;;  %v1882_v30 = vmul.f32 %v6343_v41, %v7395_v1 }
0x165d   :  { %v1883_v26 = vmul.f32 %v6345_v51, %v7393_v46 }
0x165e   :  { %v6347_v24 = vpop.eup %6346  ;;  %2160 = vrot.lane.b32.xlu1 %v2076_v56, %s6565_s16 }
0x165f   :  { %v6349_v62 = vpop.eup %6348  ;;  %v1881_v27 = vmul.f32 %v6347_v24, %v7399_v6 }
0x1660   :  { %v1884_v55 = vmul.f32 %v6349_v62, %v7403_v11 }
0x1661   :  { %v1887_v53 = vpack.c.bf16 %v1882_v30, %v1881_v27 }
0x1662   :  { %v1888_v5 = vpack.c.bf16 %v1884_v55, %v1883_v26 }
0x1663   :  { %5679 = vmatprep.mubr.msk.bf16.mxu0 %vm1796_vm4, %v1887_v53 }
0x1664   :  { %5680 = vmatmul.mubr.msk.bf16.gmra.mrb[52].mxu0 %vm1796_vm4, %v1888_v5 }
0x16bb   :  { %v1686_v34 = vpop.xlane.xlu0 %1685 }
0x16bc   :  { %6350 = vrcp.f32 %v1686_v34 }
0x16bd   :  { %v1689_v12 = vpop.xlane.xlu1 %1688 }
0x16bf   :  { %v1692_v6 = vpop.xlane.xlu0 %1691 }
0x16c0   :  { %6352 = vrcp.f32 %v1692_v6 }
0x16c1   :  { %6354 = vrcp.f32 %v1689_v12  ;;  %v1683_v46 = vpop.xlane.xlu1 %1682 }
0x16c2   :  { %6356 = vrcp.f32 %v1683_v46 }
0x16c3   :  { %v1698_v1 = vpop.xlane.xlu0 %1697 }
0x16c4   :  { %6358 = vrcp.f32 %v1698_v1 }
0x16c5   :  { %v1701_v11 = vpop.xlane.xlu1 %1700 }
0x16c6   :  { %v6351_v8 = vpop.eup %6350 }
0x16c7   :  { %v1704_v32 = vpop.xlane.xlu0 %1703  ;;  %v1714_v39 = vmul.f32 %v6351_v8, %v7420_v44 }
0x16c8   :  { %6360 = vrcp.f32 %v1704_v32 }
0x16c9   :  { %6362 = vrcp.f32 %v1701_v11  ;;  %v1695_v61 = vpop.xlane.xlu1 %1694 }
0x16ca   :  { %v6353_v36 = vpop.eup %6352  ;;  %6364 = vrcp.f32 %v1695_v61 }
0x16cb   :  { %v6355_v15 = vpop.eup %6354  ;;  %v1716_v16 = vmul.f32 %v6353_v36, %v7430_v28  ;;  %v2081_v19 = vpop.permute.xlu0 %2080 }
0x16cc   :  { %v6357_v21 = vpop.eup %6356  ;;  %v1715_v3 = vmul.f32 %v6355_v15, %v7424_v58  ;;  %5694 = vmatpush3.bf16.msra.mxu1 %v2081_v19 }
0x16cd   :  { %v1974_v25 = vpop.permute.xlu1 %1973  ;;  %v1713_v37 = vmul.f32 %v6357_v21, %v7426_v45  ;;  %5695 = vmatprep.subr.bf16.mxu1 %v6568_v52 }
0x16ce   :  { %5683 = vmatprep.subr.bf16.mxu0 %v1974_v25  ;;  %v1722_v10 = vpack.c.bf16 %v1716_v16, %v1715_v3  ;;  %v6359_v43 = vpop.eup %6358 }
0x16cf   :  { %5684 = vmatpush3.bf16.msra.mxu0 %v1974_v25  ;;  %v1721_v7 = vpack.c.bf16 %v1714_v39, %v1713_v37  ;;  %v1718_v58 = vmul.f32 %v6359_v43, %v7436_v38  ;;  %v2159_v15 = vpop.permute.xlu0 %2158 }
0x16d0   :  { %5717 = vmatprep.subr.bf16.mxu0 %v6568_v52 }
0x16d1   :  { %5685 = vmatprep.mubr.msk.bf16.mxu0 %vm335_vm1, %v1721_v7 }
0x16d2   :  { %v6361_v29 = vpop.eup %6360  ;;  %5686 = vmatmul.mubr.msk.bf16.vlgmr.msra.gmra.mrb[48].mxu0 %vm335_vm1, %v1722_v10 }
0x16d3   :  { %v6363_v28 = vpop.eup %6362  ;;  %v1720_v45 = vmul.f32 %v6361_v29, %v7446_v42  ;;  %v2083_v42 = vpop.permute.xlu1 %2082 }
0x16d4   :  { %v6365_v57 = vpop.eup %6364  ;;  %v1719_v31 = vmul.f32 %v6363_v28, %v7440_v48  ;;  %5696 = vmatpush3.bf16.msra.mxu1 %v2083_v42  ;;  %v5254_v42 = vld [vmem:[%s8445_s5 + $0x5] ss:$0 sm:$0xff] }
0x16d5   :  { %v1717_v44 = vmul.f32 %v6365_v57, %v7442_v0 }
0x16d6   :  { %v1724_v9 = vpack.c.bf16 %v1720_v45, %v1719_v31 }
0x16d7   :  { %v1723_v33 = vpack.c.bf16 %v1718_v58, %v1717_v44  ;;  %v2161_v36 = vpop.permute.xlu1 %2160 }
0x16d8   :  { %v2166_v21 = vsel %vm623_vm3, %v2159_v15, %v2161_v36  ;;  %2175 = vmatprep.subr.bf16.mxu1 %v2161_v36 }
0x16d9   :  { %5689 = vmatprep.mubr.msk.bf16.mxu0 %vm335_vm1, %v1723_v33 }
0x16da   :  { %5690 = vmatmul.mubr.msk.bf16.gmra.mrb[52].mxu0 %vm335_vm1, %v1724_v9 }
0x16db   :  { %5721 = vmatprep.mubr.msk.bf16.mxu0 %vm6569_vm2, %v6568_v52 }
0x17a5   :  { %v5687_v0 = vpop.f32.mrb[48].mxu0 }
0x17a6   :  { %v2055_v38 = vmul.f32 %v5687_v0, %v6767_v17  ;;  %v2022_v20 = vpop.f32.mrb[49].mxu0 }
0x17a7   :  { %v2053_v48 = vmul.f32 %v2022_v20, %v6765_v14  ;;  %v5688_v35 = vpop.f32.mrb[50].mxu0 }
0x17a8   :  { %v2062_v49 = vsel %vm77_vm0, %v2055_v38, 0.0  ;;  %v2056_v50 = vmul.f32 %v5688_v35, %v6767_v17  ;;  %v2025_v47 = vpop.f32.mrb[51].mxu0  ;;  %v5258_v35 = vld [vmem:[%s8444_s4 + $0xc0] sm:$0xff] }
0x17a9   :  { %v2061_v54 = vsel %vm77_vm0, %v2053_v48, 0.0  ;;  %v2054_v40 = vmul.f32 %v2025_v47, %v6765_v14 }
0x17aa   :  { %v2063_v56 = vadd.f32 %v2062_v49, %v2061_v54  ;;  %v2069_v60 = vsel %vm77_vm0, %v2056_v50, 0.0  ;;  %v5259_v49 = vld [vmem:[%s8444_s4 + $0xc8] sm:$0xff]  ;;  %v5260_v50 = vld [vmem:[%s8444_s4 + $0xd0] sm:$0xff]  ;;  %v5261_v54 = vld [vmem:[%s8444_s4 + $0xd8] sm:$0xff] }
0x17ab   :  { %v2068_v41 = vsel %vm77_vm0, %v2054_v40, 0.0  ;;  %v2264_v47 = vpack.c.bf16 %v5259_v49, %v5258_v35  ;;  %v2265_v40 = vpack.c.bf16 %v5261_v54, %v5260_v50 }
0x17ac   :  { %v2070_v51 = vadd.f32 %v2069_v60, %v2068_v41  ;;  %v5263_v60 = vld [vmem:[%s8444_s4 + $0xe8] sm:$0xff] }
0x17ad   :  { %v5691_v24 = vpop.f32.mrb[52].mxu0 }
0x17ae   :  { %v2038_v62 = vpop.f32.mrb[53].mxu0  ;;  %v2059_v27 = vmul.f32 %v5691_v24, %v6771_v22  ;;  %v5265_v24 = vld [vmem:[%s8444_s4 + $0xf8] sm:$0xff] }
0x17af   :  { %v2057_v30 = vmul.f32 %v2038_v62, %v6769_v18  ;;  %v5692_v26 = vpop.f32.mrb[54].mxu0 }
0x17b0   :  { %v2041_v55 = vpop.f32.mrb[55].mxu0  ;;  %v2060_v5 = vmul.f32 %v5692_v26, %v6771_v22  ;;  %v2066_v6 = vsel %vm77_vm0, %v2059_v27, 0.0  ;;  %v5266_v27 = vld [vmem:[%s8444_s4 + $0x100] sm:$0xff] }
0x17b1   :  { %v2064_v53 = vsel %vm77_vm0, %v2057_v30, 0.0  ;;  %v2058_v34 = vmul.f32 %v2041_v55, %v6769_v18  ;;  %v5267_v30 = vld [vmem:[%s8444_s4 + $0x108] sm:$0xff]  ;;  %v5268_v55 = vld [vmem:[%s8444_s4 + $0x110] sm:$0xff] }
0x17b2   :  { %v2065_v12 = vadd.f32 %v2064_v53, %v2063_v56  ;;  %v2073_v32 = vsel %vm77_vm0, %v2060_v5, 0.0  ;;  %v5262_v56 = vld [vmem:[%s8444_s4 + $0xe0] sm:$0xff]  ;;  %v2268_v26 = vpack.c.bf16 %v5267_v30, %v5266_v27  ;;  %v5269_v53 = vld [vmem:[%s8444_s4 + $0x118] sm:$0xff] }
0x17b3   :  { %v2071_v46 = vsel %vm77_vm0, %v2058_v34, 0.0  ;;  %v2266_v41 = vpack.c.bf16 %v5263_v60, %v5262_v56  ;;  %v2269_v5 = vpack.c.bf16 %v5269_v53, %v5268_v55 }
0x17b4   :  { %v2067_v1 = vadd.f32 %v2066_v6, %v2065_v12  ;;  %v2072_v11 = vadd.f32 %v2071_v46, %v2070_v51  ;;  %v5264_v51 = vld [vmem:[%s8444_s4 + $0xf0] sm:$0xff] }
0x17b5   :  { %v2267_v62 = vpack.c.bf16 %v5265_v24, %v5264_v51 }
0x17b6   :  { %v2074_v8 = vadd.f32 %v2073_v32, %v2072_v11 }
0x17b8   :  { %v2075_v61 = vpack.c.bf16 %v2074_v8, %v2067_v1 }
0x17ba   :  { %5698 = vmatmul.mubr.msk.bf16.vlgmr.msra.gmra.mrb[36].mxu1 %vm77_vm0, %v2075_v61 }
0x17bb   :  { %2207 = vmatprep.mubr.bf16.mxu1 %v8454_v13  ;;  %2176 = vmatpush1.bf16.msra.mxu1 %v2166_v21 }
0x188d   :  { %v2123_v16 = vpop.f32.mrb[36].mxu1 }
0x188e   :  { %v7524_v25 = vadd.f32 %v2123_v16, %v7193_v63  ;;  %v5699_v37 = vpop.f32.mrb[37].mxu1 }
0x188f   :  { %v2126_v39 = vpop.f32.mrb[38].mxu1 }
0x1890   :  { %v7527_v3 = vadd.f32 %v2126_v39, %v7196_v2  ;;  %v5700_v7 = vpop.f32.mrb[39].mxu1  ;;  %v2133_v10 = vmul.f32 %v7524_v25, %v7524_v25 }
0x1892   :  { %v2135_v43 = vsel %vm77_vm0, %v2133_v10, 0.0  ;;  %v2134_v29 = vmul.f32 %v7527_v3, %v7527_v3 }
0x1893   :  { %2136 = vadd.xlane.f32.xlu1 %v2135_v43 }
0x1894   :  { %v2138_v28 = vsel %vm77_vm0, %v2134_v29, 0.0 }
0x1895   :  { %2139 = vadd.xlane.f32.xlu0 %v2138_v28 }
0x18a4   :  { %2162 = vrot.lane.b32.xlu1 %v7228_v23, %s6565_s16 }
0x18ab   :  { %2164 = vrot.lane.b32.xlu0 %v7474_v4, %s6565_s16 }
0x1920   :  { %v2137_v63 = vpop.xlane.xlu1 %2136 }
0x1921   :  { %v2141_v2 = vmul.f32 0.03125, %v2137_v63 }
0x1922   :  { %v2140_v57 = vpop.xlane.xlu0 %2139 }
0x1923   :  { %v2143_v45 = vadd.f32 1e-05, %v2141_v2  ;;  %v2142_v44 = vmul.f32 0.03125, %v2140_v57 }
0x1924   :  { %v2163_v58 = vpop.permute.xlu1 %2162 }
0x1925   :  { %6366 = vrsqrt.f32 %v2143_v45  ;;  %v2144_v31 = vadd.f32 1e-05, %v2142_v44  ;;  %v2316_v45 = vld [vmem:[%s8447_s7] sm:$0xff]  ;;  %v2317_v44 = vld [vmem:[%s8447_s7 + $0x8] sm:$0xff] }
0x1926   :  { %v2165_v33 = vpop.permute.xlu0 %2164 }
0x1927   :  { %6368 = vrsqrt.f32 %v2144_v31  ;;  %2177 = vmatprep.subr.bf16.mxu1 %v2165_v33  ;;  %v2167_v9 = vsel %vm623_vm3, %v2163_v58, %v2165_v33  ;;  %v7606_v58 = vpack.c.bf16 %v2317_v44, %v2316_v45  ;;  %v2318_v31 = vld [vmem:[%s8447_s7 + $0x10] sm:$0xff]  ;;  %v2319_v33 = vld [vmem:[%s8447_s7 + $0x18] sm:$0xff] }
0x1928   :  { %2178 = vmatpush1.bf16.msra.mxu1 %v2167_v9  ;;  %v7618_v9 = vpack.c.bf16 %v2319_v33, %v2318_v31 }
0x1929   :  { %5701 = vmatprep.subr.bf16.mxu1 %v6568_v52  ;;  %5718 = vmatpush3.bf16.msra.mxu0 %v7606_v58 }
0x192a   :  { %5719 = vmatprep.subr.bf16.mxu0 %v6568_v52 }
0x192d   :  { %5720 = vmatpush3.bf16.msra.mxu0 %v7618_v9 }
0x192e   :  { %5725 = vmatprep.subr.bf16.mxu0 %v6568_v52 }
0x192f   :  { %v6367_v23 = vpop.eup %6366 }
0x1930   :  { %v2147_v19 = vmul.f32 %v6367_v23, %v7524_v25 }
0x1931   :  { %v6369_v4 = vpop.eup %6368 }
0x1932   :  { %v2148_v0 = vmul.f32 %v6369_v4, %v7527_v3  ;;  %v2153_v38 = vmul.f32 %v5254_v42, %v2147_v19 }
0x1934   :  { %v2154_v20 = vmul.f32 %v5254_v42, %v2148_v0  ;;  %v2323_v42 = vld [vmem:[%s8441_s1 + $0x50] sm:$0xff] }
0x1936   :  { %v2155_v48 = vpack.c.bf16 %v2154_v20, %v2153_v38  ;;  %v2324_v38 = vld [vmem:[%s8441_s1 + $0x58] sm:$0xff] }
0x1938   :  { %5255 = vmatmul.mubr.msk.bf16.vlgmr.msra.gmra.mrb[40].mxu1 %vm77_vm0, %v2155_v48 }
0x1939   :  { %5713 = vmatprep.mubr.msk.bf16.mxu1 %vm6569_vm2, %v6568_v52  ;;  %5702 = vmatpush3.bf16.msra.mxu1 %v2264_v47 }
0x193a   :  { %5703 = vmatprep.subr.bf16.mxu1 %v6568_v52 }
0x193d   :  { %5704 = vmatpush3.bf16.msra.mxu1 %v2265_v40 }
0x193e   :  { %5705 = vmatprep.subr.bf16.mxu1 %v6568_v52 }
0x1941   :  { %5706 = vmatpush3.bf16.msra.mxu1 %v2266_v41 }
0x1942   :  { %5707 = vmatprep.subr.bf16.mxu1 %v6568_v52 }
0x1945   :  { %5708 = vmatpush3.bf16.msra.mxu1 %v2267_v62 }
0x1946   :  { %5709 = vmatprep.subr.bf16.mxu1 %v6568_v52 }
0x1949   :  { %5710 = vmatpush3.bf16.msra.mxu1 %v2268_v26 }
0x194a   :  { %5711 = vmatprep.subr.bf16.mxu1 %v6568_v52 }
0x194d   :  { %5712 = vmatpush3.bf16.msra.mxu1 %v2269_v5 }
0x194e   :  { %5733 = vmatprep.subr.bf16.mxu1 %v6568_v52 }
0x1a0b   :  { %v2209_v34 = vpop.f32.mrb[40].mxu1 }
0x1a0c   :  { %2236 = vrot.lane.b32.xlu1 %v2209_v34, %s6564_s29  ;;  %v2211_v12 = vpop.f32.mrb[41].mxu1  ;;  %v5256_v1 = vmul.f32 -1.442695, %v2209_v34 }
0x1a0d   :  { %2238 = vrot.lane.b32.xlu0 %v2211_v12, %s6564_s29  ;;  %v2213_v6 = vpop.f32.mrb[42].mxu1 }
0x1a0e   :  { %v2215_v46 = vpop.f32.mrb[43].mxu1  ;;  %v5257_v11 = vmul.f32 -1.442695, %v2213_v6  ;;  %6370 = vpow2.f32 %v5256_v1 }
0x1a10   :  { %2240 = vrot.lane.b32.xlu1 %v2213_v6, %s6564_s29  ;;  %6372 = vpow2.f32 %v5257_v11 }
0x1a11   :  { %2242 = vrot.lane.b32.xlu0 %v2215_v46, %s6564_s29 }
0x1a14   :  { %2383 = vrot.lane.b32.xlu1 %v7606_v58, %s6567_s27 }
0x1a15   :  { %2385 = vrot.lane.b32.xlu0 %v7618_v9, %s6567_s27 }
0x1a18   :  { %v6371_v32 = vpop.eup %6370  ;;  %2997 = vrot.lane.b32.xlu1 %v7606_v58, %s6565_s16 }
0x1a19   :  { %v2224_v61 = vadd.f32 1.0, %v6371_v32  ;;  %2999 = vrot.lane.b32.xlu0 %v7618_v9, %s6565_s16 }
0x1a1a   :  { %v6373_v8 = vpop.eup %6372 }
0x1a1b   :  { %v2225_v36 = vadd.f32 1.0, %v6373_v8  ;;  %6374 = vrcp.f32 %v2224_v61  ;;  %v2320_v61 = vld [vmem:[%s8448_s8] sm:$0xff] }
0x1a1c   :  { %3050 = vrot.lane.b32.xlu1 %v7606_v58, %s6571_s19 }
0x1a1d   :  { %6376 = vrcp.f32 %v2225_v36  ;;  %v2321_v36 = vld [vmem:[%s8448_s8 + $0x8] sm:$0xff]  ;;  %3052 = vrot.lane.b32.xlu0 %v7618_v9, %s6571_s19 }
0x1a25   :  { %v6375_v21 = vpop.eup %6374 }
0x1a26   :  { %v2230_v10 = vmul.f32 %v6375_v21, %v2209_v34  ;;  %v6570_v21 = vmov 0.0|0.0  }
0x1a27   :  { %v6377_v37 = vpop.eup %6376 }
0x1a28   :  { %v2231_v43 = vmul.f32 %v6377_v37, %v2213_v6 }
0x1a7e   :  { %v2237_v15 = vpop.permute.xlu1 %2236 }
0x1a7f   :  { %v2239_v16 = vpop.permute.xlu0 %2238 }
0x1a80   :  { %v2244_v39 = vsel %vm77_vm0, %v2237_v15, %v2239_v16  ;;  %v2440_v15 = vpack.c.bf16 %v2321_v36, %v2320_v61  ;;  %v2533_v16 = vld [vmem:[%s8441_s1 + $0x8c] sm:$0x3] }
0x1a81   :  { %v2248_v63 = vmul.f32 %v2244_v39, %v2230_v10  ;;  %v2535_v37 = vsel %vm335_vm1, %v2533_v16, 0  ;;  %v3201_v16 = vld [vmem:[%s8442_s2 + $0x10] sm:$0xff] }
0x1a82   :  { %v2241_v7 = vpop.permute.xlu1 %2240  ;;  %v2604_v39 = vand.u32 4294901760, %v2535_v37  ;;  %3104 = vrot.lane.b32.xlu1 %v2440_v15, %s6572_s20  ;;  %s6573_s20 = smov 1  }
0x1a83   :  { %v2243_v29 = vpop.permute.xlu0 %2242 }
0x1a84   :  { %v2245_v28 = vsel %vm77_vm0, %v2241_v7, %v2243_v29  ;;  %v2605_v10 = vsub.f32 %v2535_v37, %v2604_v39  ;;  %v3202_v37 = vld [vmem:[%s8442_s2 + $0x18] sm:$0xff] }
0x1a85   :  { %v2249_v2 = vmul.f32 %v2245_v28, %v2231_v43 }
0x1a86   :  { %v2384_v56 = vpop.permute.xlu1 %2383 }
0x1a87   :  { %v2263_v57 = vpack.c.bf16 %v2249_v2, %v2248_v63  ;;  %v2386_v53 = vpop.permute.xlu0 %2385 }
0x1a89   :  { %5714 = vmatmul.mubr.msk.bf16.vlgmr.msra.gmra.mrb[44].mxu1 %vm623_vm3, %v2263_v57  ;;  %v2606_v57 = vand.u32 4294901760, %v2605_v10 }
0x1a8a   :  { %5735 = vmatprep.mubr.msk.bf16.mxu1 %vm6569_vm2, %v6568_v52  ;;  %5734 = vmatpush3.bf16.msra.mxu1 %v2440_v15 }
0x1a8b   :  { %6015 = vmatprep.subr.bf16.mxu1 %v6570_v21  ;;  %v2607_v33 = vsub.f32 %v2605_v10, %v2606_v57 }
0x1b5c   :  { %v2307_v23 = vpop.f32.mrb[44].mxu1 }
0x1b5d   :  { %v2314_v19 = vadd.f32 %v2307_v23, %v7524_v25  ;;  %v5715_v4 = vpop.f32.mrb[45].mxu1  ;;  %v2608_v23 = vand.u32 4294901760, %v2607_v33 }
0x1b5e   :  { %v2310_v0 = vpop.f32.mrb[46].mxu1  ;;  %v2486_v4 = vld [vmem:[%s8450_s10 + $0x8] sm:$0xff] }
0x1b5f   :  { %v2538_v20 = vand.u32 4294901760, %v2314_v19  ;;  %3803 = vst.msk [vmem:[#allocation2 + $0x4] sm:$0xff] %vm77_vm0, %v2314_v19  ;;  %v2315_v48 = vadd.f32 %v2310_v0, %v7527_v3  ;;  %v5716_v35 = vpop.f32.mrb[47].mxu1  ;;  %v2325_v49 = vmul.f32 %v2323_v42, %v2314_v19 }
0x1b61   :  { %v7637_v50 = vsub.f32 %v2314_v19, %v2538_v20  ;;  %v2326_v25 = vmul.f32 %v2324_v38, %v2315_v48  ;;  %v2541_v47 = vand.u32 4294901760, %v2315_v48  ;;  %3813 = vst.msk [vmem:[#allocation2 + $0x10] sm:$0xff] %vm77_vm0, %v2315_v48  ;;  %v2485_v19 = vld [vmem:[%s8450_s10] sm:$0xff]  ;;  %s6574_s10 = smov 127  }
0x1b62   :  { %v2488_v42 = vpack.c.bf16 %v2486_v4, %v2485_v19 }
0x1b63   :  { %v2327_v54 = vpack.c.bf16 %v2326_v25, %v2325_v49  ;;  %v7640_v40 = vsub.f32 %v2315_v48, %v2541_v47  ;;  %v7642_v60 = vpack.c.bf16 %v2541_v47, %v2538_v20  ;;  %v2617_v41 = vand.u32 4294901760, %v7637_v50  ;;  %v2998_v49 = vpop.permute.xlu1 %2997 }
0x1b65   :  { %5722 = vmatmul.mubr.msk.bf16.vlgmr.msra.gmra.mrb[56].mxu0 %vm77_vm0, %v2327_v54  ;;  %v2618_v3 = vsub.f32 %v7637_v50, %v2617_v41  ;;  %v2624_v51 = vand.u32 4294901760, %v7640_v40  ;;  %v6022_v24 = vpack.c.bf16 %v7640_v40, %v7637_v50  ;;  %v3000_v50 = vpop.permute.xlu0 %2999 }
0x1b66   :  { %5726 = vmatpush3.bf16.msra.mxu0 %v2384_v56  ;;  %5729 = vmatprep.mubr.msk.bf16.mxu0 %vm6569_vm2, %v6568_v52 }
0x1b67   :  { %5727 = vmatprep.subr.bf16.mxu0 %v6568_v52  ;;  %v2625_v62 = vsub.f32 %v7640_v40, %v2624_v51  ;;  %v6028_v27 = vpack.c.bf16 %v2624_v51, %v2617_v41  ;;  %v2619_v30 = vand.u32 4294901760, %v2618_v3  ;;  %v3051_v47 = vpop.permute.xlu1 %3050 }
0x1b69   :  { %v2626_v26 = vand.u32 4294901760, %v2625_v62  ;;  %v3053_v54 = vpop.permute.xlu0 %3052 }
0x1b6a   :  { %5728 = vmatpush3.bf16.msra.mxu0 %v2386_v53 }
0x1b6b   :  { %v6019_v55 = vpack.c.bf16 %v2626_v26, %v2619_v30  ;;  %5739 = vmatprep.subr.bf16.mxu0 %v6568_v52 }
0x1c38   :  { %v2367_v5 = vpop.f32.mrb[56].mxu0 }
0x1c39   :  { %v2376_v34 = vmul.f32 0.01, %v2367_v5  ;;  %v5723_v12 = vpop.f32.mrb[57].mxu0  ;;  %vm2374_vm6 = vcmp.ge.f32.partialorder %v2367_v5, 0.0 }
0x1c3a   :  { %v2370_v6 = vpop.f32.mrb[58].mxu0 }
0x1c3b   :  { %vm2375_vm7 = vcmp.ge.f32.partialorder %v2370_v6, 0.0  ;;  %v2377_v46 = vmul.f32 0.01, %v2370_v6  ;;  %v5724_v1 = vpop.f32.mrb[59].mxu0  ;;  %v2378_v11 = vsel %vm2374_vm6, %v2367_v5, %v2376_v34  ;;  %v3105_v5 = vpop.permute.xlu1 %3104  ;;  %v3174_v34 = vand.u32 127, %v206_v59 }
0x1c3d   :  { %v2379_v32 = vsel %vm2375_vm7, %v2370_v6, %v2377_v46  ;;  %v7709_v12 = vcvt.s32.f32 %v3174_v34  ;;  %v3199_v6 = vld [vmem:[%s8442_s2] sm:$0xff]  ;;  %v3200_v46 = vld [vmem:[%s8442_s2 + $0x8] sm:$0xff]  ;;  %vm3801_vm7 = vcmask 257024  }
0x1c3e   :  { %v2380_v8 = vpack.c.bf16 %v2379_v32, %v2378_v11  ;;  %v3214_v1 = vand.u32 4294901760, %v3199_v6  ;;  %v3217_v11 = vand.u32 4294901760, %v3200_v46 }
0x1c40   :  { %5730 = vmatmul.mubr.msk.bf16.vlgmr.msra.gmra.mrb[60].mxu0 %vm77_vm0, %v2380_v8  ;;  %v7717_v8 = vpack.c.bf16 %v3217_v11, %v3214_v1 }
0x1c41   :  { %5741 = vmatprep.mubr.msk.bf16.mxu0 %vm6569_vm2, %v6568_v52  ;;  %5740 = vmatpush3.bf16.msra.mxu0 %v2488_v42 }
0x1c42   :  { %5787 = vmatprep.subr.bf16.mxu0 %v6568_v52 }
0x1d13   :  { %v2426_v7 = vpop.f32.mrb[60].mxu0 }
0x1d14   :  { %v2435_v43 = vmul.f32 0.01, %v2426_v7  ;;  %v5731_v29 = vpop.f32.mrb[61].mxu0  ;;  %vm2433_vm8 = vcmp.ge.f32.partialorder %v2426_v7, 0.0 }
0x1d15   :  { %v2429_v28 = vpop.f32.mrb[62].mxu0  ;;  %v3204_v29 = vld [vmem:[%s8442_s2 + $0x28] sm:$0xff] }
0x1d16   :  { %vm2434_vm9 = vcmp.ge.f32.partialorder %v2429_v28, 0.0  ;;  %v2436_v63 = vmul.f32 0.01, %v2429_v28  ;;  %v5732_v2 = vpop.f32.mrb[63].mxu0  ;;  %v2437_v45 = vsel %vm2433_vm8, %v2426_v7, %v2435_v43  ;;  %v3223_v7 = vand.u32 4294901760, %v3202_v37  ;;  %v3203_v43 = vld [vmem:[%s8442_s2 + $0x20] sm:$0xff] }
0x1d17   :  { %vm4122_vm8 = vcmask 195584  }
0x1d18   :  { %v2438_v44 = vsel %vm2434_vm9, %v2429_v28, %v2436_v63  ;;  %v3226_v28 = vand.u32 4294901760, %v3203_v43  ;;  %v3229_v63 = vand.u32 4294901760, %v3204_v29 }
0x1d19   :  { %v2439_v31 = vpack.c.bf16 %v2438_v44, %v2437_v45  ;;  %v3315_v45 = vsub.f32 %v3200_v46, %v3217_v11  ;;  %v3205_v44 = vld [vmem:[%s8442_s2 + $0x30] sm:$0xff] }
0x1d1a   :  { %v7741_v2 = vpack.c.bf16 %v3229_v63, %v3226_v28  ;;  %v3232_v33 = vand.u32 4294901760, %v3205_v44 }
0x1d1b   :  { %5736 = vmatmul.mubr.msk.bf16.vlgmr.msra.gmra.mrb[48].mxu1 %vm335_vm1, %v2439_v31  ;;  %v3206_v31 = vld [vmem:[%s8442_s2 + $0x38] sm:$0xff]  ;;  %v3316_v4 = vand.u32 4294901760, %v3315_v45  ;;  %s6576_s2 = smov [#allocation5]  }
0x1d1c   :  { %6017 = vmatpush3.bf16.msra.mxu1 %v7642_v60  ;;  %5749 = vmatprep.mubr.msk.f32.mxu1 %vm6569_vm2, %v6568_v52  ;;  %s5152_s19 = sshll.u32 %s6576_s2, 4  ;;  %s5153_s19 = int_to_ptr.vmem [resolvable:$true] %s5152_s19 }
0x1d1d   :  { %6018 = vmatprep.subr.bf16.mxu1 %v6570_v21 }
0x1d23   :  { %5750 = vmatmul.mubr.f32.vlgmr.msra.gmra.mrb[52].mxu1 %v2608_v23  ;;  %v3235_v23 = vand.u32 4294901760, %v3206_v31 }
0x1d24   :  { %6020 = vmatpush3.bf16.msra.mxu1 %v6019_v55  ;;  %5756 = vmatprep.mubr.msk.f32.mxu1 %vm6569_vm2, %v6568_v52 }
0x1d25   :  { %6021 = vmatprep.subr.bf16.mxu1 %v6570_v21  ;;  %v7751_v42 = vpack.c.bf16 %v3235_v23, %v3232_v33 }
0x1d2b   :  { %5757 = vmatmul.mubr.f32.vlgmr.msra.gmra.mrb[52].mxu1 %v2604_v39 }
0x1d2c   :  { %6023 = vmatpush3.bf16.msra.mxu1 %v6022_v24  ;;  %5763 = vmatprep.mubr.msk.f32.mxu1 %vm6569_vm2, %v6568_v52 }
0x1d2d   :  { %6024 = vmatprep.subr.bf16.mxu1 %v6570_v21 }
0x1d33   :  { %5764 = vmatmul.mubr.f32.vlgmr.msra.gmra.mrb[52].mxu1 %v2605_v10 }
0x1d34   :  { %6026 = vmatpush3.bf16.msra.mxu1 %v7642_v60  ;;  %5770 = vmatprep.mubr.msk.f32.mxu1 %vm6569_vm2, %v6568_v52 }
0x1d35   :  { %6027 = vmatprep.subr.bf16.mxu1 %v6570_v21 }
0x1d3b   :  { %5771 = vmatmul.mubr.f32.vlgmr.msra.gmra.mrb[52].mxu1 %v2606_v57  ;;  %v3308_v57 = vsub.f32 %v3199_v6, %v3214_v1 }
0x1d3c   :  { %6029 = vmatpush3.bf16.msra.mxu1 %v6028_v27  ;;  %5777 = vmatprep.mubr.msk.f32.mxu1 %vm6569_vm2, %v6568_v52 }
0x1d3d   :  { %6030 = vmatprep.subr.bf16.mxu1 %v6570_v21  ;;  %v3309_v19 = vand.u32 4294901760, %v3308_v57 }
0x1d43   :  { %5778 = vmatmul.mubr.f32.vlgmr.msra.gmra.mrb[52].mxu1 %v2604_v39 }
0x1d44   :  { %6032 = vmatpush3.bf16.msra.mxu1 %v7642_v60  ;;  %5784 = vmatprep.mubr.msk.f32.mxu1 %vm6569_vm2, %v6568_v52 }
0x1d45   :  { %6034 = vmatprep.subr.bf16.mxu1 %v7717_v8 }
0x1d4b   :  { %5785 = vmatmul.mubr.f32.vlgmr.msra.gmra.mrb[52].mxu1 %v2604_v39  ;;  %v3220_v39 = vand.u32 4294901760, %v3201_v16 }
0x1d4c   :  { %6036 = vmatpush3.bf16.msra.mxu1 %v7717_v8 }
0x1d4d   :  { %v7731_v10 = vpack.c.bf16 %v3223_v7, %v3220_v39 }
0x1d4f   :  { %6038 = vmatprep.subr.bf16.mxu1 %v7731_v10 }
0x1d50   :  { %6040 = vmatpush3.bf16.msra.mxu1 %v7731_v10 }
0x1d51   :  { %6042 = vmatprep.subr.bf16.mxu1 %v7741_v2 }
0x1d54   :  { %6044 = vmatpush3.bf16.msra.mxu1 %v7741_v2 }
0x1d55   :  { %6046 = vmatprep.subr.bf16.mxu1 %v7751_v42 }
0x1d58   :  { %6048 = vmatpush3.bf16.msra.mxu1 %v7751_v42 }
0x1dee   :  { %v2478_v0 = vpop.f32.mrb[48].mxu1 }
0x1def   :  { %v5737_v38 = vpop.f32.mrb[49].mxu1 }
0x1df0   :  { %v2481_v20 = vpop.f32.mrb[50].mxu1  ;;  %v3317_v38 = vsub.f32 %v3315_v45, %v3316_v4 }
0x1df1   :  { %v2487_v48 = vpack.c.bf16 %v2481_v20, %v2478_v0  ;;  %v5738_v35 = vpop.f32.mrb[51].mxu1  ;;  %v3310_v0 = vsub.f32 %v3308_v57, %v3309_v19  ;;  %v3322_v20 = vsub.f32 %v3201_v16, %v3220_v39 }
0x1df3   :  { %5742 = vmatmul.mubr.msk.bf16.vlgmr.msra.gmra.mrb[64].mxu0 %vm335_vm1, %v2487_v48  ;;  %v3329_v48 = vsub.f32 %v3202_v37, %v3223_v7  ;;  %v3311_v35 = vand.u32 4294901760, %v3310_v0 }
0x1df4   :  { %5788 = vmatpush3.bf16.msra.mxu0 %v2998_v49  ;;  %5791 = vmatprep.mubr.msk.bf16.mxu0 %vm6569_vm2, %v6568_v52  ;;  %v3318_v49 = vand.u32 4294901760, %v3317_v38 }
0x1df5   :  { %5789 = vmatprep.subr.bf16.mxu0 %v6568_v52 }
0x1df8   :  { %5790 = vmatpush3.bf16.msra.mxu0 %v3000_v50  ;;  %v3323_v50 = vand.u32 4294901760, %v3322_v20 }
0x1df9   :  { %5795 = vmatprep.subr.bf16.mxu0 %v6568_v52 }
0x1e1e   :  { %v2992_v58 = vpop.f32.mrb[52].mxu1 }
0x1e1f   :  { %v2996_v9 = vpack.c.bf16 %v2992_v58, %v2992_v58  ;;  %v5786_v25 = vpop.f32.mrb[53].mxu1  ;;  %v3330_v58 = vand.u32 4294901760, %v3329_v48 }
0x1e20   :  { %v3324_v25 = vsub.f32 %v3322_v20, %v3323_v50 }
0x1e21   :  { %5792 = vmatmul.mubr.msk.bf16.vlgmr.msra.gmra.mrb[68].mxu0 %vm77_vm0, %v2996_v9  ;;  %v6049_v9 = vpack.c.bf16 %v3318_v49, %v3311_v35  ;;  %v7755_v16 = vpack.c.bf16 %v3330_v58, %v3323_v50 }
0x1e22   :  { %5799 = vmatprep.mubr.msk.bf16.mxu0 %vm6569_vm2, %v6568_v52  ;;  %5796 = vmatpush3.bf16.msra.mxu0 %v3051_v47  ;;  %v3336_v47 = vsub.f32 %v3203_v43, %v3226_v28 }
0x1e23   :  { %5797 = vmatprep.subr.bf16.mxu0 %v6568_v52  ;;  %6050 = vmatprep.subr.bf16.mxu1 %v6049_v9 }
0x1e26   :  { %5798 = vmatpush3.bf16.msra.mxu0 %v3053_v54  ;;  %v3343_v54 = vsub.f32 %v3204_v29, %v3229_v63 }
0x1e27   :  { %5803 = vmatprep.subr.bf16.mxu0 %v6568_v52 }
0x1ec6   :  { %v2526_v40 = vpop.f32.mrb[64].mxu0 }
0x1ec7   :  { %3793 = vst [vmem:[#allocation5] sm:$0xf] %v2526_v40  ;;  %v5743_v56 = vpop.f32.mrb[65].mxu0  ;;  %v3177_v60 = vsel %vm3176_vm10, %v2526_v40, -inf }
0x1ec8   :  { %3178 = vmax.xlane.f32.xlu0 %v3177_v60  ;;  %v2529_v41 = vpop.f32.mrb[66].mxu0  ;;  %v3325_v56 = vand.u32 4294901760, %v3324_v25  ;;  %v3337_v60 = vand.u32 4294901760, %v3336_v47 }
0x1ec9   :  { %3804 = vst [vmem:[#allocation5 + $0x4] sm:$0xf] %v2529_v41  ;;  %v5744_v3 = vpop.f32.mrb[67].mxu0  ;;  %v3180_v51 = vsel %vm3176_vm10, %v2529_v41, -inf }
0x1eca   :  { %3181 = vmax.xlane.f32.xlu1 %v3180_v51  ;;  %v3338_v51 = vsub.f32 %v3336_v47, %v3337_v60 }
0x1ef4   :  { %v3040_v24 = vpop.f32.mrb[68].mxu0 }
0x1ef5   :  { %vm3046_vm11 = vcmp.ge.f32.partialorder %v3040_v24, 0.0  ;;  %v3047_v62 = vmul.f32 0.01, %v3040_v24  ;;  %v5793_v27 = vpop.f32.mrb[69].mxu0 }
0x1ef6   :  { %v3043_v30 = vpop.f32.mrb[70].mxu0  ;;  %v3357_v27 = vsub.f32 %v3206_v31, %v3235_v23 }
0x1ef7   :  { %v3048_v26 = vsel %vm3046_vm11, %v3040_v24, %v3047_v62  ;;  %v5794_v55 = vpop.f32.mrb[71].mxu0  ;;  %v3350_v62 = vsub.f32 %v3205_v44, %v3232_v33 }
0x1ef8   :  { %v3049_v53 = vpack.c.bf16 %v3048_v26, %v3048_v26  ;;  %v3339_v26 = vand.u32 4294901760, %v3338_v51 }
0x1efa   :  { %5800 = vmatmul.mubr.msk.bf16.vlgmr.msra.gmra.mrb[72].mxu0 %vm77_vm0, %v3049_v53  ;;  %v3351_v53 = vand.u32 4294901760, %v3350_v62 }
0x1efb   :  { %5804 = vmatpush3.bf16.msra.mxu0 %v3105_v5  ;;  %5805 = vmatprep.mubr.msk.bf16.mxu0 %vm6569_vm2, %v6568_v52  ;;  %v3358_v5 = vand.u32 4294901760, %v3357_v27 }
0x1efc   :  { %v3352_v6 = vsub.f32 %v3350_v62, %v3351_v53 }
0x1efd   :  { %v3359_v46 = vsub.f32 %v3357_v27, %v3358_v5  ;;  %v7759_v39 = vpack.c.bf16 %v3358_v5, %v3351_v53 }
0x1efe   :  { %v3353_v1 = vand.u32 4294901760, %v3352_v6 }
0x1eff   :  { %v3360_v11 = vand.u32 4294901760, %v3359_v46 }
0x1f55   :  { %v3179_v32 = vpop.xlane.xlu0 %3178 }
0x1f56   :  { %vm3183_vm12 = vcmp.eq.f32.partialorder %v2526_v40, %v3179_v32  ;;  %v3331_v40 = vsub.f32 %v3329_v48, %v3330_v58  ;;  %v6061_v32 = vpack.c.bf16 %v3360_v11, %v3353_v1 }
0x1f57   :  { %v3185_v61 = vsel %vm3183_vm12, %v7709_v12, 64.0  ;;  %v3182_v36 = vpop.xlane.xlu1 %3181 }
0x1f58   :  { %vm3184_vm13 = vcmp.eq.f32.partialorder %v2529_v41, %v3182_v36  ;;  %v3187_v59 = vsel %vm3176_vm10, %v3185_v61, inf  ;;  %v3344_v41 = vand.u32 4294901760, %v3343_v54  ;;  %v3332_v3 = vand.u32 4294901760, %v3331_v40 }
0x1f59   :  { %v3186_v15 = vsel %vm3184_vm13, %v7709_v12, 64.0  ;;  %3188 = vmin.xlane.f32.xlu0 %v3187_v59  ;;  %v6065_v61 = vpack.c.bf16 %v3315_v45, %v3308_v57  ;;  %v6069_v36 = vpack.c.bf16 %v3329_v48, %v3322_v20  ;;  %v6073_v59 = vpack.c.bf16 %v3343_v54, %v3336_v47 }
0x1f5a   :  { %v3190_v21 = vsel %vm3176_vm10, %v3186_v15, inf  ;;  %v3345_v24 = vsub.f32 %v3343_v54, %v3344_v41  ;;  %v6053_v30 = vpack.c.bf16 %v3332_v3, %v3325_v56  ;;  %v6077_v15 = vpack.c.bf16 %v3357_v27, %v3350_v62 }
0x1f5b   :  { %v7757_v37 = vpack.c.bf16 %v3344_v41, %v3337_v60 }
0x1f5c   :  { %v3346_v55 = vand.u32 4294901760, %v3345_v24 }
0x1f5d   :  { %3191 = vmin.xlane.f32.xlu0 %v3190_v21  ;;  %v6097_v21 = vpack.c.bf16 %v3316_v4, %v3309_v19 }
0x1f5e   :  { %v6057_v34 = vpack.c.bf16 %v3346_v55, %v3339_v26 }
0x1fcd   :  { %v3093_v7 = vpop.f32.mrb[72].mxu0 }
0x1fce   :  { %vm3099_vm14 = vcmp.ge.f32.partialorder %v3093_v7, 0.0  ;;  %v3100_v43 = vmul.f32 0.01, %v3093_v7  ;;  %v5801_v29 = vpop.f32.mrb[73].mxu0 }
0x1fcf   :  { %v3096_v28 = vpop.f32.mrb[74].mxu0 }
0x1fd0   :  { %v3101_v63 = vsel %vm3099_vm14, %v3093_v7, %v3100_v43  ;;  %v5802_v44 = vpop.f32.mrb[75].mxu0  ;;  %v5288_v7 = vld [vmem:[%s8443_s3 + $0x120] sm:$0xff]  ;;  %v5291_v43 = vld [vmem:[%s8443_s3 + $0x138] sm:$0xff] }
0x1fd1   :  { %v3102_v31 = vpack.c.bf16 %v3101_v63, %v3101_v63  ;;  %v3864_v29 = vpack.c.bf16 %v5291_v43, %v5288_v7  ;;  %v5295_v28 = vld [vmem:[%s8443_s3 + $0x158] sm:$0xff]  ;;  %v5298_v63 = vld [vmem:[%s8443_s3 + $0x170] sm:$0xff] }
0x1fd2   :  { %v7827_v44 = vpack.c.bf16 %v5298_v63, %v5295_v28 }
0x1fd3   :  { %5806 = vmatmul.mubr.msk.bf16.vlgmr.msra.gmra.mrb[76].mxu0 %vm335_vm1, %v3102_v31  ;;  %vm3151_vm1 = vcmask 9216   ;;  %v5294_v31 = vld [vmem:[%s8443_s3 + $0x150] sm:$0xff] }
0x1fd4   :  { %3906 = vmatprep.mubr.bf16.mxu0 %v8454_v13 }
0x1fe6   :  { %v3189_v57 = vpop.xlane.xlu0 %3188 }
0x1fe7   :  { %vm3193_vm15 = vcmp.eq.f32.partialorder %v7709_v12, %v3189_v57  ;;  %v5297_v57 = vld [vmem:[%s8443_s3 + $0x168] sm:$0xff] }
0x1fe8   :  { %v5280_v45 = vsel %vm3193_vm15, 1.0, %v6568_v52 }
0x1fe9   :  { %v3208_v33 = vsel %vm3176_vm10, %v5280_v45, 0 }
0x1fea   :  { %v3287_v23 = vsub.f32 %v3208_v33, %v3208_v33  ;;  %v3192_v19 = vpop.xlane.xlu0 %3191  ;;  %v7839_v33 = vld [vmem:[%s8441_s1 + $0x28] sm:$0xff] }
0x1feb   :  { %vm3194_vm2 = vcmp.eq.f32.partialorder %v7709_v12, %v3192_v19  ;;  %v7851_v19 = vld [vmem:[%s8441_s1 + $0x30] sm:$0xff] }
0x1fec   :  { %v5281_v4 = vsel %vm3194_vm2, 1.0, %v6568_v52  ;;  %v3288_v0 = vand.u32 4294901760, %v3287_v23 }
0x1fed   :  { %v3211_v38 = vsel %vm3176_vm10, %v5281_v4, 0 }
0x1fee   :  { %v3297_v20 = vsub.f32 %v3211_v38, %v3211_v38  ;;  %v3289_v48 = vsub.f32 %v3287_v23, %v3288_v0 }
0x1ff0   :  { %v3290_v35 = vand.u32 4294901760, %v3289_v48  ;;  %v3298_v49 = vand.u32 4294901760, %v3297_v20 }
0x1ff2   :  { %5825 = vmatprep.mubr.f32.mxu1 %v3290_v35  ;;  %v3299_v50 = vsub.f32 %v3297_v20, %v3298_v49 }
0x1ff4   :  { %v3300_v58 = vand.u32 4294901760, %v3299_v50 }
0x1ff6   :  { %5826 = vmatmul.mubr.f32.vlgmr.msra.gmra.mrb[54].mxu1 %v3300_v58 }
0x1ff7   :  { %6052 = vmatpush3.bf16.msra.mxu1 %v6049_v9  ;;  %5844 = vmatprep.mubr.msk.f32.mxu1 %vm3176_vm10, %v5280_v45 }
0x1ff8   :  { %6054 = vmatprep.subr.bf16.mxu1 %v6053_v30 }
0x1ffb   :  { %6056 = vmatpush3.bf16.msra.mxu1 %v6053_v30 }
0x1ffc   :  { %6058 = vmatprep.subr.bf16.mxu1 %v6057_v34 }
0x1fff   :  { %6060 = vmatpush3.bf16.msra.mxu1 %v6057_v34 }
0x2000   :  { %6062 = vmatprep.subr.bf16.mxu1 %v6061_v32 }
0x2003   :  { %6064 = vmatpush3.bf16.msra.mxu1 %v6061_v32  ;;  %v3816_v32 = vld [vmem:[#allocation2 + $0x10] sm:$0xff] }
0x2004   :  { %6066 = vmatprep.subr.bf16.mxu1 %v6065_v61 }
0x2006   :  { %5845 = vmatmul.mubr.msk.f32.vlgmr.msra.gmra.mrb[54].mxu1 %vm3176_vm10, %v5281_v4 }
0x2007   :  { %6068 = vmatpush3.bf16.msra.mxu1 %v6065_v61  ;;  %5863 = vmatprep.mubr.f32.mxu1 %v3287_v23  ;;  %v7846_v23 = vld [vmem:[%s8441_s1 + $0x20] sm:$0xff] }
0x2008   :  { %6070 = vmatprep.subr.bf16.mxu1 %v6069_v36 }
0x200b   :  { %6072 = vmatpush3.bf16.msra.mxu1 %v6069_v36 }
0x200c   :  { %6074 = vmatprep.subr.bf16.mxu1 %v6073_v59 }
0x200f   :  { %6076 = vmatpush3.bf16.msra.mxu1 %v6073_v59 }
0x2010   :  { %6078 = vmatprep.subr.bf16.mxu1 %v6077_v15 }
0x2013   :  { %6080 = vmatpush3.bf16.msra.mxu1 %v6077_v15  ;;  %v3833_v15 = vmul.f32 %v3816_v32, %v3816_v32 }
0x2014   :  { %6082 = vmatprep.subr.bf16.mxu1 %v7717_v8 }
0x2016   :  { %5864 = vmatmul.mubr.f32.vlgmr.msra.gmra.mrb[54].mxu1 %v3297_v20 }
0x2017   :  { %6084 = vmatpush3.bf16.msra.mxu1 %v7717_v8  ;;  %5882 = vmatprep.mubr.f32.mxu1 %v3288_v0  ;;  %v54_v0 = vld [vmem:[%s8441_s1 + $0x48] sm:$0xff] }
0x2018   :  { %6086 = vmatprep.subr.bf16.mxu1 %v7731_v10 }
0x201b   :  { %6088 = vmatpush3.bf16.msra.mxu1 %v7731_v10 }
0x201c   :  { %6090 = vmatprep.subr.bf16.mxu1 %v7741_v2 }
0x201f   :  { %6092 = vmatpush3.bf16.msra.mxu1 %v7741_v2 }
0x2020   :  { %6094 = vmatprep.subr.bf16.mxu1 %v7751_v42 }
0x2023   :  { %6096 = vmatpush3.bf16.msra.mxu1 %v7751_v42 }
0x2024   :  { %6098 = vmatprep.subr.bf16.mxu1 %v6097_v21 }
0x2026   :  { %5883 = vmatmul.mubr.f32.vlgmr.msra.gmra.mrb[54].mxu1 %v3298_v49 }
0x2027   :  { %6100 = vmatpush3.bf16.msra.mxu1 %v6097_v21  ;;  %5901 = vmatprep.mubr.msk.f32.mxu1 %vm3176_vm10, %v5280_v45  ;;  %v3840_v21 = vsel %vm77_vm0, %v3833_v15, 0.0 }
0x2028   :  { %6102 = vmatprep.subr.bf16.mxu1 %v7755_v16 }
0x202b   :  { %6104 = vmatpush3.bf16.msra.mxu1 %v7755_v16  ;;  %v5289_v16 = vld [vmem:[%s8443_s3 + $0x128] sm:$0xff] }
0x202c   :  { %6106 = vmatprep.subr.bf16.mxu1 %v7757_v37 }
0x202f   :  { %6108 = vmatpush3.bf16.msra.mxu1 %v7757_v37  ;;  %v5292_v37 = vld [vmem:[%s8443_s3 + $0x140] sm:$0xff] }
0x2030   :  { %6110 = vmatprep.subr.bf16.mxu1 %v7759_v39 }
0x2033   :  { %6112 = vmatpush3.bf16.msra.mxu1 %v7759_v39  ;;  %v7812_v39 = vpack.c.bf16 %v5292_v37, %v5289_v16 }
0x2034   :  { %6114 = vmatprep.subr.bf16.mxu1 %v7717_v8 }
0x2035   :  { %3874 = vmatprep.subr.bf16.mxu0 %v7812_v39 }
0x2036   :  { %5902 = vmatmul.mubr.msk.f32.vlgmr.msra.gmra.mrb[54].mxu1 %vm3176_vm10, %v5281_v4  ;;  %3875 = vmatpush1.bf16.msra.mxu0 %v3864_v29 }
0x2037   :  { %6116 = vmatpush3.bf16.msra.mxu1 %v7717_v8  ;;  %5920 = vmatprep.mubr.msk.f32.mxu1 %vm3176_vm10, %v5280_v45  ;;  %v3866_v45 = vpack.c.bf16 %v5297_v57, %v5294_v31 }
0x2038   :  { %6118 = vmatprep.subr.bf16.mxu1 %v7731_v10  ;;  %3876 = vmatprep.subr.bf16.mxu0 %v7827_v44 }
0x203a   :  { %3877 = vmatpush1.bf16.msra.mxu0 %v3866_v45 }
0x203b   :  { %6120 = vmatpush3.bf16.msra.mxu1 %v7731_v10 }
0x203c   :  { %6122 = vmatprep.subr.bf16.mxu1 %v7741_v2 }
0x203f   :  { %6124 = vmatpush3.bf16.msra.mxu1 %v7741_v2 }
0x2040   :  { %6126 = vmatprep.subr.bf16.mxu1 %v7751_v42 }
0x2043   :  { %6128 = vmatpush3.bf16.msra.mxu1 %v7751_v42  ;;  %v5278_v42 = vld [vmem:[%s8445_s5 + $0x9] ss:$0 sm:$0xff] }
0x2046   :  { %5921 = vmatmul.mubr.msk.f32.vlgmr.msra.gmra.mrb[54].mxu1 %vm3176_vm10, %v5281_v4  ;;  %v52_v4 = vld [vmem:[%s8441_s1 + $0x38] sm:$0xff] }
0x20a6   :  { %v3144_v12 = vpop.f32.mrb[76].mxu0 }
0x20a7   :  { %v3150_v9 = vmul.f32 %v3144_v12, %v3144_v12  ;;  %v5807_v8 = vpop.f32.mrb[77].mxu0 }
0x20a8   :  { %v3147_v25 = vpop.f32.mrb[78].mxu0 }
0x20a9   :  { %v5808_v47 = vpop.f32.mrb[79].mxu0  ;;  %v3152_v54 = vsel %vm3151_vm1, %v3150_v9, 0.0  ;;  %v5300_v25 = vld [vmem:[%s8445_s5 + $0x6] ss:$0 sm:$0xff] }
0x20aa   :  { %3153 = vadd.xlane.f32.xlu1 %v3152_v54 }
0x2119   :  { %v5922_v10 = vpop.f32.mrb[54].mxu1 }
0x211a   :  { %v3783_v40 = vpop.f32.mrb[55].mxu1 }
0x2137   :  { %v3154_v56 = vpop.xlane.xlu1 %3153 }
0x2138   :  { %v3156_v60 = vmul.f32 0.5, %v3154_v56 }
0x213a   :  { %v3157_v2 = vadd.f32 1e-05, %v3156_v60 }
0x213c   :  { %6378 = vrsqrt.f32 %v3157_v2 }
0x2146   :  { %v6379_v41 = vpop.eup %6378 }
0x2147   :  { %v3159_v3 = vmul.f32 %v6379_v41, %v3144_v12 }
0x2149   :  { %v3164_v51 = vmul.f32 %v5278_v42, %v3159_v3 }
0x214b   :  { %3167 = vrot.lane.b32.xlu0 %v3164_v51, %s6573_s20  ;;  %3165 = vst.msk [vmem:[#allocation3] sm:$0x3] %vm3151_vm1, %v3164_v51 }
0x21bd   :  { %v3168_v24 = vpop.permute.xlu0 %3167 }
0x21be   :  { %vm3170_vm6 = vcmp.gt.f32.partialorder %v3164_v51, %v3168_v24 }
0x21bf   :  { %v5279_v62 = vsel %vm3170_vm6, 1.0, %v6568_v52 }
0x21c0   :  { %v3805_v27 = vrot.slane %v5279_v62, 1 }
0x21c2   :  { %v6197_v30 = vpack.i.bf16 %v3805_v27, %v5279_v62 }
0x21c4   :  { %6198 = vrot.lane.b32.xlu1 %v6197_v30, %s6574_s10 }
0x2236   :  { %v6199_v26 = vpop.permute.xlu1 %6198 }
0x2237   :  { %v6200_v55 = vunpack.i.l.bf16 %v6199_v26  ;;  %v6201_v53 = vunpack.i.h.bf16 %v6199_v26  ;;  %v53_v26 = vld [vmem:[%s8441_s1 + $0x40] sm:$0xff] }
0x2239   :  { %6179 = vpush %v6200_v55 }
0x223a   :  { %6181 = vpush %v6201_v53 }
0x226a   :  { %s6180_s21 = spop %6179 }
0x226b   :  { %v3798_v5 = vstv %s6180_s21  ;;  %s6182_s7 = spop %6181 }
0x226c   :  { %v3800_v34 = vmul.f32 %v3798_v5, %v3783_v40  ;;  %v3809_v6 = vstv %s6182_s7 }
0x226d   :  { %v3811_v46 = vmul.f32 %v5922_v10, %v3809_v6 }
0x226e   :  { %3802 = vst.msk [vmem:[#allocation2] sm:$0xf] %vm3801_vm7, %v3800_v34 }
0x226f   :  { %3812 = vst.msk [vmem:[#allocation2 + $0xc] sm:$0xf] %vm3801_vm7, %v3811_v46 }
0x2275   :  { %v3814_v1 = vld [vmem:[#allocation2] sm:$0xff] }
0x2276   :  { %v3815_v52 = vld [vmem:[#allocation2 + $0x8] sm:$0xff]  ;;  %v3831_v11 = vmul.f32 %v3814_v1, %v3814_v1 }
0x2277   :  { %v3832_v61 = vmul.f32 %v3815_v52, %v3815_v52 }
0x2278   :  { %v3834_v36 = vsel %vm77_vm0, %v3831_v11, 0.0 }
0x2279   :  { %v3837_v59 = vsel %vm77_vm0, %v3832_v61, 0.0  ;;  %3835 = vadd.xlane.f32.xlu1 %v3834_v36 }
0x227a   :  { %3838 = vadd.xlane.f32.xlu0 %v3837_v59 }
0x227e   :  { %3841 = vadd.xlane.f32.xlu0 %v3840_v21 }
0x228a   :  { %3961 = vrot.lane.b32.xlu1 %v7846_v23, %s6564_s29 }
0x2294   :  { %3963 = vrot.lane.b32.xlu0 %v7839_v33, %s6564_s29 }
0x2298   :  { %3965 = vrot.lane.b32.xlu0 %v7851_v19, %s6564_s29 }
0x229c   :  { %3931 = vrot.lane.b32.xlu0 %v52_v4, %s6565_s16 }
0x22a0   :  { %3935 = vrot.lane.b32.xlu0 %v54_v0, %s6565_s16 }
0x2306   :  { %v3836_v38 = vpop.xlane.xlu1 %3835 }
0x2307   :  { %v3839_v20 = vpop.xlane.xlu0 %3838  ;;  %v3843_v48 = vmul.f32 0.03125, %v3836_v38 }
0x2308   :  { %v3844_v35 = vmul.f32 0.03125, %v3839_v20 }
0x2309   :  { %v3846_v49 = vadd.f32 1e-05, %v3843_v48 }
0x230a   :  { %v3847_v50 = vadd.f32 1e-05, %v3844_v35  ;;  %v3962_v11 = vpop.permute.xlu1 %3961 }
0x230b   :  { %6380 = vrsqrt.f32 %v3846_v49  ;;  %v3842_v58 = vpop.xlane.xlu0 %3841 }
0x230c   :  { %6382 = vrsqrt.f32 %v3847_v50  ;;  %v3845_v12 = vmul.f32 0.03125, %v3842_v58  ;;  %v5309_v50 = vld [vmem:[%s8446_s6 + $0x8] sm:$0xff]  ;;  %s5142_s6 = sshll.u32 %s6575_s18, 4  ;;  %s5143_s6 = int_to_ptr.vmem [resolvable:$true] %s5142_s6 }
0x230d   :  { %s6515_s20 = scalar_lea.vmem %s5143_s6, 32  ;;  %p6520_p1 = scmp.lt.s32.totalorder %s5143_s6, %s5143_s6 }
0x230e   :  { %v3848_v9 = vadd.f32 1e-05, %v3845_v12  ;;  %p6516_p0 = scmp.ne.s32.totalorder %s5143_s6, %s6515_s20  ;;  %p6521_p2 = scmp.lt.s32.totalorder %s6515_s20, %s6515_s20 }
0x2310   :  { %6384 = vrsqrt.f32 %v3848_v9  ;;  %p6522_p3 = por %p6521_p2, %p6520_p1 }
0x2312   :  { %p6523_p4 = pnand %p6522_p3, %p6516_p0 }
0x2315   :  { %v6381_v8 = vpop.eup %6380 }
0x2316   :  { %v6383_v47 = vpop.eup %6382  ;;  %v3852_v54 = vmul.f32 %v6381_v8, %v3814_v1  ;;  %v7909_v8 = vpack.c.bf16 %v5309_v50, %v5309_v50 }
0x2317   :  { %v3853_v10 = vmul.f32 %v6383_v47, %v3815_v52  ;;  %v3964_v52 = vpop.permute.xlu0 %3963 }
0x2318   :  { %v3859_v40 = vmul.f32 %v5300_v25, %v3852_v54 }
0x2319   :  { %v3860_v56 = vmul.f32 %v5300_v25, %v3853_v10 }
0x231a   :  { %v6385_v60 = vpop.eup %6384 }
0x231b   :  { %v3862_v2 = vpack.c.bf16 %v3860_v56, %v3859_v40  ;;  %v3854_v41 = vmul.f32 %v6385_v60, %v3816_v32  ;;  %v3966_v61 = vpop.permute.xlu0 %3965 }
0x231d   :  { %5301 = vmatmul.mubr.msk.bf16.vlgmr.msra.gmra.mrb[80].mxu0 %vm77_vm0, %v3862_v2  ;;  %v3861_v42 = vmul.f32 %v5300_v25, %v3854_v41 }
0x231e   :  { %3916 = vmatprep.mubr.bf16.mxu0 %v8454_v13 }
0x231f   :  { %v3863_v3 = vpack.c.bf16 %v3861_v42, %v3861_v42  ;;  %v3932_v43 = vpop.permute.xlu0 %3931 }
0x2323   :  { %v3936_v57 = vpop.permute.xlu0 %3935 }
0x2325   :  { %5302 = vmatmul.mubr.msk.bf16.gmra.mrb[84].mxu0 %vm77_vm0, %v3863_v3 }
0x23f0   :  { %v7871_v51 = vpop.f32.mrb[80].mxu0 }
0x23f1   :  { %v3910_v24 = vpop.f32.mrb[81].mxu0  ;;  %v3970_v36 = vmul.f32 %v3962_v11, %v7871_v51  ;;  %v3940_v63 = vmul.f32 %v3932_v43, %v7871_v51  ;;  %v3925_v35 = vmul.f32 %v7871_v51, %v7846_v23 }
0x23f2   :  { %v3973_v62 = vmul.f32 %v3910_v24, %v52_v4  ;;  %v7873_v27 = vpop.f32.mrb[82].mxu0 }
0x23f3   :  { %v4261_v30 = vpack.c.bf16 %v7873_v27, %v7871_v51  ;;  %v3914_v55 = vpop.f32.mrb[83].mxu0  ;;  %v3971_v59 = vmul.f32 %v3964_v52, %v7873_v27  ;;  %v3926_v12 = vmul.f32 %v7873_v27, %v7839_v33  ;;  %v4267_v52 = vsel %vm77_vm0, %v7909_v8, 0  ;;  %v5296_v51 = vld [vmem:[%s8443_s3 + $0x160] sm:$0xff] }
0x23f4   :  { %3979 = vrot.lane.b32.xlu1 %v3973_v62, %s6564_s29  ;;  %v3974_v53 = vmul.f32 %v3914_v55, %v53_v26 }
0x23f8   :  { %3981 = vrot.lane.b32.xlu1 %v3974_v53, %s6564_s29  ;;  %v7882_v5 = vpop.f32.mrb[84].mxu0 }
0x23f9   :  { %v3920_v34 = vpop.f32.mrb[85].mxu0  ;;  %v3972_v7 = vmul.f32 %v3966_v61, %v7882_v5  ;;  %v3942_v4 = vmul.f32 %v3936_v57, %v7882_v5  ;;  %v3927_v9 = vmul.f32 %v7882_v5, %v7851_v19 }
0x23fa   :  { %v3975_v6 = vmul.f32 %v3920_v34, %v54_v0  ;;  %v3922_v46 = vpop.f32.mrb[86].mxu0 }
0x23fb   :  { %v3923_v1 = vpop.f32.mrb[87].mxu0 }
0x23fc   :  { %3983 = vrot.lane.b32.xlu1 %v3975_v6, %s6564_s29 }
0x2400   :  { %3933 = vrot.lane.b32.xlu1 %v53_v26, %s6565_s16 }
0x2466   :  { %v3980_v32 = vpop.permute.xlu1 %3979 }
0x2467   :  { %v3988_v21 = vadd.f32 %v3980_v32, %v3970_v36 }
0x246a   :  { %v3982_v15 = vpop.permute.xlu1 %3981 }
0x246b   :  { %v3989_v16 = vadd.f32 %v3982_v15, %v3971_v59 }
0x246d   :  { %v4009_v37 = vpack.c.bf16 %v3989_v16, %v3988_v21 }
0x246e   :  { %v3984_v29 = vpop.permute.xlu1 %3983 }
0x246f   :  { %v3990_v28 = vadd.f32 %v3984_v29, %v3972_v7  ;;  %4013 = vrot.lane.b32.xlu1 %v4009_v37, %s6565_s16 }
0x2471   :  { %v4010_v31 = vpack.c.bf16 %v3990_v28, %v3990_v28 }
0x2472   :  { %v3934_v45 = vpop.permute.xlu1 %3933 }
0x2473   :  { %3946 = vrot.lane.b32.xlu1 %v3940_v63, %s6564_s29  ;;  %4015 = vrot.lane.b32.xlu0 %v4010_v31, %s6565_s16  ;;  %v3941_v0 = vmul.f32 %v3934_v45, %v7873_v27 }
0x2477   :  { %3950 = vrot.lane.b32.xlu1 %v3942_v4, %s6564_s29  ;;  %3948 = vrot.lane.b32.xlu0 %v3941_v0, %s6564_s29 }
0x24e1   :  { %v4014_v38 = vpop.permute.xlu1 %4013 }
0x24e2   :  { %v4036_v20 = vsel %vm77_vm0, %v4014_v38, 0  ;;  %6174 = vmatprep.subr.msk.bf16.mxu0 %vm77_vm0, %v4014_v38 }
0x24e3   :  { %5924 = vmatpush3.bf16.xpose.msra.mxu0 %v4036_v20 }
0x24e5   :  { %v4016_v48 = vpop.permute.xlu0 %4015  ;;  %v3947_v49 = vpop.permute.xlu1 %3946 }
0x24e6   :  { %6175 = vmatprep.subr.msk.bf16.mxu0 %vm77_vm0, %v4016_v48  ;;  %v3955_v58 = vadd.f32 %v3947_v49, %v3925_v35  ;;  %v4039_v23 = vsel %vm77_vm0, %v4016_v48, 0 }
0x24e8   :  { %v3991_v40 = vmul.f32 %v3955_v58, %v6765_v14  ;;  %v3994_v56 = vmul.f32 %v3955_v58, %v6767_v17  ;;  %v3997_v60 = vmul.f32 %v3955_v58, %v6769_v18  ;;  %v4000_v2 = vmul.f32 %v3955_v58, %v6771_v22 }
0x24e9   :  { %v3949_v25 = vpop.permute.xlu0 %3948  ;;  %v3951_v47 = vpop.permute.xlu1 %3950 }
0x24ea   :  { %v3956_v54 = vadd.f32 %v3949_v25, %v3926_v12  ;;  %v3957_v10 = vadd.f32 %v3951_v47, %v3927_v9 }
0x24eb   :  { %5926 = vmatpush3.bf16.xpose.msra.mxu0 %v4039_v23 }
0x24ec   :  { %v3992_v33 = vmul.f32 %v3956_v54, %v6765_v14  ;;  %v3995_v19 = vmul.f32 %v3956_v54, %v6767_v17  ;;  %v3998_v41 = vmul.f32 %v3956_v54, %v6769_v18  ;;  %v4001_v42 = vmul.f32 %v3956_v54, %v6771_v22  ;;  %6176 = vmatprep.subr.msk.bf16.mxu0 %vm77_vm0, %v7909_v8 }
0x24ed   :  { %v3993_v3 = vmul.f32 %v3957_v10, %v6765_v14  ;;  %v3996_v24 = vmul.f32 %v3957_v10, %v6767_v17  ;;  %v3999_v62 = vmul.f32 %v3957_v10, %v6769_v18  ;;  %v4002_v26 = vmul.f32 %v3957_v10, %v6771_v22  ;;  %v57_v10 = vld [vmem:[%s8441_s1 + $0x70] sm:$0xff] }
0x24ee   :  { %v4003_v55 = vpack.c.bf16 %v3992_v33, %v3991_v40  ;;  %v4006_v53 = vpack.c.bf16 %v3998_v41, %v3997_v60  ;;  %v59_v33 = vld [vmem:[%s8441_s1 + $0x80] sm:$0xff] }
0x24ef   :  { %v4004_v34 = vpack.c.bf16 %v3994_v56, %v3993_v3  ;;  %v4005_v6 = vpack.c.bf16 %v3996_v24, %v3995_v19  ;;  %v4007_v46 = vpack.c.bf16 %v4000_v2, %v3999_v62  ;;  %v4008_v1 = vpack.c.bf16 %v4002_v26, %v4001_v42  ;;  %v58_v19 = vld [vmem:[%s8441_s1 + $0x78] sm:$0xff] }
0x24f0   :  { %5927 = vmatprep.mubr.msk.bf16.mxu0 %vm77_vm0, %v4003_v55 }
0x24f2   :  { %5928 = vmatmul.mubr.msk.bf16.vlgmr.msra.gmra.mrb[88].mxu0 %vm77_vm0, %v4004_v34 }
0x24f3   :  { %5931 = vmatprep.mubr.msk.bf16.mxu0 %vm77_vm0, %v4005_v6  ;;  %5940 = vmatpush3.bf16.xpose.msra.mxu0 %v4267_v52 }
0x24fa   :  { %5932 = vmatmul.mubr.msk.bf16.gmra.mrb[92].mxu0 %vm77_vm0, %v4006_v53 }
0x24fb   :  { %5935 = vmatprep.mubr.msk.bf16.mxu0 %vm77_vm0, %v4007_v46 }
0x2502   :  { %5936 = vmatmul.mubr.msk.bf16.gmra.mrb[96].mxu0 %vm77_vm0, %v4008_v1 }
0x2503   :  { %5941 = vmatprep.mubr.msk.bf16.mxu0 %vm77_vm0, %v4003_v55 }
0x250a   :  { %5942 = vmatmul.mubr.msk.bf16.vlgmr.msra.gmra.mrb[100].mxu0 %vm77_vm0, %v4004_v34 }
0x250b   :  { %5945 = vmatprep.mubr.msk.bf16.mxu0 %vm77_vm0, %v4005_v6 }
0x2512   :  { %5946 = vmatmul.mubr.msk.bf16.gmra.mrb[104].mxu0 %vm77_vm0, %v4006_v53 }
0x2513   :  { %5949 = vmatprep.mubr.msk.bf16.mxu0 %vm77_vm0, %v4007_v46 }
0x251a   :  { %5950 = vmatmul.mubr.msk.bf16.gmra.mrb[108].mxu0 %vm77_vm0, %v4008_v1 }
0x25c5   :  { %v5929_v11 = vpop.f32.mrb[88].mxu0 }
0x25c6   :  { %v4075_v32 = vpop.f32.mrb[89].mxu0  ;;  %v4084_v41 = vadd.f32 %v5929_v11, %v59_v33 }
0x25c7   :  { %v5930_v61 = vpop.f32.mrb[90].mxu0  ;;  %v7993_v56 = vadd.f32 %v4075_v32, %v57_v10 }
0x25c8   :  { %v4078_v36 = vpop.f32.mrb[91].mxu0  ;;  %v4087_v62 = vadd.f32 %v5930_v61, %v57_v10  ;;  %v4129_v53 = vsel %vm4122_vm8, %v4084_v41, -inf }
0x25c9   :  { %v4079_v42 = vadd.f32 %v4078_v36, %v58_v19  ;;  %v4123_v24 = vsel %vm4122_vm8, %v7993_v56, -inf }
0x25ca   :  { %v4132_v46 = vsel %vm4122_vm8, %v4087_v62, -inf }
0x25cb   :  { %v4126_v55 = vsel %vm4122_vm8, %v4079_v42, -inf }
0x25cd   :  { %v5933_v59 = vpop.f32.mrb[92].mxu0 }
0x25ce   :  { %v4091_v15 = vpop.f32.mrb[93].mxu0  ;;  %v4100_v34 = vadd.f32 %v5933_v59, %v57_v10 }
0x25cf   :  { %v7940_v21 = vpop.f32.mrb[94].mxu0  ;;  %v8009_v26 = vadd.f32 %v4091_v15, %v58_v19 }
0x25d0   :  { %v4094_v16 = vpop.f32.mrb[95].mxu0  ;;  %v4103_v52 = vadd.f32 %v7940_v21, %v58_v19  ;;  %v4141_v61 = vsel %vm4122_vm8, %v4100_v34, -inf }
0x25d1   :  { %v8013_v6 = vadd.f32 %v4094_v16, %v59_v33  ;;  %v4135_v1 = vsel %vm4122_vm8, %v8009_v26, -inf }
0x25d2   :  { %v4144_v15 = vsel %vm4122_vm8, %v4103_v52, -inf }
0x25d3   :  { %v4138_v32 = vsel %vm4122_vm8, %v8013_v6, -inf }
0x25d5   :  { %v7942_v37 = vpop.f32.mrb[96].mxu0 }
0x25d6   :  { %v4107_v7 = vpop.f32.mrb[97].mxu0  ;;  %v8025_v36 = vadd.f32 %v7942_v37, %v58_v19 }
0x25d7   :  { %v7944_v43 = vpop.f32.mrb[98].mxu0  ;;  %v8019_v11 = vadd.f32 %v4107_v7, %v59_v33 }
0x25d8   :  { %v7946_v29 = vpop.f32.mrb[99].mxu0  ;;  %v8034_v16 = vadd.f32 %v7944_v43, %v59_v33  ;;  %v4153_v37 = vsel %vm4122_vm8, %v8025_v36, -inf }
0x25d9   :  { %v8028_v59 = vadd.f32 %v7946_v29, %v57_v10  ;;  %v4147_v21 = vsel %vm4122_vm8, %v8019_v11, -inf }
0x25da   :  { %v4156_v29 = vsel %vm4122_vm8, %v8034_v16, -inf }
0x25db   :  { %v4150_v7 = vsel %vm4122_vm8, %v8028_v59, -inf }
0x25dd   :  { %v7948_v28 = vpop.f32.mrb[100].mxu0 }
0x25de   :  { %v7950_v63 = vpop.f32.mrb[101].mxu0  ;;  %v4356_v0 = vsel %vm1796_vm4, %v7948_v28, -inf }
0x25df   :  { %v7952_v31 = vpop.f32.mrb[102].mxu0  ;;  %v4350_v57 = vsel %vm1796_vm4, %v7950_v63, -inf }
0x25e0   :  { %4351 = vmax.xlane.f32.xlu0 %v4350_v57  ;;  %v7956_v45 = vpop.f32.mrb[103].mxu0  ;;  %v4359_v35 = vsel %vm1796_vm4, %v7952_v31, -inf }
0x25e1   :  { %v4353_v4 = vsel %vm1796_vm4, %v7956_v45, -inf }
0x25e2   :  { %4354 = vmax.xlane.f32.xlu1 %v4353_v4 }
0x25e4   :  { %4357 = vmax.xlane.f32.xlu0 %v4356_v0 }
0x25e5   :  { %v7962_v38 = vpop.f32.mrb[104].mxu0 }
0x25e6   :  { %v7964_v20 = vpop.f32.mrb[105].mxu0  ;;  %v4368_v58 = vsel %vm1796_vm4, %v7962_v38, -inf }
0x25e7   :  { %v7966_v48 = vpop.f32.mrb[106].mxu0  ;;  %v4362_v49 = vsel %vm1796_vm4, %v7964_v20, -inf }
0x25e8   :  { %4360 = vmax.xlane.f32.xlu0 %v4359_v35  ;;  %4363 = vmax.xlane.f32.xlu1 %v4362_v49  ;;  %v7972_v50 = vpop.f32.mrb[107].mxu0  ;;  %v4371_v23 = vsel %vm1796_vm4, %v7966_v48, -inf }
0x25e9   :  { %v4365_v12 = vsel %vm1796_vm4, %v7972_v50, -inf }
0x25ec   :  { %4369 = vmax.xlane.f32.xlu1 %v4368_v58  ;;  %4366 = vmax.xlane.f32.xlu0 %v4365_v12 }
0x25ed   :  { %v7978_v9 = vpop.f32.mrb[108].mxu0 }
0x25ee   :  { %v7980_v25 = vpop.f32.mrb[109].mxu0  ;;  %v4380_v60 = vsel %vm1796_vm4, %v7978_v9, -inf }
0x25ef   :  { %v7982_v47 = vpop.f32.mrb[110].mxu0  ;;  %v4374_v54 = vsel %vm1796_vm4, %v7980_v25, -inf }
0x25f0   :  { %4372 = vmax.xlane.f32.xlu0 %v4371_v23  ;;  %4375 = vmax.xlane.f32.xlu1 %v4374_v54  ;;  %v7991_v40 = vpop.f32.mrb[111].mxu0  ;;  %v4383_v3 = vsel %vm1796_vm4, %v7982_v47, -inf }
0x25f1   :  { %v4377_v2 = vsel %vm1796_vm4, %v7991_v40, -inf }
0x25f4   :  { %4381 = vmax.xlane.f32.xlu1 %v4380_v60  ;;  %4378 = vmax.xlane.f32.xlu0 %v4377_v2 }
0x25f8   :  { %4384 = vmax.xlane.f32.xlu0 %v4383_v3  ;;  %4124 = vmax.xlane.f32.xlu1 %v4123_v24 }
0x25fc   :  { %4127 = vmax.xlane.f32.xlu0 %v4126_v55  ;;  %4130 = vmax.xlane.f32.xlu1 %v4129_v53 }
0x2600   :  { %4133 = vmax.xlane.f32.xlu0 %v4132_v46  ;;  %4136 = vmax.xlane.f32.xlu1 %v4135_v1 }
0x2604   :  { %4139 = vmax.xlane.f32.xlu0 %v4138_v32  ;;  %4142 = vmax.xlane.f32.xlu1 %v4141_v61 }
0x2608   :  { %4145 = vmax.xlane.f32.xlu0 %v4144_v15  ;;  %4148 = vmax.xlane.f32.xlu1 %v4147_v21 }
0x260c   :  { %4151 = vmax.xlane.f32.xlu0 %v4150_v7  ;;  %4154 = vmax.xlane.f32.xlu1 %v4153_v37 }
0x2610   :  { %4157 = vmax.xlane.f32.xlu0 %v4156_v29 }
0x266d   :  { %v8042_v57 = vpop.xlane.xlu0 %4351 }
0x266f   :  { %v8044_v4 = vpop.xlane.xlu1 %4354 }
0x2671   :  { %v8046_v0 = vpop.xlane.xlu0 %4357 }
0x2675   :  { %v8048_v43 = vpop.xlane.xlu0 %4360  ;;  %v8050_v35 = vpop.xlane.xlu1 %4363 }
0x2679   :  { %v8052_v49 = vpop.xlane.xlu1 %4369  ;;  %v8054_v58 = vpop.xlane.xlu0 %4366 }
0x267d   :  { %v8056_v12 = vpop.xlane.xlu0 %4372  ;;  %v8058_v23 = vpop.xlane.xlu1 %4375 }
0x2681   :  { %v8060_v54 = vpop.xlane.xlu1 %4381  ;;  %v8062_v10 = vpop.xlane.xlu0 %4378 }
0x2685   :  { %v8064_v60 = vpop.xlane.xlu0 %4384  ;;  %v4125_v2 = vpop.xlane.xlu1 %4124 }
0x2686   :  { %v4159_v33 = vsub.f32 %v7993_v56, %v4125_v2 }
0x2688   :  { %v4171_v46 = vmul.f32 1.442695, %v4159_v33 }
0x2689   :  { %v4128_v19 = vpop.xlane.xlu0 %4127  ;;  %v4131_v3 = vpop.xlane.xlu1 %4130 }
0x268a   :  { %v4161_v24 = vsub.f32 %v4084_v41, %v4131_v3  ;;  %v4160_v55 = vsub.f32 %v4079_v42, %v4128_v19 }
0x268c   :  { %v4175_v53 = vmul.f32 1.442695, %v4161_v24  ;;  %v4173_v15 = vmul.f32 1.442695, %v4160_v55 }
0x268d   :  { %v4134_v1 = vpop.xlane.xlu0 %4133  ;;  %v4137_v32 = vpop.xlane.xlu1 %4136 }
0x268e   :  { %v4162_v61 = vsub.f32 %v4087_v62, %v4134_v1  ;;  %6386 = vpow2.f32 %v4175_v53  ;;  %v4163_v7 = vsub.f32 %v8009_v26, %v4137_v32  ;;  %v4389_v1 = vsub.f32 %v7952_v31, %v8048_v43 }
0x268f   :  { %6388 = vpow2.f32 %v4171_v46  ;;  %v4387_v31 = vsub.f32 %v7956_v45, %v8044_v4 }
0x2690   :  { %v4177_v21 = vmul.f32 1.442695, %v4162_v61  ;;  %v4179_v42 = vmul.f32 1.442695, %v4163_v7  ;;  %v4388_v61 = vsub.f32 %v7948_v28, %v8046_v0  ;;  %v4404_v43 = vmul.f32 1.442695, %v4389_v1 }
0x2691   :  { %v4140_v37 = vpop.xlane.xlu0 %4139  ;;  %v4143_v29 = vpop.xlane.xlu1 %4142  ;;  %v4386_v28 = vsub.f32 %v7950_v63, %v8042_v57  ;;  %v4400_v4 = vmul.f32 1.442695, %v4387_v31  ;;  %v4392_v57 = vsub.f32 %v7962_v38, %v8052_v49  ;;  %v4390_v38 = vsub.f32 %v7964_v20, %v8050_v35 }
0x2692   :  { %6390 = vpow2.f32 %v4177_v21  ;;  %v4165_v13 = vsub.f32 %v4100_v34, %v4143_v29  ;;  %v4164_v56 = vsub.f32 %v8013_v6, %v4140_v37  ;;  %v4402_v0 = vmul.f32 1.442695, %v4388_v61 }
0x2693   :  { %6392 = vpow2.f32 %v4173_v15  ;;  %v4398_v63 = vmul.f32 1.442695, %v4386_v28  ;;  %v4410_v49 = vmul.f32 1.442695, %v4392_v57  ;;  %v4396_v20 = vsub.f32 %v7978_v9, %v8060_v54 }
0x2694   :  { %v4183_v41 = vmul.f32 1.442695, %v4165_v13  ;;  %v4181_v62 = vmul.f32 1.442695, %v4164_v56  ;;  %v4394_v9 = vsub.f32 %v7980_v25, %v8058_v23 }
0x2695   :  { %v4146_v2 = vpop.xlane.xlu0 %4145  ;;  %v4149_v33 = vpop.xlane.xlu1 %4148  ;;  %v4418_v54 = vmul.f32 1.442695, %v4396_v20 }
0x2696   :  { %v4166_v19 = vsub.f32 %v4103_v52, %v4146_v2  ;;  %6394 = vpow2.f32 %v4183_v41  ;;  %v4167_v26 = vsub.f32 %v8019_v11, %v4149_v33  ;;  %v4393_v41 = vsub.f32 %v7966_v48, %v8056_v12 }
0x2697   :  { %6396 = vpow2.f32 %v4179_v42 }
0x2698   :  { %v4185_v3 = vmul.f32 1.442695, %v4166_v19  ;;  %v8069_v24 = vpop.eup %6386  ;;  %v4391_v19 = vsub.f32 %v7972_v50, %v8054_v58  ;;  %v4412_v48 = vmul.f32 1.442695, %v4393_v41  ;;  %v4397_v58 = vsub.f32 %v7982_v47, %v8064_v60 }
0x2699   :  { %v4152_v55 = vpop.xlane.xlu0 %4151  ;;  %v4155_v53 = vpop.xlane.xlu1 %4154  ;;  %v4201_v13 = vsel %vm4122_vm8, %v8069_v24, 0.0  ;;  %v4395_v47 = vsub.f32 %v7991_v40, %v8062_v10 }
0x269a   :  { %6398 = vpow2.f32 %v4185_v3  ;;  %v4168_v34 = vsub.f32 %v8028_v59, %v4152_v55  ;;  %v4169_v6 = vsub.f32 %v8025_v36, %v4155_v53  ;;  %v8076_v46 = vpop.eup %6388  ;;  %4202 = vadd.xlane.f32.xlu1 %v4201_v13  ;;  %v4187_v59 = vmul.f32 1.442695, %v4167_v26 }
0x269b   :  { %6400 = vpow2.f32 %v4181_v62  ;;  %v4195_v21 = vsel %vm4122_vm8, %v8076_v46, 0.0  ;;  %v4408_v50 = vmul.f32 1.442695, %v4391_v19  ;;  %v4406_v53 = vmul.f32 1.442695, %v4390_v38 }
0x269c   :  { %v8078_v52 = vpop.eup %6390  ;;  %v4189_v11 = vmul.f32 1.442695, %v4168_v34  ;;  %v4191_v32 = vmul.f32 1.442695, %v4169_v6  ;;  %v4420_v60 = vmul.f32 1.442695, %v4397_v58  ;;  %v4262_v58 = vpack.c.bf16 %v7882_v5, %v7882_v5 }
0x269d   :  { %v4204_v36 = vsel %vm4122_vm8, %v8078_v52, 0.0  ;;  %v8086_v15 = vpop.eup %6392  ;;  %v4158_v1 = vpop.xlane.xlu0 %4157  ;;  %v4416_v40 = vmul.f32 1.442695, %v4395_v47 }
0x269e   :  { %4205 = vadd.xlane.f32.xlu0 %v4204_v36  ;;  %6402 = vpow2.f32 %v4191_v32  ;;  %4196 = vadd.xlane.f32.xlu1 %v4195_v21  ;;  %v4198_v37 = vsel %vm4122_vm8, %v8086_v15, 0.0  ;;  %v4170_v10 = vsub.f32 %v8034_v16, %v4158_v1  ;;  %v4414_v36 = vmul.f32 1.442695, %v4394_v9 }
0x269f   :  { %6404 = vpow2.f32 %v4189_v11 }
0x26a0   :  { %v8092_v7 = vpop.eup %6394  ;;  %6406 = vpow2.f32 %v4187_v59 }
0x26a1   :  { %v4213_v29 = vsel %vm4122_vm8, %v8092_v7, 0.0  ;;  %v8100_v56 = vpop.eup %6396  ;;  %6408 = vpow2.f32 %v4404_v43  ;;  %v4193_v43 = vmul.f32 1.442695, %v4170_v10 }
0x26a2   :  { %4199 = vadd.xlane.f32.xlu0 %v4198_v37  ;;  %4214 = vadd.xlane.f32.xlu1 %v4213_v29  ;;  %6410 = vpow2.f32 %v4402_v0  ;;  %v4207_v33 = vsel %vm4122_vm8, %v8100_v56, 0.0 }
0x26a3   :  { %6412 = vpow2.f32 %v4400_v4 }
0x26a4   :  { %v8102_v45 = vpop.eup %6398  ;;  %6414 = vpow2.f32 %v4398_v63 }
0x26a5   :  { %v4216_v42 = vsel %vm4122_vm8, %v8102_v45, 0.0  ;;  %v8110_v2 = vpop.eup %6400  ;;  %6416 = vpow2.f32 %v4412_v48 }
0x26a6   :  { %4217 = vadd.xlane.f32.xlu0 %v4216_v42  ;;  %4208 = vadd.xlane.f32.xlu1 %v4207_v33  ;;  %v4210_v62 = vsel %vm4122_vm8, %v8110_v2, 0.0  ;;  %6418 = vpow2.f32 %v4410_v49 }
0x26a7   :  { %6420 = vpow2.f32 %v4408_v50 }
0x26a8   :  { %v8116_v12 = vpop.eup %6402  ;;  %6422 = vpow2.f32 %v4406_v53  ;;  %v5293_v53 = vld [vmem:[%s8443_s3 + $0x148] sm:$0xff] }
0x26a9   :  { %v8122_v3 = vpop.eup %6404  ;;  %v4225_v26 = vsel %vm4122_vm8, %v8116_v12, 0.0  ;;  %6424 = vpow2.f32 %v4420_v60 }
0x26aa   :  { %4211 = vadd.xlane.f32.xlu0 %v4210_v62  ;;  %v8126_v55 = vpop.eup %6406  ;;  %4226 = vadd.xlane.f32.xlu1 %v4225_v26  ;;  %v4222_v35 = vsel %vm4122_vm8, %v8122_v3, 0.0  ;;  %6426 = vpow2.f32 %v4418_v54  ;;  %v4489_v26 = vrot.slane %v7909_v8, 2  ;;  %v5290_v8 = vld [vmem:[%s8443_s3 + $0x130] sm:$0xff] }
0x26ab   :  { %v8134_v34 = vpop.eup %6408  ;;  %v4219_v6 = vsel %vm4122_vm8, %v8126_v55, 0.0  ;;  %6428 = vpow2.f32 %v4416_v40  ;;  %v4737_v27 = vpack.c.bf16 %v5293_v53, %v5290_v8 }
0x26ac   :  { %v8138_v13 = vpop.eup %6410  ;;  %v4431_v11 = vsel %vm1796_vm4, %v8134_v34, 0.0  ;;  %6430 = vpow2.f32 %v4414_v36  ;;  %6177 = vmatprep.subr.msk.bf16.mxu0 %vm1903_vm5, %v4489_v26  ;;  %v4509_v50 = vsel %vm1903_vm5, %v4489_v26, 0  ;;  %vm4617_vm5 = vcmask 1043456  }
0x26ad   :  { %v8146_v32 = vpop.eup %6412  ;;  %v4428_v61 = vsel %vm1796_vm4, %v8138_v13, 0.0  ;;  %6432 = vpow2.f32 %v4193_v43  ;;  %5954 = vmatpush3.bf16.msra.mxu0 %v4509_v50 }
0x26ae   :  { %4223 = vadd.xlane.f32.xlu0 %v4222_v35  ;;  %4220 = vadd.xlane.f32.xlu1 %v4219_v6  ;;  %v8150_v59 = vpop.eup %6414  ;;  %v4425_v25 = vsel %vm1796_vm4, %v8146_v32, 0.0 }
0x26af   :  { %v8155_v23 = vpop.eup %6416  ;;  %v4422_v21 = vsel %vm1796_vm4, %v8150_v59, 0.0 }
0x26b0   :  { %v8159_v31 = vpop.eup %6418  ;;  %v4443_v16 = vsel %vm1796_vm4, %v8155_v23, 0.0 }
0x26b1   :  { %v8163_v28 = vpop.eup %6420  ;;  %v4440_v0 = vsel %vm1796_vm4, %v8159_v31, 0.0 }
0x26b2   :  { %4432 = vadd.xlane.f32.xlu0 %v4431_v11  ;;  %4429 = vadd.xlane.f32.xlu1 %v4428_v61  ;;  %v8167_v37 = vpop.eup %6422  ;;  %v4437_v29 = vsel %vm1796_vm4, %v8163_v28, 0.0 }
0x26b3   :  { %v8171_v4 = vpop.eup %6424  ;;  %v4434_v41 = vsel %vm1796_vm4, %v8167_v37, 0.0 }
0x26b4   :  { %v8175_v63 = vpop.eup %6426  ;;  %v4455_v57 = vsel %vm1796_vm4, %v8171_v4, 0.0 }
0x26b5   :  { %v8179_v42 = vpop.eup %6428  ;;  %v4452_v33 = vsel %vm1796_vm4, %v8175_v63, 0.0 }
0x26b6   :  { %4426 = vadd.xlane.f32.xlu0 %v4425_v25  ;;  %4423 = vadd.xlane.f32.xlu1 %v4422_v21  ;;  %v8183_v19 = vpop.eup %6430  ;;  %v4449_v48 = vsel %vm1796_vm4, %v8179_v42, 0.0 }
0x26b7   :  { %v8187_v38 = vpop.eup %6432  ;;  %v4446_v49 = vsel %vm1796_vm4, %v8183_v19, 0.0 }
0x26b8   :  { %v4228_v62 = vsel %vm4122_vm8, %v8187_v38, 0.0 }
0x26ba   :  { %4444 = vadd.xlane.f32.xlu0 %v4443_v16  ;;  %4441 = vadd.xlane.f32.xlu1 %v4440_v0 }
0x26be   :  { %4438 = vadd.xlane.f32.xlu0 %v4437_v29  ;;  %4435 = vadd.xlane.f32.xlu1 %v4434_v41 }
0x26c2   :  { %4456 = vadd.xlane.f32.xlu0 %v4455_v57  ;;  %4453 = vadd.xlane.f32.xlu1 %v4452_v33 }
0x26c6   :  { %4450 = vadd.xlane.f32.xlu0 %v4449_v48  ;;  %4447 = vadd.xlane.f32.xlu1 %v4446_v49 }
0x26ca   :  { %4229 = vadd.xlane.f32.xlu0 %v4228_v62 }
0x26d7   :  { %4594 = vrot.lane.b32.xlu1 %v4261_v30, %s6567_s27  ;;  %v5299_v30 = vld [vmem:[%s8443_s3 + $0x178] sm:$0xff] }
0x26db   :  { %4741 = vrot.lane.b32.xlu1 %v4737_v27, %s6564_s29 }
0x26e0   :  { %4596 = vrot.lane.b32.xlu0 %v4262_v58, %s6567_s27 }
0x26e4   :  { %4840 = vrot.lane.b32.xlu0 %v7812_v39, %s6565_s16  ;;  %v8218_v39 = vpack.c.bf16 %v5299_v30, %v5296_v51 }
0x26e6   :  { %4743 = vrot.lane.b32.xlu1 %v8218_v39, %s6564_s29 }
0x26ea   :  { %4842 = vrot.lane.b32.xlu1 %v4737_v27, %s6565_s16 }
0x2727   :  { %v8223_v5 = vpop.xlane.xlu1 %4202 }
0x272b   :  { %v4206_v20 = vpop.xlane.xlu0 %4205  ;;  %v4197_v35 = vpop.xlane.xlu1 %4196 }
0x272f   :  { %v4200_v6 = vpop.xlane.xlu0 %4199  ;;  %v8225_v47 = vpop.xlane.xlu1 %4214 }
0x2733   :  { %v8227_v60 = vpop.xlane.xlu0 %4217  ;;  %v8229_v9 = vpop.xlane.xlu1 %4208 }
0x2737   :  { %v4212_v54 = vpop.xlane.xlu0 %4211  ;;  %v8231_v1 = vpop.xlane.xlu1 %4226 }
0x273b   :  { %v8233_v11 = vpop.xlane.xlu0 %4223  ;;  %v8235_v61 = vpop.xlane.xlu1 %4220 }
0x273f   :  { %v4433_v40 = vpop.xlane.xlu0 %4432  ;;  %v4430_v10 = vpop.xlane.xlu1 %4429 }
0x2740   :  { %6434 = vrcp.f32 %v4433_v40 }
0x2741   :  { %6436 = vrcp.f32 %v4430_v10 }
0x2743   :  { %v4427_v36 = vpop.xlane.xlu0 %4426  ;;  %v4424_v25 = vpop.xlane.xlu1 %4423 }
0x2744   :  { %6438 = vrcp.f32 %v4427_v36 }
0x2745   :  { %6440 = vrcp.f32 %v4424_v25 }
0x2747   :  { %v4445_v21 = vpop.xlane.xlu0 %4444  ;;  %v4442_v43 = vpop.xlane.xlu1 %4441 }
0x2748   :  { %6442 = vrcp.f32 %v4445_v21 }
0x2749   :  { %6444 = vrcp.f32 %v4442_v43 }
0x274a   :  { %v6435_v16 = vpop.eup %6434 }
0x274b   :  { %v4439_v0 = vpop.xlane.xlu0 %4438  ;;  %v6437_v29 = vpop.eup %6436  ;;  %v4473_v48 = vmul.f32 %v6435_v16, %v8134_v34 }
0x274c   :  { %6446 = vrcp.f32 %v4439_v0  ;;  %v4436_v41 = vpop.xlane.xlu1 %4435  ;;  %v4472_v49 = vmul.f32 %v6437_v29, %v8138_v13 }
0x274d   :  { %6448 = vrcp.f32 %v4436_v41 }
0x274e   :  { %v6439_v57 = vpop.eup %6438  ;;  %6450 = vrcp.f32 %v4197_v35  ;;  %v4483_v51 = vpack.c.bf16 %v4473_v48, %v4472_v49 }
0x274f   :  { %v6441_v33 = vpop.eup %6440  ;;  %v4457_v62 = vpop.xlane.xlu0 %4456  ;;  %v4471_v26 = vmul.f32 %v6439_v57, %v8146_v32 }
0x2750   :  { %v4454_v50 = vpop.xlane.xlu1 %4453  ;;  %v4470_v58 = vmul.f32 %v6441_v33, %v8150_v59  ;;  %6452 = vrcp.f32 %v4457_v62 }
0x2751   :  { %6454 = vrcp.f32 %v4454_v50 }
0x2752   :  { %v4482_v8 = vpack.c.bf16 %v4471_v26, %v4470_v58  ;;  %v6443_v53 = vpop.eup %6442  ;;  %6456 = vrcp.f32 %v4200_v6 }
0x2753   :  { %v4451_v27 = vpop.xlane.xlu0 %4450  ;;  %v6445_v30 = vpop.eup %6444  ;;  %v4477_v10 = vmul.f32 %v6443_v53, %v8155_v23 }
0x2754   :  { %6458 = vrcp.f32 %v4451_v27  ;;  %5955 = vmatprep.mubr.msk.bf16.mxu0 %vm1796_vm4, %v4482_v8  ;;  %v4448_v34 = vpop.xlane.xlu1 %4447  ;;  %v4476_v40 = vmul.f32 %v6445_v30, %v8159_v31 }
0x2755   :  { %6460 = vrcp.f32 %v4448_v34  ;;  %5956 = vmatmul.mubr.msk.bf16.vlgmr.msra.gmra.mrb[112].mxu0 %vm1796_vm4, %v4483_v51 }
0x2756   :  { %v6447_v13 = vpop.eup %6446  ;;  %6462 = vrcp.f32 %v4206_v20  ;;  %v4485_v0 = vpack.c.bf16 %v4477_v10, %v4476_v40 }
0x2757   :  { %v6449_v32 = vpop.eup %6448  ;;  %v4230_v35 = vpop.xlane.xlu0 %4229  ;;  %v4475_v59 = vmul.f32 %v6447_v13, %v8163_v28  ;;  %6464 = vrcp.f32 %v4212_v54 }
0x2758   :  { %v4595_v6 = vpop.permute.xlu1 %4594  ;;  %v4474_v36 = vmul.f32 %v6449_v32, %v8167_v37  ;;  %v6451_v25 = vpop.eup %6450  ;;  %6466 = vrcp.f32 %v8223_v5 }
0x2759   :  { %5967 = vmatprep.subr.bf16.mxu0 %v4595_v6  ;;  %6468 = vrcp.f32 %v8229_v9  ;;  %v4243_v33 = vmul.f32 %v6451_v25, %v8076_v46 }
0x275a   :  { %5968 = vmatpush3.bf16.msra.mxu0 %v4595_v6  ;;  %v4484_v21 = vpack.c.bf16 %v4475_v59, %v4474_v36  ;;  %v6453_v43 = vpop.eup %6452  ;;  %6470 = vrcp.f32 %v8227_v60 }
0x275b   :  { %v4597_v16 = vpop.permute.xlu0 %4596  ;;  %v6455_v29 = vpop.eup %6454  ;;  %v4481_v41 = vmul.f32 %v6453_v43, %v8171_v4  ;;  %6472 = vrcp.f32 %v8233_v11 }
0x275c   :  { %v4619_v28 = vsel %vm4617_vm5, %v4597_v16, 0  ;;  %5959 = vmatprep.mubr.msk.bf16.mxu0 %vm1796_vm4, %v4484_v21  ;;  %6178 = vmatprep.subr.msk.bf16.mxu0 %vm4617_vm5, %v4597_v16  ;;  %v6457_v23 = vpop.eup %6456  ;;  %v4480_v54 = vmul.f32 %v6455_v29, %v8175_v63  ;;  %6474 = vrcp.f32 %v8235_v61 }
0x275d   :  { %5960 = vmatmul.mubr.msk.bf16.gmra.mrb[116].mxu0 %vm1796_vm4, %v4485_v0  ;;  %v4244_v57 = vmul.f32 %v6457_v23, %v8086_v15  ;;  %6476 = vrcp.f32 %v8225_v47 }
0x275e   :  { %v6459_v31 = vpop.eup %6458  ;;  %5970 = vmatpush3.bf16.msra.mxu0 %v4619_v28  ;;  %v4487_v48 = vpack.c.bf16 %v4481_v41, %v4480_v54  ;;  %6478 = vrcp.f32 %v4230_v35 }
0x275f   :  { %v6461_v37 = vpop.eup %6460  ;;  %v4479_v20 = vmul.f32 %v6459_v31, %v8179_v42  ;;  %v4255_v4 = vpack.c.bf16 %v4244_v57, %v4243_v33  ;;  %6480 = vrcp.f32 %v8231_v1 }
0x2760   :  { %v4478_v5 = vmul.f32 %v6461_v37, %v8183_v19  ;;  %v6463_v49 = vpop.eup %6462 }
0x2761   :  { %v6465_v63 = vpop.eup %6464  ;;  %v4246_v19 = vmul.f32 %v6463_v49, %v8078_v52 }
0x2762   :  { %v4486_v9 = vpack.c.bf16 %v4479_v20, %v4478_v5  ;;  %v6467_v15 = vpop.eup %6466  ;;  %v4248_v46 = vmul.f32 %v6465_v63, %v8110_v2 }
0x2763   :  { %v6469_v42 = vpop.eup %6468  ;;  %v4245_v60 = vmul.f32 %v6467_v15, %v8069_v24 }
0x2764   :  { %5963 = vmatprep.mubr.msk.bf16.mxu0 %vm1796_vm4, %v4486_v9  ;;  %v4247_v11 = vmul.f32 %v6469_v42, %v8100_v56  ;;  %v6471_v47 = vpop.eup %6470 }
0x2765   :  { %5964 = vmatmul.mubr.msk.bf16.gmra.mrb[120].mxu0 %vm1796_vm4, %v4487_v48  ;;  %v4256_v61 = vpack.c.bf16 %v4246_v19, %v4245_v60  ;;  %v6473_v62 = vpop.eup %6472  ;;  %v4250_v52 = vmul.f32 %v6471_v47, %v8102_v45  ;;  %v4742_v45 = vpop.permute.xlu1 %4741 }
0x2766   :  { %5971 = vmatprep.mubr.msk.bf16.mxu0 %vm4122_vm8, %v4255_v4  ;;  %v4257_v26 = vpack.c.bf16 %v4248_v46, %v4247_v11  ;;  %v6475_v50 = vpop.eup %6474  ;;  %v4252_v24 = vmul.f32 %v6473_v62, %v8122_v3  ;;  %5983 = vmatprep.subr.bf16.mxu1 %v4742_v45 }
0x2767   :  { %v6477_v58 = vpop.eup %6476  ;;  %v4251_v2 = vmul.f32 %v6475_v50, %v8126_v55  ;;  %5984 = vmatpush3.bf16.msra.mxu1 %v4742_v45  ;;  %v6514_v45 = vld [vmem:[#allocation2 + $0x8] sm:$0xff] }
0x2768   :  { %v4249_v56 = vmul.f32 %v6477_v58, %v8092_v7  ;;  %v6479_v53 = vpop.eup %6478  ;;  %v8456_v58 = vmov 0  }
0x2769   :  { %v4259_v51 = vpack.c.bf16 %v4252_v24, %v4251_v2  ;;  %v6481_v1 = vpop.eup %6480  ;;  %v4254_v27 = vmul.f32 %v6479_v53, %v8187_v38  ;;  %v4744_v3 = vpop.permute.xlu1 %4743 }
0x276a   :  { %v4258_v8 = vpack.c.bf16 %v4250_v52, %v4249_v56  ;;  %v4253_v30 = vmul.f32 %v6481_v1, %v8116_v12  ;;  %5985 = vmatprep.subr.bf16.mxu1 %v4744_v3  ;;  %v4841_v52 = vpop.permute.xlu0 %4840  ;;  %v6512_v56 = vld [vmem:[#allocation2 + $0x10] sm:$0xff] }
0x276b   :  { %5986 = vmatpush3.bf16.msra.mxu1 %v4744_v3 }
0x276c   :  { %v4260_v34 = vpack.c.bf16 %v4254_v27, %v4253_v30 }
0x276d   :  { %5972 = vmatmul.mubr.msk.bf16.vlgmr.msra.gmra.mrb[112].mxu0 %vm4122_vm8, %v4256_v61  ;;  %v4843_v2 = vpop.permute.xlu1 %4842 }
0x276e   :  { %5975 = vmatprep.mubr.msk.bf16.mxu0 %vm4122_vm8, %v4257_v26  ;;  %v4848_v24 = vsel %vm623_vm3, %v4841_v52, %v4843_v2  ;;  %4860 = vmatprep.subr.bf16.mxu1 %v4843_v2 }
0x2775   :  { %5976 = vmatmul.mubr.msk.bf16.gmra.mrb[116].mxu0 %vm4122_vm8, %v4258_v8 }
0x2776   :  { %5979 = vmatprep.mubr.msk.bf16.mxu0 %vm4122_vm8, %v4259_v51  ;;  %v6513_v51 = vld [vmem:[#allocation2] sm:$0xff] }
0x277d   :  { %5980 = vmatmul.mubr.msk.bf16.gmra.mrb[120].mxu0 %vm4122_vm8, %v4260_v34 }
0x2840   :  { %v5973_v7 = vpop.f32.mrb[112].mxu0 }
0x2841   :  { %v4655_v55 = vpop.f32.mrb[113].mxu0  ;;  %v4704_v21 = vmul.f32 %v5973_v7, %v6765_v14 }
0x2842   :  { %v4702_v13 = vmul.f32 %v4655_v55, %v6765_v14  ;;  %v5974_v32 = vpop.f32.mrb[114].mxu0 }
0x2843   :  { %v4705_v35 = vmul.f32 %v5974_v32, %v6767_v17  ;;  %v4658_v59 = vpop.f32.mrb[115].mxu0 }
0x2844   :  { %v4714_v38 = vsel %vm77_vm0, %v4702_v13, 0.0  ;;  %v4703_v10 = vmul.f32 %v4658_v59, %v6765_v14  ;;  %v4728_v14 = vsel %vm77_vm0, %v4704_v21, 0.0 }
0x2845   :  { %v4715_v12 = vsel %vm77_vm0, %v4705_v35, 0.0 }
0x2846   :  { %v4716_v40 = vadd.f32 %v4715_v12, %v4714_v38  ;;  %v4721_v23 = vsel %vm77_vm0, %v4703_v10, 0.0 }
0x2848   :  { %v5977_v6 = vpop.f32.mrb[116].mxu0 }
0x2849   :  { %v4708_v36 = vmul.f32 %v5977_v6, %v6769_v18  ;;  %v4671_v25 = vpop.f32.mrb[117].mxu0 }
0x284a   :  { %v4706_v43 = vmul.f32 %v4671_v25, %v6767_v17  ;;  %v5978_v16 = vpop.f32.mrb[118].mxu0 }
0x284b   :  { %v4717_v0 = vsel %vm77_vm0, %v4708_v36, 0.0  ;;  %v4709_v29 = vmul.f32 %v5978_v16, %v6769_v18  ;;  %v4674_v28 = vpop.f32.mrb[119].mxu0 }
0x284c   :  { %v4718_v31 = vadd.f32 %v4717_v0, %v4716_v40  ;;  %v4722_v37 = vsel %vm77_vm0, %v4706_v43, 0.0  ;;  %v4707_v20 = vmul.f32 %v4674_v28, %v6767_v17 }
0x284d   :  { %v4723_v54 = vadd.f32 %v4722_v37, %v4721_v23  ;;  %v4724_v41 = vsel %vm77_vm0, %v4709_v29, 0.0  ;;  %v5330_v23 = vld [vmem:[%s8445_s5 + $0x7] ss:$0 sm:$0xff] }
0x284e   :  { %v4729_v5 = vsel %vm77_vm0, %v4707_v20, 0.0 }
0x284f   :  { %v4725_v57 = vadd.f32 %v4724_v41, %v4723_v54  ;;  %v4730_v9 = vadd.f32 %v4729_v5, %v4728_v14 }
0x2850   :  { %v5981_v33 = vpop.f32.mrb[120].mxu0 }
0x2851   :  { %v4712_v48 = vmul.f32 %v5981_v33, %v6771_v22  ;;  %v4687_v49 = vpop.f32.mrb[121].mxu0  ;;  %v5338_v33 = vld [vmem:[%s8444_s4 + $0x130] sm:$0xff] }
0x2852   :  { %v4710_v4 = vmul.f32 %v4687_v49, %v6769_v18  ;;  %v5982_v63 = vpop.f32.mrb[122].mxu0  ;;  %v5339_v49 = vld [vmem:[%s8444_s4 + $0x138] sm:$0xff] }
0x2853   :  { %v4726_v15 = vsel %vm77_vm0, %v4712_v48, 0.0  ;;  %v4713_v17 = vmul.f32 %v5982_v63, %v6771_v22  ;;  %v4690_v42 = vpop.f32.mrb[123].mxu0  ;;  %v5340_v63 = vld [vmem:[%s8444_s4 + $0x140] sm:$0xff] }
0x2854   :  { %v4727_v19 = vadd.f32 %v4726_v15, %v4725_v57  ;;  %v4731_v46 = vsel %vm77_vm0, %v4710_v4, 0.0  ;;  %v4711_v60 = vmul.f32 %v4690_v42, %v6771_v22  ;;  %v5336_v57 = vld [vmem:[%s8444_s4 + $0x120] sm:$0xff]  ;;  %v4975_v4 = vpack.c.bf16 %v5339_v49, %v5338_v33  ;;  %v5341_v15 = vld [vmem:[%s8444_s4 + $0x148] sm:$0xff]  ;;  %v5342_v42 = vld [vmem:[%s8444_s4 + $0x150] sm:$0xff] }
0x2855   :  { %v4732_v11 = vadd.f32 %v4731_v46, %v4730_v9  ;;  %v4733_v47 = vsel %vm77_vm0, %v4713_v17, 0.0  ;;  %v5337_v9 = vld [vmem:[%s8444_s4 + $0x128] sm:$0xff]  ;;  %v4976_v17 = vpack.c.bf16 %v5341_v15, %v5340_v63  ;;  %v5071_v15 = vld [vmem:[%s8449_s9 + $0x10] sm:$0xff] }
0x2856   :  { %v4719_v61 = vsel %vm77_vm0, %v4711_v60, 0.0  ;;  %v4974_v48 = vpack.c.bf16 %v5337_v9, %v5336_v57  ;;  %v5344_v60 = vld [vmem:[%s8444_s4 + $0x160] sm:$0xff] }
0x2857   :  { %v4734_v62 = vadd.f32 %v4733_v47, %v4732_v11  ;;  %v4720_v26 = vadd.f32 %v4719_v61, %v4718_v31  ;;  %v5345_v11 = vld [vmem:[%s8444_s4 + $0x168] sm:$0xff]  ;;  %v5346_v61 = vld [vmem:[%s8444_s4 + $0x170] sm:$0xff] }
0x2858   :  { %5991 = vmatprep.subr.bf16.mxu0 %v4974_v48  ;;  %v4978_v47 = vpack.c.bf16 %v5345_v11, %v5344_v60 }
0x2859   :  { %v4736_v50 = vpack.c.bf16 %v4734_v62, %v4734_v62  ;;  %v4735_v18 = vpack.c.bf16 %v4727_v19, %v4720_v26  ;;  %5992 = vmatpush3.bf16.msra.mxu0 %v4974_v48  ;;  %v5343_v19 = vld [vmem:[%s8444_s4 + $0x158] sm:$0xff] }
0x285a   :  { %5993 = vmatprep.subr.bf16.mxu0 %v4975_v4  ;;  %v4977_v46 = vpack.c.bf16 %v5343_v19, %v5342_v42  ;;  %v5347_v62 = vld [vmem:[%s8444_s4 + $0x178] sm:$0xff] }
0x285b   :  { %5987 = vmatprep.mubr.msk.bf16.mxu1 %vm77_vm0, %v4735_v18  ;;  %v4979_v26 = vpack.c.bf16 %v5347_v62, %v5346_v61 }
0x285c   :  { %5988 = vmatmul.mubr.msk.bf16.vlgmr.msra.gmra.mrb[56].mxu1 %vm77_vm0, %v4736_v50 }
0x285d   :  { %4892 = vmatprep.mubr.bf16.mxu1 %v8456_v58  ;;  %4861 = vmatpush1.bf16.msra.mxu1 %v4848_v24 }
0x285e   :  { %5994 = vmatpush3.bf16.msra.mxu0 %v4975_v4 }
0x285f   :  { %5995 = vmatprep.subr.bf16.mxu0 %v4976_v17 }
0x2862   :  { %5996 = vmatpush3.bf16.msra.mxu0 %v4976_v17  ;;  %v5072_v17 = vld [vmem:[%s8449_s9 + $0x18] sm:$0xff] }
0x2863   :  { %5997 = vmatprep.subr.bf16.mxu0 %v4977_v46  ;;  %v5076_v42 = vpack.c.bf16 %v5072_v17, %v5071_v15 }
0x2866   :  { %5998 = vmatpush3.bf16.msra.mxu0 %v4977_v46 }
0x2867   :  { %5999 = vmatprep.subr.bf16.mxu0 %v4978_v47 }
0x286a   :  { %6000 = vmatpush3.bf16.msra.mxu0 %v4978_v47 }
0x286b   :  { %6001 = vmatprep.subr.bf16.mxu0 %v4979_v26 }
0x286e   :  { %6002 = vmatpush3.bf16.msra.mxu0 %v4979_v26 }
0x292f   :  { %v5989_v22 = vpop.f32.mrb[56].mxu1 }
0x2930   :  { %v8308_v8 = vadd.f32 %v6512_v56, %v5989_v22  ;;  %v4787_v53 = vpop.f32.mrb[57].mxu1 }
0x2931   :  { %v8310_v1 = vadd.f32 %v6513_v51, %v4787_v53  ;;  %v5990_v27 = vpop.f32.mrb[58].mxu1 }
0x2932   :  { %v4790_v30 = vpop.f32.mrb[59].mxu1  ;;  %v4807_v34 = vmul.f32 %v8308_v8, %v8308_v8 }
0x2933   :  { %v8314_v3 = vadd.f32 %v6514_v45, %v4790_v30  ;;  %v4805_v55 = vmul.f32 %v8310_v1, %v8310_v1 }
0x2934   :  { %v4814_v7 = vsel %vm77_vm0, %v4807_v34, 0.0 }
0x2935   :  { %4815 = vadd.xlane.f32.xlu0 %v4814_v7  ;;  %v4806_v13 = vmul.f32 %v8314_v3, %v8314_v3  ;;  %v4808_v35 = vsel %vm77_vm0, %v4805_v55, 0.0 }
0x2937   :  { %v4811_v32 = vsel %vm77_vm0, %v4806_v13, 0.0 }
0x2938   :  { %4812 = vadd.xlane.f32.xlu1 %v4811_v32 }
0x2939   :  { %4809 = vadd.xlane.f32.xlu0 %v4808_v35 }
0x2949   :  { %4844 = vrot.lane.b32.xlu1 %v7827_v44, %s6565_s16 }
0x294f   :  { %4846 = vrot.lane.b32.xlu0 %v8218_v39, %s6565_s16 }
0x29c2   :  { %v4816_v59 = vpop.xlane.xlu0 %4815 }
0x29c3   :  { %v4819_v38 = vmul.f32 0.03125, %v4816_v59 }
0x29c5   :  { %v4813_v12 = vpop.xlane.xlu1 %4812  ;;  %v4822_v25 = vadd.f32 1e-05, %v4819_v38 }
0x29c6   :  { %v4818_v40 = vmul.f32 0.03125, %v4813_v12  ;;  %v4810_v10 = vpop.xlane.xlu0 %4809 }
0x29c7   :  { %v4817_v6 = vmul.f32 0.03125, %v4810_v10 }
0x29c8   :  { %v4821_v36 = vadd.f32 1e-05, %v4818_v40 }
0x29c9   :  { %v4820_v21 = vadd.f32 1e-05, %v4817_v6  ;;  %v4845_v43 = vpop.permute.xlu1 %4844 }
0x29ca   :  { %6482 = vrsqrt.f32 %v4821_v36  ;;  %v4847_v16 = vpop.permute.xlu0 %4846 }
0x29cb   :  { %6484 = vrsqrt.f32 %v4820_v21  ;;  %v4849_v0 = vsel %vm623_vm3, %v4845_v43, %v4847_v16  ;;  %4862 = vmatprep.subr.bf16.mxu1 %v4847_v16 }
0x29cc   :  { %4863 = vmatpush1.bf16.msra.mxu1 %v4849_v0  ;;  %6486 = vrsqrt.f32 %v4822_v25 }
0x29d4   :  { %v6483_v44 = vpop.eup %6482 }
0x29d5   :  { %v6485_v39 = vpop.eup %6484  ;;  %v4827_v29 = vmul.f32 %v6483_v44, %v8314_v3 }
0x29d6   :  { %v4826_v28 = vmul.f32 %v6485_v39, %v8310_v1  ;;  %v6487_v31 = vpop.eup %6486 }
0x29d7   :  { %v4834_v37 = vmul.f32 %v5330_v23, %v4827_v29  ;;  %v4828_v41 = vmul.f32 %v6487_v31, %v8308_v8 }
0x29d8   :  { %v4833_v20 = vmul.f32 %v5330_v23, %v4826_v28 }
0x29d9   :  { %v4835_v14 = vmul.f32 %v5330_v23, %v4828_v41 }
0x29da   :  { %v4836_v54 = vpack.c.bf16 %v4834_v37, %v4833_v20 }
0x29db   :  { %v4837_v5 = vpack.c.bf16 %v4835_v14, %v4835_v14 }
0x29dc   :  { %5331 = vmatmul.mubr.msk.bf16.vlgmr.msra.gmra.mrb[60].mxu1 %vm77_vm0, %v4836_v54 }
0x29dd   :  { %4902 = vmatprep.mubr.bf16.mxu1 %v8456_v58 }
0x29e4   :  { %5332 = vmatmul.mubr.msk.bf16.gmra.mrb[64].mxu1 %vm77_vm0, %v4837_v5 }
0x2aaf   :  { %v4894_v50 = vpop.f32.mrb[60].mxu1 }
0x2ab0   :  { %4938 = vrot.lane.b32.xlu1 %v4894_v50, %s6564_s29  ;;  %v4896_v18 = vpop.f32.mrb[61].mxu1  ;;  %v5333_v53 = vmul.f32 -1.442695, %v4894_v50 }
0x2ab1   :  { %4940 = vrot.lane.b32.xlu0 %v4896_v18, %s6564_s29  ;;  %v4898_v58 = vpop.f32.mrb[62].mxu1 }
0x2ab2   :  { %v4900_v52 = vpop.f32.mrb[63].mxu1  ;;  %v5334_v51 = vmul.f32 -1.442695, %v4898_v58  ;;  %6488 = vpow2.f32 %v5333_v53 }
0x2ab4   :  { %4942 = vrot.lane.b32.xlu1 %v4898_v58, %s6564_s29  ;;  %6490 = vpow2.f32 %v5334_v51 }
0x2ab5   :  { %4944 = vrot.lane.b32.xlu0 %v4900_v52, %s6564_s29 }
0x2ab7   :  { %v4904_v2 = vpop.f32.mrb[64].mxu1 }
0x2ab8   :  { %4946 = vrot.lane.b32.xlu1 %v4904_v2, %s6564_s29  ;;  %v4906_v24 = vpop.f32.mrb[65].mxu1  ;;  %v5335_v27 = vmul.f32 -1.442695, %v4904_v2 }
0x2ab9   :  { %4948 = vrot.lane.b32.xlu0 %v4906_v24, %s6564_s29  ;;  %v4908_v22 = vpop.f32.mrb[66].mxu1 }
0x2aba   :  { %v4909_v56 = vpop.f32.mrb[67].mxu1  ;;  %6492 = vpow2.f32 %v5335_v27 }
0x2abc   :  { %v6489_v30 = vpop.eup %6488 }
0x2abd   :  { %v4920_v45 = vadd.f32 1.0, %v6489_v30 }
0x2abe   :  { %v6491_v34 = vpop.eup %6490 }
0x2abf   :  { %v4921_v7 = vadd.f32 1.0, %v6491_v34  ;;  %6494 = vrcp.f32 %v4920_v45 }
0x2ac1   :  { %6496 = vrcp.f32 %v4921_v7 }
0x2ac4   :  { %v6493_v55 = vpop.eup %6492 }
0x2ac5   :  { %v4922_v13 = vadd.f32 1.0, %v6493_v55 }
0x2ac7   :  { %6498 = vrcp.f32 %v4922_v13 }
0x2ac9   :  { %v6495_v35 = vpop.eup %6494 }
0x2aca   :  { %v4929_v10 = vmul.f32 %v6495_v35, %v4894_v50 }
0x2acb   :  { %v6497_v38 = vpop.eup %6496 }
0x2acc   :  { %v4930_v6 = vmul.f32 %v6497_v38, %v4898_v58 }
0x2ad1   :  { %v6499_v25 = vpop.eup %6498 }
0x2ad2   :  { %v4931_v44 = vmul.f32 %v6499_v25, %v4904_v2  ;;  %v5350_v2 = vld [vmem:[%s8445_s5 + $0x8] ss:$0 sm:$0xff] }
0x2b22   :  { %v4939_v32 = vpop.permute.xlu1 %4938 }
0x2b23   :  { %v4941_v59 = vpop.permute.xlu0 %4940 }
0x2b24   :  { %v4950_v12 = vsel %vm77_vm0, %v4939_v32, %v4941_v59 }
0x2b25   :  { %v4956_v43 = vmul.f32 %v4950_v12, %v4929_v10 }
0x2b26   :  { %v4943_v40 = vpop.permute.xlu1 %4942 }
0x2b27   :  { %v4945_v36 = vpop.permute.xlu0 %4944 }
0x2b28   :  { %v4951_v21 = vsel %vm77_vm0, %v4943_v40, %v4945_v36 }
0x2b29   :  { %v4957_v16 = vmul.f32 %v4951_v21, %v4930_v6 }
0x2b2a   :  { %v4947_v0 = vpop.permute.xlu1 %4946 }
0x2b2b   :  { %v4972_v39 = vpack.c.bf16 %v4957_v16, %v4956_v43  ;;  %v4949_v29 = vpop.permute.xlu0 %4948 }
0x2b2c   :  { %v4952_v28 = vsel %vm77_vm0, %v4947_v0, %v4949_v29 }
0x2b2d   :  { %v4958_v23 = vmul.f32 %v4952_v28, %v4931_v44  ;;  %6003 = vmatprep.mubr.msk.bf16.mxu0 %vm623_vm3, %v4972_v39 }
0x2b2f   :  { %v4973_v31 = vpack.c.bf16 %v4958_v23, %v4958_v23 }
0x2b31   :  { %6004 = vmatmul.mubr.msk.bf16.vlgmr.msra.gmra.mrb[124].mxu0 %vm623_vm3, %v4973_v31 }
0x2c04   :  { %v6005_v37 = vpop.f32.mrb[124].mxu0 }
0x2c05   :  { %v5020_v20 = vpop.f32.mrb[125].mxu0  ;;  %v5036_v5 = vadd.f32 %v6005_v37, %v8308_v8  ;;  %v5070_v8 = vld [vmem:[%s8449_s9 + $0x8] sm:$0xff] }
0x2c06   :  { %v5034_v54 = vadd.f32 %v5020_v20, %v8310_v1  ;;  %v6006_v41 = vpop.f32.mrb[126].mxu0  ;;  %v5069_v1 = vld [vmem:[%s8449_s9] sm:$0xff] }
0x2c07   :  { %v5023_v14 = vpop.f32.mrb[127].mxu0  ;;  %v5040_v49 = vmul.f32 %v5036_v5, %v5036_v5 }
0x2c08   :  { %v5038_v57 = vmul.f32 %v5034_v54, %v5034_v54  ;;  %v5035_v9 = vadd.f32 %v5023_v14, %v8314_v3  ;;  %v5075_v3 = vpack.c.bf16 %v5070_v8, %v5069_v1 }
0x2c09   :  { %v5047_v63 = vsel %vm77_vm0, %v5040_v49, 0.0 }
0x2c0a   :  { %v5039_v33 = vmul.f32 %v5035_v9, %v5035_v9  ;;  %v5041_v48 = vsel %vm77_vm0, %v5038_v57, 0.0  ;;  %6007 = vmatprep.subr.bf16.mxu1 %v5075_v3 }
0x2c0b   :  { %5042 = vadd.xlane.f32.xlu1 %v5041_v48  ;;  %6008 = vmatpush3.bf16.msra.mxu1 %v5075_v3 }
0x2c0c   :  { %v5044_v4 = vsel %vm77_vm0, %v5039_v33, 0.0  ;;  %6009 = vmatprep.subr.bf16.mxu1 %v5076_v42 }
0x2c0d   :  { %5045 = vadd.xlane.f32.xlu0 %v5044_v4 }
0x2c0f   :  { %6010 = vmatpush3.bf16.msra.mxu1 %v5076_v42 }
0x2c11   :  { %5048 = vadd.xlane.f32.xlu0 %v5047_v63 }
0x2c98   :  { %v5043_v19 = vpop.xlane.xlu1 %5042 }
0x2c99   :  { %v5050_v46 = vmul.f32 0.03125, %v5043_v19 }
0x2c9a   :  { %v5046_v60 = vpop.xlane.xlu0 %5045 }
0x2c9b   :  { %v5053_v11 = vadd.f32 1e-05, %v5050_v46  ;;  %v5051_v47 = vmul.f32 0.03125, %v5046_v60 }
0x2c9d   :  { %6500 = vrsqrt.f32 %v5053_v11  ;;  %v5054_v61 = vadd.f32 1e-05, %v5051_v47 }
0x2c9e   :  { %v5049_v62 = vpop.xlane.xlu0 %5048 }
0x2c9f   :  { %6502 = vrsqrt.f32 %v5054_v61  ;;  %v5052_v26 = vmul.f32 0.03125, %v5049_v62 }
0x2ca1   :  { %v5055_v50 = vadd.f32 1e-05, %v5052_v26 }
0x2ca3   :  { %6504 = vrsqrt.f32 %v5055_v50 }
0x2ca7   :  { %v6501_v18 = vpop.eup %6500 }
0x2ca8   :  { %v5059_v58 = vmul.f32 %v6501_v18, %v5034_v54 }
0x2ca9   :  { %v6503_v52 = vpop.eup %6502 }
0x2caa   :  { %v5060_v24 = vmul.f32 %v6503_v52, %v5035_v9  ;;  %v5066_v22 = vmul.f32 %v5350_v2, %v5059_v58 }
0x2cac   :  { %v5067_v56 = vmul.f32 %v5350_v2, %v5060_v24 }
0x2cad   :  { %v6505_v53 = vpop.eup %6504 }
0x2cae   :  { %v5061_v51 = vmul.f32 %v6505_v53, %v5036_v5  ;;  %v5073_v27 = vpack.c.bf16 %v5067_v56, %v5066_v22 }
0x2cb0   :  { %v5068_v30 = vmul.f32 %v5350_v2, %v5061_v51  ;;  %6011 = vmatprep.mubr.msk.bf16.mxu1 %vm77_vm0, %v5073_v27 }
0x2cb2   :  { %v5074_v34 = vpack.c.bf16 %v5068_v30, %v5068_v30 }
0x2cb4   :  { %6012 = vmatmul.mubr.msk.bf16.vlgmr.msra.gmra.mrb[68].mxu1 %vm77_vm0, %v5074_v34 }
0x2cb5   :  { %6526 = shalt.err (!%p6523_p4)
}
0x2cb6   :  { %s6527_s21 = scalar_lea.hbm %s8452_s12, 32 }
0x2cb7   :  { %p6528_p5 = scmp.ne.s32.totalorder %s8452_s12, %s6527_s21  ;;  %p6531_p6 = scmp.lt.u32.totalorder %s6527_s21, %s8452_s12 }
0x2cb9   :  { %p6533_p7 = pnand %p6531_p6, %p6528_p5 }
0x2cbb   :  { %6536 = shalt.err (!%p6533_p7)
}
0x2cbc   :  { %5145 = dma.vmem_to_hbm [thread:$0]  %s5143_s6, 32, %s8452_s12, [#allocation4]  }
0x2cbd   :  { %s6537_s26 = scalar_lea.vmem %s5153_s19, 128  ;;  %p6542_p9 = scmp.lt.s32.totalorder %s5153_s19, %s5153_s19 }
0x2cbe   :  { %p6538_p8 = scmp.ne.s32.totalorder %s5153_s19, %s6537_s26  ;;  %p6543_p10 = scmp.lt.s32.totalorder %s6537_s26, %s6537_s26 }
0x2cc0   :  { %p6544_p11 = por %p6543_p10, %p6542_p9 }
0x2cc2   :  { %p6545_p12 = pnand %p6544_p11, %p6538_p8 }
0x2cc4   :  { %6548 = shalt.err (!%p6545_p12)
}
0x2cc5   :  { %s6549_s16 = scalar_lea.hbm %s8453_s13, 128 }
0x2cc6   :  { %p6550_p13 = scmp.ne.s32.totalorder %s8453_s13, %s6549_s16  ;;  %p6553_p0 = scmp.lt.u32.totalorder %s6549_s16, %s8453_s13 }
0x2cc8   :  { %p6555_p1 = pnand %p6553_p0, %p6550_p13 }
0x2cca   :  { %6558 = shalt.err (!%p6555_p1)
}
0x2ccb   :  { %5155 = dma.vmem_to_hbm [thread:$0]  %s5153_s19, 128, %s8453_s13, [#allocation6]  }
0x2d87   :  { %v6013_v45 = vpop.f32.mrb[68].mxu1 }
0x2d88   :  { %5133 = vst [vmem:[%s8451_s11 + $0x10] sm:$0xff] %v6013_v45  ;;  %v5117_v7 = vpop.f32.mrb[69].mxu1 }
0x2d89   :  { %5131 = vst [vmem:[%s8451_s11] sm:$0xff] %v5117_v7  ;;  %v6014_v55 = vpop.f32.mrb[70].mxu1 }
0x2d8a   :  { %v5120_v13 = vpop.f32.mrb[71].mxu1 }
0x2d8b   :  { %5132 = vst [vmem:[%s8451_s11 + $0x8] sm:$0xff] %v5120_v13 }
0x2d8c   :  { %6559 = dma.done.wait [#allocation4], 32  }
0x2d8d   :  { %6560 = vsyncadd [#allocation4], 4294967264 }
0x2d8e   :  { %6561 = dma.done.wait [#allocation6], 128  }
0x2d8f   :  { %6562 = vsyncadd [#allocation6], 4294967168 }
0x2d90   :  { %5164 = vsyncpa [#allocation4], 1 }
0x2d91   :  { %5165 = vsyncpa [#allocation6], 1 }

</bundles_post_ra>
